<compile_context>
chip_gen: v7x
topology: tpu7x:2x2x1
jax: 0.10.0
libtpu: 0.0.40
codegen_flags: <defaults>
</compile_context>

<pallas_src>
import functools

import jax
import jax.numpy as jnp
from jax.experimental import pallas as pl
from jax.experimental.pallas import tpu as pltpu

GATE_PAD = 128  # each GRU gate padded to one full 128-lane vreg width


# ---------------------------------------------------------------------------
# Padding helpers (gate-wise zero padding keeps the GRU math exactly equivalent:
# padded lanes of h stay 0 for all t because their W columns / biases are 0).
# ---------------------------------------------------------------------------
def _pad_gatewise_cols(w, hidden, gate_pad):
    """(rows, 3*H) -> (rows, 3*gate_pad): each gate's H columns zero-padded to gate_pad."""
    rows = w.shape[0]
    w3 = w.reshape(rows, 3, hidden)
    w3 = jnp.pad(w3, ((0, 0), (0, 0), (0, gate_pad - hidden)))
    return w3.reshape(rows, 3 * gate_pad)


# ---------------------------------------------------------------------------
# Phase 1: hoisted input projection  gi = x @ W_ih^T + b_ih
#   - W_ih^T (bf16, gate-padded) is VMEM-resident (constant index_map, no K axis)
#   - x is read once as f32 straight from HBM and cast to bf16 in-kernel
#   - lane-dense (multiple-of-128) output stores
# ---------------------------------------------------------------------------
def input_proj_kernel(x_ref, w_ref, b_ref, o_ref):
    x_bf = x_ref[...].astype(jnp.bfloat16)          # cast after load: 4 B/elt HBM read, once
    o_ref[...] = jnp.dot(x_bf, w_ref[...],
                         preferred_element_type=jnp.float32) + b_ref[...]


def _pick_block_m(M):
    # Largest row tile (multiple of 8, <=256) dividing M while keeping >=2 grid blocks
    # so the parallel axis can be split across v7x's two TensorCores.
    for bm in (256, 128, 64, 32, 16, 8):
        if M % bm == 0 and M // bm >= 2:
            return bm
    return M  # single full-extent block (allowed even if M % 8 != 0)


def input_projection(x_f32, w_pad_bf16, b_pad_f32):
    """(M, F) f32  @  (F, Np) bf16 (resident)  +  (1, Np) f32  ->  (M, Np) f32."""
    M, F = x_f32.shape
    Np = w_pad_bf16.shape[1]
    bm = _pick_block_m(M)
    grid = (M // bm,)

    # Explicit VMEM budget: double-buffered x tile (f32) + resident weight (bf16, counted 2x
    # conservatively) + double-buffered output tile + bias.  Cap at 64 MB (v7x physical VMEM).
    need = 2 * bm * F * 4 + 2 * F * Np * 2 + 2 * bm * Np * 4 + 2 * Np * 4
    vmem_limit = int(min(max(need + (4 << 20), 32 << 20), 64 << 20))

    return pl.pallas_call(
        input_proj_kernel,
        out_shape=jax.ShapeDtypeStruct((M, Np), jnp.float32),
        grid_spec=pltpu.PrefetchScalarGridSpec(
            num_scalar_prefetch=0,
            grid=grid,
            in_specs=[
                pl.BlockSpec((bm, F), lambda m: (m, 0)),   # x row tile (f32, read once)
                pl.BlockSpec((F, Np), lambda m: (0, 0)),   # W_ih^T resident across the grid
                pl.BlockSpec((1, Np), lambda m: (0, 0)),   # bias resident
            ],
            out_specs=pl.BlockSpec((bm, Np), lambda m: (m, 0)),
        ),
        compiler_params=pltpu.CompilerParams(
            dimension_semantics=("parallel",),
            vmem_limit_bytes=vmem_limit),
    )(x_f32, w_pad_bf16, b_pad_f32)


# ---------------------------------------------------------------------------
# Phase 2: GRU recurrence over precomputed gi; single invocation, capped-unroll fori_loop.
# All gate slices are 128-lane aligned (free vreg selection, no masked ops on the
# serial dependence chain).
# ---------------------------------------------------------------------------
def gru_recurrence_kernel(gi_ref, whh_ref, bhh_ref, h_ref, *, seq_len, unroll):
    Gp = GATE_PAD
    B = h_ref.shape[0]
    whh = whh_ref[...]            # (Gp, 3*Gp) f32, loaded once, stays resident
    bhh = bhh_ref[...]            # (1, 3*Gp)

    def step(t, h):
        gi = gi_ref[t]            # (B, 3*Gp) precomputed x_t @ W_ih^T + b_ih
        gh = jnp.dot(h, whh, preferred_element_type=jnp.float32) + bhh
        r = jax.nn.sigmoid(gi[:, 0:Gp] + gh[:, 0:Gp])
        z = jax.nn.sigmoid(gi[:, Gp:2 * Gp] + gh[:, Gp:2 * Gp])
        n = jnp.tanh(gi[:, 2 * Gp:3 * Gp] + r * gh[:, 2 * Gp:3 * Gp])
        return (1.0 - z) * n + z * h   # torch.nn.GRU update rule

    h0 = jnp.zeros((B, Gp), jnp.float32)          # h_0 = 0 (torch.nn.GRU default)
    h_ref[...] = jax.lax.fori_loop(0, seq_len, step, h0, unroll=unroll)


def gru_recurrence(gi, whh_pad, bhh_pad):
    """gi: (T, B, 3*Gp) f32 -> h_T: (B, Gp) f32 (lanes >= H are zero)."""
    T, B, _ = gi.shape
    vmem = pltpu.MemorySpace.VMEM
    return pl.pallas_call(
        functools.partial(gru_recurrence_kernel, seq_len=T, unroll=min(T, 8)),
        out_shape=jax.ShapeDtypeStruct((B, GATE_PAD), jnp.float32),
        in_specs=[pl.BlockSpec(memory_space=vmem)] * 3,
        out_specs=pl.BlockSpec(memory_space=vmem),
    )(gi, whh_pad, bhh_pad)


# ---------------------------------------------------------------------------
# Full forward (mirrors ConvLSTM.forward for num_layers=1, features precomputed)
# ---------------------------------------------------------------------------
def convlstm_forward(X, params):
    B, T, Cf, Hf, Wf = X.shape
    F = Cf * Hf * Wf
    H = params["w_hh_t"].shape[0]
    Gp = GATE_PAD

    # Gate-wise padded parameters (tiny relative to X; folds to constants under jit).
    w_ih_pad = _pad_gatewise_cols(params["w_ih_t"], H, Gp).astype(jnp.bfloat16)   # (F, 3Gp)
    b_ih_pad = _pad_gatewise_cols(params["b_ih"], H, Gp)                          # (1, 3Gp)
    whh_pad = jnp.pad(_pad_gatewise_cols(params["w_hh_t"], H, Gp),
                      ((0, Gp - H), (0, 0)))                                      # (Gp, 3Gp)
    bhh_pad = _pad_gatewise_cols(params["b_hh"], H, Gp)                           # (1, 3Gp)

    # Per-frame flatten(start_dim=1); keep X contiguous / B-major / f32 — no HBM transpose
    # or cast pass over the big tensor.
    x_flat = X.reshape(B * T, F)
    gi = input_projection(x_flat, w_ih_pad, b_ih_pad)        # (B*T, 3Gp) f32
    # Reorder only the tiny gi to seq-major (T, B, 3Gp) for the recurrence.
    gi = gi.reshape(B, T, 3 * Gp).transpose(1, 0, 2)

    h_T = gru_recurrence(gi, whh_pad, bhh_pad)               # h_n for num_layers=1

    # fc + sigmoid head in plain JAX (N=1 matmul; keeping it out of the kernel avoids
    # lane-1 masked stores).
    logits = jnp.dot(h_T[:, :H], params["fc_w_t"]) + params["fc_b"]
    return jax.nn.sigmoid(logits).reshape(-1)                # flatten(start_dim=0) -> (B,)


# ---------------------------------------------------------------------------
# Pure-JAX reference (same math: bf16 operands for the input projection, f32 recurrence)
# ---------------------------------------------------------------------------
def convlstm_reference(X, params):
    B, T = X.shape[:2]
    F = X.shape[2] * X.shape[3] * X.shape[4]
    H = params["w_hh_t"].shape[0]
    hi = jax.lax.Precision.HIGHEST

    x_seq = jnp.transpose(X.reshape(B, T, F), (1, 0, 2))
    gi_all = jnp.dot(x_seq.reshape(T * B, F).astype(jnp.bfloat16),
                     params["w_ih_t"].astype(jnp.bfloat16),
                     precision=hi, preferred_element_type=jnp.float32) + params["b_ih"]
    gi_all = gi_all.reshape(T, B, 3 * H)

    h = jnp.zeros((B, H), jnp.float32)
    for t in range(T):
        gi = gi_all[t]
        gh = jnp.dot(h, params["w_hh_t"], precision=hi) + params["b_hh"]
        r = jax.nn.sigmoid(gi[:, :H] + gh[:, :H])
        z = jax.nn.sigmoid(gi[:, H:2 * H] + gh[:, H:2 * H])
        n = jnp.tanh(gi[:, 2 * H:] + r * gh[:, 2 * H:])
        h = (1.0 - z) * n + z * h
    logits = jnp.dot(h, params["fc_w_t"], precision=hi) + params["fc_b"]
    return jax.nn.sigmoid(logits).reshape(-1)


if __name__ == "__main__":
    # Small, deterministic example shapes (stand-in feature maps; real model uses 2560x4x4).
    B, T, Cf, Hf, Wf = 2, 8, 256, 4, 4
    HIDDEN = 32
    NUM_LAYERS = 1  # module default; only num_layers=1 is implemented
    F = Cf * Hf * Wf

    key = jax.random.PRNGKey(0)
    keys = jax.random.split(key, 8)
    X = jax.random.normal(keys[0], (B, T, Cf, Hf, Wf), jnp.float32)

    s = 1.0 / float(jnp.sqrt(HIDDEN))  # torch GRU/Linear-style uniform init scale
    params = {
        "w_ih_t": jax.random.uniform(keys[1], (F, 3 * HIDDEN), jnp.float32, -s, s),
        "w_hh_t": jax.random.uniform(keys[2], (HIDDEN, 3 * HIDDEN), jnp.float32, -s, s),
        "b_ih":   jax.random.uniform(keys[3], (1, 3 * HIDDEN), jnp.float32, -s, s),
        "b_hh":   jax.random.uniform(keys[4], (1, 3 * HIDDEN), jnp.float32, -s, s),
        "fc_w_t": jax.random.uniform(keys[5], (HIDDEN, 1), jnp.float32, -s, s),
        "fc_b":   jax.random.uniform(keys[6], (1, 1), jnp.float32, -s, s),
    }

    out = jax.block_until_ready(convlstm_forward(X, params))
    assert out.shape == (NUM_LAYERS * B,), out.shape

    ref = jax.block_until_ready(convlstm_reference(X, params))
    assert bool(jnp.allclose(out, ref, rtol=2e-3, atol=2e-3)), (out, ref)

    print("KERNEL_OK")
</pallas_src>

<mosaic_0001>
module attributes {stable_mosaic.version = 11 : i64} {
  func.func @input_proj_kernel(%arg0: i32, %arg1: memref<8x4096xf32, #tpu.memory_space<vmem>>, %arg2: memref<4096x384xbf16, #tpu.memory_space<vmem>>, %arg3: memref<1x384xf32, #tpu.memory_space<vmem>>, %arg4: memref<8x384xf32, #tpu.memory_space<vmem>>) attributes {dimension_semantics = [#tpu.dimension_semantics<parallel>], iteration_bounds = array<i64: 2>, scalar_prefetch = 0 : i64, scratch_operands = 0 : i64, tpu.core_type = #tpu.core_type<tc>, window_params = [{transform_indices = @transform_0, window_bounds = array<i64: 8, 4096>}, {pipeline_mode = #tpu.pipeline_mode<synchronous>, transform_indices = @transform_1, window_bounds = array<i64: 4096, 384>}, {pipeline_mode = #tpu.pipeline_mode<synchronous>, transform_indices = @transform_2, window_bounds = array<i64: 1, 384>}, {transform_indices = @transform_3, window_bounds = array<i64: 8, 384>}]} {
    %c0 = arith.constant 0 : index
    %c0_0 = arith.constant 0 : index
    %0 = vector.load %arg1[%c0, %c0_0] : memref<8x4096xf32, #tpu.memory_space<vmem>>, vector<8x4096xf32>
    %1 = arith.truncf %0 : vector<8x4096xf32> to vector<8x4096xbf16>
    %c0_1 = arith.constant 0 : index
    %c0_2 = arith.constant 0 : index
    %2 = vector.load %arg2[%c0_1, %c0_2] : memref<4096x384xbf16, #tpu.memory_space<vmem>>, vector<4096x384xbf16>
    %cst = arith.constant dense<0.000000e+00> : vector<8x384xf32>
    %3 = tpu.matmul %1, %2, %cst {dimension_numbers = #tpu.dot_dimension_numbers<[1], [0], [0], [1], [0, 0, 1, 1], [], []>} : vector<8x4096xbf16>, vector<4096x384xbf16>, vector<8x384xf32> -> vector<8x384xf32>
    %c0_3 = arith.constant 0 : index
    %c0_4 = arith.constant 0 : index
    %4 = vector.load %arg3[%c0_3, %c0_4] : memref<1x384xf32, #tpu.memory_space<vmem>>, vector<1x384xf32>
    %5 = vector.broadcast %4 : vector<1x384xf32> to vector<8x384xf32>
    %6 = arith.addf %3, %5 : vector<8x384xf32>
    %c0_5 = arith.constant 0 : index
    %c0_6 = arith.constant 0 : index
    %7 = vector.load %arg4[%c0_5, %c0_6] : memref<8x384xf32, #tpu.memory_space<vmem>>, vector<8x384xf32>
    tpu.vector_store %arg4[%c0_5, %c0_6], %6 {strides = array<i32>} : memref<8x384xf32, #tpu.memory_space<vmem>>, vector<8x384xf32>,
    return
  }
  func.func @transform_0(%arg0: i32) -> (i32, i32) {
    %c0_i32 = arith.constant 0 : i32
    %c0_i32_0 = arith.constant 0 : i32
    return %arg0, %c0_i32 : i32, i32
  }
  func.func @transform_1(%arg0: i32) -> (i32, i32) {
    %c0_i32 = arith.constant 0 : i32
    %c0_i32_0 = arith.constant 0 : i32
    %c0_i32_1 = arith.constant 0 : i32
    return %c0_i32, %c0_i32_0 : i32, i32
  }
  func.func @transform_2(%arg0: i32) -> (i32, i32) {
    %c0_i32 = arith.constant 0 : i32
    %c0_i32_0 = arith.constant 0 : i32
    %c0_i32_1 = arith.constant 0 : i32
    return %c0_i32, %c0_i32_0 : i32, i32
  }
  func.func @transform_3(%arg0: i32) -> (i32, i32) {
    %c0_i32 = arith.constant 0 : i32
    %c0_i32_0 = arith.constant 0 : i32
    return %arg0, %c0_i32 : i32, i32
  }
}

</mosaic_0001>

<bundles_post_ra>
// kernel: tpu_custom_call.1
= control target key start
LH: loop header
LB: loop body
LE: loop exit
PB: predicated region body
PF: predicated region fallthrough
CT: control target
= control target key end

     0   :  { %8 = vsyncpa [#allocation3], 0  ;;  %s9719_s0 = inlined_call_operand.hbm [shape: f32[16,4096], index: 0, kind: input, shape index: {}]   ;;  %s9720_s1 = inlined_call_operand.hbm [shape: bf16[4096,384], index: 1, kind: input, shape index: {}]   ;;  %s9721_s2 = inlined_call_operand.hbm [shape: f32[1,384], index: 2, kind: input, shape index: {}]   ;;  %s9722_s3 = inlined_call_operand.hbm [shape: f32[16,384], index: 3, kind: output, shape index: {}]  }
   0x1   :  { %10 = vsyncpa [#allocation3 + $0x1], 0 }
   0x2   :  { %11 = vsyncpa [#allocation6], 0 }
   0x3   :  { %12 = vsyncpa [#allocation4], 0 }
   0x4   :  { %14 = vsyncpa [#allocation4 + $0x1], 0  ;;  %s9295_s12 = smov 0   ;;  %s9297_s13 = smov 0  }
   0x5   :  { %s9299_s14 = smov 0   ;;  %s9301_s15 = smov 0  }
   0x6 LB: > { %s9316_s16 = sadd.s32 4294967295, %s9267_s15   ;;  %s6819_s17 = sadd.s32 4294967294, %s9267_s15   ;;  %s9267_s15 = sphi %s9301_s15, %s9742_s15   ;;  %s9263_s14 = sphi %s9299_s14, %s9741_s14   ;;  %s9259_s13 = sphi %s9297_s13, %s9740_s13   ;;  %s9255_s12 = sphi %s9295_s12, %s9739_s12  }
   0x7   : > { %p40_p0 = scmp.ne.s32.totalorder %s9259_s13, %s9255_s12  ;;  %p9723_p1 = scmp.eq.s32.totalorder %s9316_s16, 0 }
   0x8   : > { %p112_p3 = scmp.eq.s32.totalorder %s6819_s17, 1  ;;  %p6820_p5 = scmp.ge.s32.totalorder %s9267_s15, 1 }
   0x9   : > { %p9325_p4 = por %p9723_p1, %p40_p0  ;;  %p119_p7 = scmp.lt.s32.totalorder %s9267_s15, 3 }
   0xa   : > { %p9330_p6 = por %p112_p3, %p40_p0  ;;  %s9269_s21 = smov [#allocation5]  }
   0xb   : > { %s9726_s18 = scalar_select %p9325_p4, 1, 0 }
   0xc   : > { %s9727_s19 = scalar_select %p9330_p6, 1, 0 }
   0xd   : > { %p9335_p8 = pnand %p6820_p5, %p119_p7  ;;  %s131_s22 = sshll.u32 %s9269_s21, 4  ;;  %s9339_s22 = int_to_ptr.vmem [resolvable:$true] %s131_s22 }
   0xe   : > { %s9270_s24 = smov [#allocation7]   ;;  %s9111_s28 = scalar_lea.hbm %s9720_s1, 98304 }
   0xf   : > { %p8029_p9 = pneg %p9335_p8  ;;  %s145_s25 = sshll.u32 %s9270_s24, 4  ;;  %s9350_s25 = int_to_ptr.vmem [resolvable:$true] %s145_s25 }
  0x10   : > { %p9112_p12 = scmp.ne.s32.totalorder %s9720_s1, %s9111_s28  ;;  %p9118_p5 = scmp.lt.u32.totalorder %s9111_s28, %s9720_s1 }
  0x11   : > { %p9346_p11 = pnand %p8029_p9, %p9723_p1 }
  0x13   : > { %p9113_p13 = pneg %p9346_p11 }
  0x15   : > { %p9114_p0 = pnand %p9113_p13, %p9112_p12 }
  0x17   : > { %p9115_p3 = pneg %p9114_p0 }
  0x19   : > { %p9120_p7 = pnand %p9118_p5, %p9115_p3 }
  0x1b   : > { %9123 = shalt.err (!%p9120_p7)
}
  0x1c   : > { %s9124_s6 = scalar_lea.vmem %s9339_s22, 98304  ;;  %p9132_p2 = scmp.lt.s32.totalorder %s9339_s22, %s9339_s22 }
  0x1d   : > { %p9125_p9 = scmp.ne.s32.totalorder %s9339_s22, %s9124_s6  ;;  %p9133_p12 = scmp.lt.s32.totalorder %s9124_s6, %s9124_s6 }
  0x1f   : > { %p9127_p10 = pnand %p9125_p9, %p9113_p13  ;;  %p9134_p0 = por %p9133_p12, %p9132_p2 }
  0x21   : > { %p9128_p1 = pneg %p9127_p10 }
  0x23   : > { %p9135_p6 = pnand %p9134_p0, %p9128_p1 }
  0x25   : > { %9138 = shalt.err (!%p9135_p6)
}
  0x26   : > { %s9271_s7 = smov 192   ;;  %s9272_s8 = smov 12  }
  0x27   : > { %8032 = dma.hbm_to_vmem [thread:$0]  (!%p9346_p11), %s9720_s1, 98304, %s9339_s22, [#allocation6], %s9271_s7, %s9271_s7, %s9272_s8  }
  0x28   : > { %s9139_s21 = scalar_lea.hbm %s9721_s2, 48 }
  0x29   : > { %p9140_p2 = scmp.ne.s32.totalorder %s9721_s2, %s9139_s21  ;;  %p9146_p10 = scmp.lt.u32.totalorder %s9139_s21, %s9721_s2 }
  0x2b   : > { %p9142_p1 = pnand %p9140_p2, %p9113_p13 }
  0x2d   : > { %p9143_p6 = pneg %p9142_p1 }
  0x2f   : > { %p9148_p3 = pnand %p9146_p10, %p9143_p6 }
  0x31   : > { %9151 = shalt.err (!%p9148_p3)
}
  0x32   : > { %s9152_s22 = scalar_lea.vmem %s9350_s25, 48  ;;  %s9159_s29 = scalar_lea.vmem %s9350_s25, 64 }
  0x33   : > { %p9153_p5 = scmp.ne.s32.totalorder %s9350_s25, %s9152_s22  ;;  %p9160_p12 = scmp.lt.s32.totalorder %s9350_s25, %s9350_s25 }
  0x34   : > { %p9161_p0 = scmp.lt.s32.totalorder %s9159_s29, %s9152_s22 }
  0x35   : > { %p9155_p7 = pnand %p9153_p5, %p9113_p13 }
  0x36   : > { %p9162_p2 = por %p9161_p0, %p9160_p12 }
  0x37   : > { %p9156_p9 = pneg %p9155_p7 }
  0x39   : > { %p9163_p1 = pnand %p9162_p2, %p9156_p9 }
  0x3b   : > { %9166 = shalt.err (!%p9163_p1)
}
  0x3c   : > { %8035 = dma.hbm_to_vmem [thread:$0]  (!%p9346_p11), %s9721_s2, 48, %s9350_s25, [#allocation6]  }
  0x3d   : > { %s9406_s5 = sadd.s32 1, %s9267_s15   ;;  %s27_s23 = sadd.s32 1, %s9263_s14 }
  0x3e   : > { %s24_s6 = ssub.s32 %s9267_s15, %s9406_s5  ;;  %p34_p13 = scmp.ne.s32.totalorder %s9263_s14, %s9259_s13 }
  0x3f   : > { %p25_p6 = scmp.eq.s32.totalorder %s24_s6, 0  ;;  %p35_p10 = scmp.eq.s32.totalorder %s9267_s15, 0 }
  0x40   : > { %p9730_p3 = scmp.eq.s32.totalorder %s9316_s16, 1  ;;  %p8046_p7 = scmp.lt.s32.totalorder %s9267_s15, 2 }
  0x41   : > { %s9422_s8 = scalar_select %p25_p6, %s9263_s14, %s27_s23  }
  0x42   : > { %p9416_p5 = por %p9730_p3, %p34_p13  ;;  %p36_p9 = por %p35_p10, %p34_p13 }
  0x43   : > { %s156_s9 = sand.u32 1, %s9263_s14   ;;  %s7602_s25 = sshll.u32 %s9267_s15, 12 }
  0x44   : > { %s9731_s7 = scalar_select %p9416_p5, 1, 0 }
  0x45   : > { %s6824_s10 = sshll.u32 %s156_s9, 8  ;;  %s9429_s21 = scalar_lea.hbm %s9719_s0, %s7602_s25 }
  0x46   : > { %s160_s24 = scalar_lea.vmem [#allocation2], %s6824_s10  ;;  %p9433_p11 = pnand %p8046_p7, %p36_p9 }
  0x47   : > { %s168_s26 = sshll.u32 %s160_s24, 4  ;;  %s157_s28 = scalar_lea.sflag [#allocation3], %s156_s9  ;;  %s9431_s26 = int_to_ptr.vmem [resolvable:$true] %s168_s26 }
  0x48   : > { %s9167_s22 = scalar_lea.hbm %s9429_s21, 4096  ;;  %p9169_p0 = pneg %p9433_p11 }
  0x49   : > { %p9168_p12 = scmp.ne.s32.totalorder %s9429_s21, %s9167_s22  ;;  %s9172_s4 = scalar_lea.hbm %s9719_s0, 8192 }
  0x4a   : > { %p9173_p13 = scmp.lt.u32.totalorder %s9429_s21, %s9719_s0  ;;  %p9174_p6 = scmp.lt.u32.totalorder %s9172_s4, %s9167_s22 }
  0x4b   : > { %p9170_p2 = pnand %p9169_p0, %p9168_p12  ;;  %p9176_p3 = scmp.lt.u32.totalorder %s9167_s22, %s9429_s21 }
  0x4c   : > { %p9175_p10 = por %p9174_p6, %p9173_p13 }
  0x4d   : > { %p9171_p1 = pneg %p9170_p2 }
  0x4e   : > { %p9177_p7 = por %p9176_p3, %p9175_p10 }
  0x50   : > { %p9178_p9 = pnand %p9177_p7, %p9171_p1 }
  0x52   : > { %9181 = shalt.err (!%p9178_p9)
}
  0x53   : > { %s9182_s9 = scalar_lea.vmem %s9431_s26, 4096  ;;  %s9273_s10 = smov [#allocation2]  }
  0x54   : > { %p9183_p12 = scmp.ne.s32.totalorder %s9431_s26, %s9182_s9  ;;  %s9187_s25 = sshll.u32 %s9273_s10, 4  ;;  %s9188_s25 = int_to_ptr.vmem [resolvable:$false] %s9187_s25 }
  0x55   : > { %s9189_s11 = scalar_lea.vmem %s9188_s25, 8192  ;;  %p9190_p4 = scmp.lt.s32.totalorder %s9431_s26, %s9188_s25 }
  0x56   : > { %p9185_p2 = pnand %p9183_p12, %p9169_p0  ;;  %p9191_p13 = scmp.lt.s32.totalorder %s9189_s11, %s9182_s9 }
  0x58   : > { %p9186_p5 = pneg %p9185_p2  ;;  %p9192_p6 = por %p9191_p13, %p9190_p4 }
  0x5a   : > { %p9193_p10 = pnand %p9192_p6, %p9186_p5 }
  0x5c   : > { %9196 = shalt.err (!%p9193_p10)
}
  0x5d   : > { %8039 = dma.hbm_to_vmem [thread:$0]  (!%p9433_p11), %s9429_s21, 4096, %s9431_s26, %s157_s28  }
  0x5e   : > { %177 = sbr.rel (%p9335_p8) target bundleno = 1105 (0x451), region = 32  ;;  %s9465_s17 = sand.u32 (!%p9335_p8), 1, %s9259_s13  }
  0x5f   : > { %s6828_s24 = sshll.u32 (!%p9335_p8), %s9465_s17, 8  ;;  %s180_s22 = scalar_lea.sflag (!%p9335_p8), [#allocation3], %s9465_s17 }
  0x60   : > { %s9469_s29 = scalar_lea.vmem (!%p9335_p8), [#allocation2], %s6828_s24  ;;  %p9733_p4 = scmp.ne.s32.totalorder (!%p9335_p8), %s9726_s18, 0 }
  0x65   : > { %9242 = dma.done.wait (%p9733_p4), %s180_s22, 4096  }
  0x66   : > { %9244 = vsyncadd (%p9733_p4), %s180_s22, 4294963200  ;;  %p9734_p5 = scmp.eq.s32.totalorder %s9316_s16, 0 }
  0x68   : > { %9246 = dma.done.wait (%p9734_p5), [#allocation6], 98352   ;;  %p9735_p8 = pmov %p9734_p5 }
  0x69   : > { %v8086_v0 = vld [vmem:[#allocation5 + $0x4] ss:$12 sps:$4 sm:$0xff]   ;;  %v8090_v2 = vld [vmem:[#allocation5] ss:$12 sps:$4 sm:$0xff]   ;;  %v8092_v4 = vld [vmem:[#allocation5 + $0x1c] ss:$12 sps:$4 sm:$0xff]  }
  0x6a   : > { %9248 = vsyncadd (%p9735_p8), [#allocation6], 4294868944  ;;  %v8088_v1 = vld [vmem:[#allocation5 + $0x604] ss:$12 sps:$4 sm:$0xff]   ;;  %5416 = vmatprep.subr.bf16.mxu1 %v8086_v0  ;;  %v8091_v3 = vld [vmem:[#allocation5 + $0x600] ss:$12 sps:$4 sm:$0xff]  }
  0x6b   : > { %5580 = vmatprep.subr.bf16.mxu0 %v8088_v1  ;;  %5417 = vmatpush1.bf16.msra.mxu1 %v8090_v2  ;;  %v8094_v5 = vld [vmem:[#allocation5 + $0x61c] ss:$12 sps:$4 sm:$0xff]   ;;  %v8096_v6 = vld [vmem:[#allocation5 + $0x18] ss:$12 sps:$4 sm:$0xff]   ;;  %v8098_v8 = vld [vmem:[#allocation5 + $0x34] ss:$12 sps:$4 sm:$0xff]  }
  0x6c   : > { %5581 = vmatpush1.bf16.msra.mxu0 %v8091_v3  ;;  %5418 = vmatprep.subr.bf16.mxu1 %v8092_v4  ;;  %v8097_v7 = vld [vmem:[#allocation5 + $0x618] ss:$12 sps:$4 sm:$0xff]   ;;  %v8100_v9 = vld [vmem:[#allocation5 + $0x634] ss:$12 sps:$4 sm:$0xff]   ;;  %v8102_v10 = vld [vmem:[#allocation5 + $0x30] ss:$12 sps:$4 sm:$0xff]  }
  0x6d   : > { %5582 = vmatprep.subr.bf16.mxu0 %v8094_v5  ;;  %v8103_v11 = vld [vmem:[#allocation5 + $0x630] ss:$12 sps:$4 sm:$0xff]   ;;  %v8104_v12 = vld [vmem:[#allocation5 + $0x4c] ss:$12 sps:$4 sm:$0xff]   ;;  %v8108_v14 = vld [vmem:[#allocation5 + $0x48] ss:$12 sps:$4 sm:$0xff]  }
  0x6e   : > { %v8106_v13 = vld [vmem:[#allocation5 + $0x64c] ss:$12 sps:$4 sm:$0xff]   ;;  %v8109_v15 = vld [vmem:[#allocation5 + $0x648] ss:$12 sps:$4 sm:$0xff]   ;;  %v8110_v16 = vld [vmem:[#allocation5 + $0x64] ss:$12 sps:$4 sm:$0xff]  }
  0x6f   : > { %5419 = vmatpush1.bf16.msra.mxu1 %v8096_v6  ;;  %v8112_v17 = vld [vmem:[#allocation5 + $0x664] ss:$12 sps:$4 sm:$0xff]   ;;  %v8114_v18 = vld [vmem:[#allocation5 + $0x60] ss:$12 sps:$4 sm:$0xff]   ;;  %v8116_v20 = vld [vmem:[#allocation5 + $0x7c] ss:$12 sps:$4 sm:$0xff]  }
  0x70   : > { %5583 = vmatpush1.bf16.msra.mxu0 %v8097_v7  ;;  %5420 = vmatprep.subr.bf16.mxu1 %v8098_v8  ;;  %v8115_v19 = vld [vmem:[#allocation5 + $0x660] ss:$12 sps:$4 sm:$0xff]   ;;  %v8118_v21 = vld [vmem:[#allocation5 + $0x67c] ss:$12 sps:$4 sm:$0xff]   ;;  %v8120_v22 = vld [vmem:[#allocation5 + $0x78] ss:$12 sps:$4 sm:$0xff]  }
  0x71   : > { %5584 = vmatprep.subr.bf16.mxu0 %v8100_v9  ;;  %v8121_v23 = vld [vmem:[#allocation5 + $0x678] ss:$12 sps:$4 sm:$0xff]   ;;  %v8122_v24 = vld [vmem:[#allocation5 + $0x94] ss:$12 sps:$4 sm:$0xff]   ;;  %v8126_v26 = vld [vmem:[#allocation5 + $0x90] ss:$12 sps:$4 sm:$0xff]  }
  0x72   : > { %v8124_v25 = vld [vmem:[#allocation5 + $0x694] ss:$12 sps:$4 sm:$0xff]   ;;  %v8127_v27 = vld [vmem:[#allocation5 + $0x690] ss:$12 sps:$4 sm:$0xff]   ;;  %v8128_v28 = vld [vmem:[#allocation5 + $0xac] ss:$12 sps:$4 sm:$0xff]  }
  0x73   : > { %5421 = vmatpush1.bf16.msra.mxu1 %v8102_v10  ;;  %v8130_v29 = vld [vmem:[#allocation5 + $0x6ac] ss:$12 sps:$4 sm:$0xff]   ;;  %v8132_v30 = vld [vmem:[#allocation5 + $0xa8] ss:$12 sps:$4 sm:$0xff]   ;;  %v8134_v32 = vld [vmem:[#allocation5 + $0xc4] ss:$12 sps:$4 sm:$0xff]  }
  0x74   : > { %5585 = vmatpush1.bf16.msra.mxu0 %v8103_v11  ;;  %5422 = vmatprep.subr.bf16.mxu1 %v8104_v12  ;;  %v8133_v31 = vld [vmem:[#allocation5 + $0x6a8] ss:$12 sps:$4 sm:$0xff]   ;;  %v8136_v33 = vld [vmem:[#allocation5 + $0x6c4] ss:$12 sps:$4 sm:$0xff]   ;;  %v8138_v34 = vld [vmem:[#allocation5 + $0xc0] ss:$12 sps:$4 sm:$0xff]  }
  0x75   : > { %5586 = vmatprep.subr.bf16.mxu0 %v8106_v13  ;;  %v8139_v35 = vld [vmem:[#allocation5 + $0x6c0] ss:$12 sps:$4 sm:$0xff]   ;;  %v8140_v36 = vld [vmem:[#allocation5 + $0xdc] ss:$12 sps:$4 sm:$0xff]   ;;  %v8144_v38 = vld [vmem:[#allocation5 + $0xd8] ss:$12 sps:$4 sm:$0xff]  }
  0x76   : > { %v8142_v37 = vld [vmem:[#allocation5 + $0x6dc] ss:$12 sps:$4 sm:$0xff]   ;;  %v8145_v39 = vld [vmem:[#allocation5 + $0x6d8] ss:$12 sps:$4 sm:$0xff]   ;;  %v8146_v40 = vld [vmem:[#allocation5 + $0xf4] ss:$12 sps:$4 sm:$0xff]  }
  0x77   : > { %5423 = vmatpush1.bf16.msra.mxu1 %v8108_v14  ;;  %v8148_v41 = vld [vmem:[#allocation5 + $0x6f4] ss:$12 sps:$4 sm:$0xff]   ;;  %v8150_v42 = vld [vmem:[#allocation5 + $0xf0] ss:$12 sps:$4 sm:$0xff]   ;;  %v8152_v44 = vld [vmem:[#allocation5 + $0x10c] ss:$12 sps:$4 sm:$0xff]  }
  0x78   : > { %5587 = vmatpush1.bf16.msra.mxu0 %v8109_v15  ;;  %5424 = vmatprep.subr.bf16.mxu1 %v8110_v16  ;;  %v8151_v43 = vld [vmem:[#allocation5 + $0x6f0] ss:$12 sps:$4 sm:$0xff]   ;;  %v8154_v45 = vld [vmem:[#allocation5 + $0x70c] ss:$12 sps:$4 sm:$0xff]   ;;  %v8156_v47 = vld [vmem:[#allocation5 + $0x108] ss:$12 sps:$4 sm:$0xff]  }
  0x79   : > { %5588 = vmatprep.subr.bf16.mxu0 %v8112_v17  ;;  %v216_v46 = vld [vmem:[%s9469_s29 + $0x8] sm:$0xff]  ;;  %v8158_v51 = vld [vmem:[#allocation5 + $0x124] ss:$12 sps:$4 sm:$0xff]   ;;  %v8170_v60 = vld [vmem:[#allocation5 + $0x154] ss:$12 sps:$4 sm:$0xff]   ;;  %s8015_s18 = smul.u32 24, %s9465_s17 }
  0x7a   : > { %v9480_v48 = vpack.c.bf16 %v216_v46, %v216_v46  ;;  %v8157_v49 = vld [vmem:[#allocation5 + $0x708] ss:$12 sps:$4 sm:$0xff]   ;;  %v8160_v52 = vld [vmem:[#allocation5 + $0x724] ss:$12 sps:$4 sm:$0xff]   ;;  %v8162_v54 = vld [vmem:[#allocation5 + $0x120] ss:$12 sps:$4 sm:$0xff]  }
  0x7b   : > { %5425 = vmatpush1.bf16.msra.mxu1 %v8114_v18  ;;  %v224_v50 = vld [vmem:[%s9469_s29 + $0x48] sm:$0xff]  ;;  %v8168_v58 = vld [vmem:[#allocation5 + $0x138] ss:$12 sps:$4 sm:$0xff]   ;;  %v8172_v61 = vld [vmem:[#allocation5 + $0x754] ss:$12 sps:$4 sm:$0xff]   ;;  %s8016_s20 = smul.u32 384, %s9316_s16 }
  0x7c   : > { %5589 = vmatpush1.bf16.msra.mxu0 %v8115_v19  ;;  %5426 = vmatprep.subr.bf16.mxu1 %v8116_v20  ;;  %v9483_v53 = vpack.c.bf16 %v224_v50, %v224_v50  ;;  %v8163_v55 = vld [vmem:[#allocation5 + $0x720] ss:$12 sps:$4 sm:$0xff]   ;;  %v8164_v56 = vld [vmem:[#allocation5 + $0x13c] ss:$12 sps:$4 sm:$0xff]   ;;  %v8169_v59 = vld [vmem:[#allocation5 + $0x738] ss:$12 sps:$4 sm:$0xff]  }
  0x7d   : > { %5590 = vmatprep.subr.bf16.mxu0 %v8118_v21  ;;  %5448 = vmatprep.mubr.bf16.mxu1 %v9480_v48  ;;  %v8166_v57 = vld [vmem:[#allocation5 + $0x73c] ss:$12 sps:$4 sm:$0xff]   ;;  %v8176_v0 = vld [vmem:[#allocation5 + $0x16c] ss:$12 sps:$4 sm:$0xff]   ;;  %v8184_v4 = vld [vmem:[#allocation5 + $0x184] ss:$12 sps:$4 sm:$0xff]   ;;  %s9675_s16 = scalar_lea.hbm %s9722_s3, %s8016_s20 }
  0x7e   : > { %5612 = vmatprep.mubr.bf16.mxu0 %v9483_v53  ;;  %v8174_v62 = vld [vmem:[#allocation5 + $0x150] ss:$12 sps:$4 sm:$0xff]   ;;  %v8178_v1 = vld [vmem:[#allocation5 + $0x76c] ss:$12 sps:$4 sm:$0xff]   ;;  %v8180_v2 = vld [vmem:[#allocation5 + $0x168] ss:$12 sps:$4 sm:$0xff]  }
  0x7f   : > { %5427 = vmatpush1.bf16.msra.mxu1 %v8120_v22  ;;  %v8175_v63 = vld [vmem:[#allocation5 + $0x750] ss:$12 sps:$4 sm:$0xff]   ;;  %v8181_v3 = vld [vmem:[#allocation5 + $0x768] ss:$12 sps:$4 sm:$0xff]   ;;  %v215_v5 = vld [vmem:[%s9469_s29] sm:$0xff]  ;;  %s213_s21 = scalar_lea.vmem [#allocation8], %s8015_s18 }
  0x80   : > { %5591 = vmatpush1.bf16.msra.mxu0 %v8121_v23  ;;  %5428 = vmatprep.subr.bf16.mxu1 %v8122_v24  ;;  %v223_v6 = vld [vmem:[%s9469_s29 + $0x40] sm:$0xff]  ;;  %v9489_v10 = vpack.c.bf16 %v215_v5, %v215_v5  ;;  %v8190_v12 = vld [vmem:[#allocation5 + $0x19c] ss:$12 sps:$4 sm:$0xff]   ;;  %v8202_v20 = vld [vmem:[#allocation5 + $0x1cc] ss:$12 sps:$4 sm:$0xff]   ;;  %s6730_s26 = sshll.u32 %s213_s21, 4  ;;  %s9677_s26 = int_to_ptr.vmem [resolvable:$true] %s6730_s26 }
  0x81   : > { %5592 = vmatprep.subr.bf16.mxu0 %v8124_v25  ;;  %v8187_v7 = vld [vmem:[#allocation5 + $0x784] ss:$12 sps:$4 sm:$0xff]   ;;  %v8182_v8 = vld [vmem:[#allocation5 + $0x180] ss:$12 sps:$4 sm:$0xff]   ;;  %v9491_v11 = vpack.c.bf16 %v223_v6, %v223_v6  ;;  %v8193_v13 = vld [vmem:[#allocation5 + $0x79c] ss:$12 sps:$4 sm:$0xff]  }
  0x82   : > { %v8185_v9 = vld [vmem:[#allocation5 + $0x780] ss:$12 sps:$4 sm:$0xff]   ;;  %v8188_v14 = vld [vmem:[#allocation5 + $0x198] ss:$12 sps:$4 sm:$0xff]   ;;  %v8194_v18 = vld [vmem:[#allocation5 + $0x1b0] ss:$12 sps:$4 sm:$0xff]  }
  0x83   : > { %5429 = vmatpush1.bf16.msra.mxu1 %v8126_v26  ;;  %v8191_v15 = vld [vmem:[#allocation5 + $0x798] ss:$12 sps:$4 sm:$0xff]   ;;  %v8196_v16 = vld [vmem:[#allocation5 + $0x1b4] ss:$12 sps:$4 sm:$0xff]   ;;  %v8197_v19 = vld [vmem:[#allocation5 + $0x7b0] ss:$12 sps:$4 sm:$0xff]  }
  0x84   : > { %5593 = vmatpush1.bf16.msra.mxu0 %v8127_v27  ;;  %5430 = vmatprep.subr.bf16.mxu1 %v8128_v28  ;;  %v8199_v17 = vld [vmem:[#allocation5 + $0x7b4] ss:$12 sps:$4 sm:$0xff]   ;;  %v8205_v21 = vld [vmem:[#allocation5 + $0x7cc] ss:$12 sps:$4 sm:$0xff]   ;;  %v8208_v24 = vld [vmem:[#allocation5 + $0x1e4] ss:$12 sps:$4 sm:$0xff]  }
  0x85   : > { %5594 = vmatprep.subr.bf16.mxu0 %v8130_v29  ;;  %v8200_v22 = vld [vmem:[#allocation5 + $0x1c8] ss:$12 sps:$4 sm:$0xff]   ;;  %v8211_v25 = vld [vmem:[#allocation5 + $0x7e4] ss:$12 sps:$4 sm:$0xff]   ;;  %v8206_v26 = vld [vmem:[#allocation5 + $0x1e0] ss:$12 sps:$4 sm:$0xff]  }
  0x86   : > { %v8203_v23 = vld [vmem:[#allocation5 + $0x7c8] ss:$12 sps:$4 sm:$0xff]   ;;  %v8209_v27 = vld [vmem:[#allocation5 + $0x7e0] ss:$12 sps:$4 sm:$0xff]   ;;  %v8263_v5 = vld [vmem:[#allocation5 + $0x8b8] ss:$12 sps:$4 sm:$0xff]  }
  0x87   : > { %5431 = vmatpush1.bf16.msra.mxu1 %v8132_v30  ;;  %v8214_v28 = vld [vmem:[#allocation5 + $0x1fc] ss:$12 sps:$4 sm:$0xff]   ;;  %v8212_v30 = vld [vmem:[#allocation5 + $0x1f8] ss:$12 sps:$4 sm:$0xff]   ;;  %v8230_v46 = vld [vmem:[#allocation5 + $0x240] ss:$12 sps:$4 sm:$0xff]  }
  0x88   : > { %5595 = vmatpush1.bf16.msra.mxu0 %v8133_v31  ;;  %5432 = vmatprep.subr.bf16.mxu1 %v8134_v32  ;;  %v8217_v29 = vld [vmem:[#allocation5 + $0x7fc] ss:$12 sps:$4 sm:$0xff]   ;;  %v8215_v31 = vld [vmem:[#allocation5 + $0x7f8] ss:$12 sps:$4 sm:$0xff]   ;;  %v8220_v32 = vld [vmem:[#allocation5 + $0x214] ss:$12 sps:$4 sm:$0xff]  }
  0x89   : > { %5596 = vmatprep.subr.bf16.mxu0 %v8136_v33  ;;  %v8223_v33 = vld [vmem:[#allocation5 + $0x814] ss:$12 sps:$4 sm:$0xff]   ;;  %v8241_v50 = vld [vmem:[#allocation5 + $0x85c] ss:$12 sps:$4 sm:$0xff]   ;;  %s6716_s30 = scalar_lea.sflag [#allocation4], %s9465_s17  ;;  %s9197_s4 = scalar_lea.vmem %s9677_s26, 384 }
  0x8a   : > { %v8268_v6 = vld [vmem:[#allocation5 + $0x2d4] ss:$12 sps:$4 sm:$0xff]   ;;  %p9198_p11 = scmp.ne.s32.totalorder %s9677_s26, %s9197_s4  ;;  %p9736_p0 = scmp.ne.s32.totalorder %s9731_s7, 0 }
  0x8b   : > { %5433 = vmatpush1.bf16.msra.mxu1 %v8138_v34  ;;  %v218_v34 = vld [vmem:[%s9469_s29 + $0x18] sm:$0xff]  ;;  %s9274_s23 = smov [#allocation8]  }
  0x8c   : > { %5597 = vmatpush1.bf16.msra.mxu0 %v8139_v35  ;;  %5434 = vmatprep.subr.bf16.mxu1 %v8140_v36  ;;  %v8218_v35 = vld [vmem:[#allocation5 + $0x210] ss:$12 sps:$4 sm:$0xff]   ;;  %v9496_v36 = vpack.c.bf16 %v218_v34, %v218_v34  ;;  %p9199_p1 = pnand %p9198_p11, %p9736_p0  ;;  %s9201_s6 = sshll.u32 %s9274_s23, 4  ;;  %s9202_s6 = int_to_ptr.vmem [resolvable:$false] %s9201_s6 }
  0x8d   : > { %5598 = vmatprep.subr.bf16.mxu0 %v8142_v37  ;;  %v8221_v37 = vld [vmem:[#allocation5 + $0x810] ss:$12 sps:$4 sm:$0xff]   ;;  %s9203_s9 = scalar_lea.vmem %s9202_s6, 768  ;;  %p9204_p7 = scmp.lt.s32.totalorder %s9677_s26, %s9202_s6 }
  0x8e   : > { %v8290_v34 = vld [vmem:[#allocation5 + $0x330] ss:$12 sps:$4 sm:$0xff]   ;;  %p9200_p3 = pneg %p9199_p1  ;;  %p9205_p9 = scmp.lt.s32.totalorder %s9203_s9, %s9197_s4 }
  0x8f   : > { %5435 = vmatpush1.bf16.msra.mxu1 %v8144_v38  ;;  %v226_v38 = vld [vmem:[%s9469_s29 + $0x58] sm:$0xff] }
  0x90   : > { %5599 = vmatpush1.bf16.msra.mxu0 %v8145_v39  ;;  %5436 = vmatprep.subr.bf16.mxu1 %v8146_v40  ;;  %v8226_v39 = vld [vmem:[#allocation5 + $0x22c] ss:$12 sps:$4 sm:$0xff]   ;;  %p9206_p12 = por %p9205_p9, %p9204_p7 }
  0x91   : > { %5600 = vmatprep.subr.bf16.mxu0 %v8148_v41  ;;  %v8229_v40 = vld [vmem:[#allocation5 + $0x82c] ss:$12 sps:$4 sm:$0xff]   ;;  %v9499_v41 = vpack.c.bf16 %v226_v38, %v226_v38 }
  0x92   : > { %v8301_v38 = vld [vmem:[#allocation5 + $0x94c] ss:$12 sps:$4 sm:$0xff]   ;;  %p9207_p2 = pnand %p9206_p12, %p9200_p3 }
  0x93   : > { %5437 = vmatpush1.bf16.msra.mxu1 %v8150_v42  ;;  %v8224_v42 = vld [vmem:[#allocation5 + $0x228] ss:$12 sps:$4 sm:$0xff]  }
  0x94   : > { %5601 = vmatpush1.bf16.msra.mxu0 %v8151_v43  ;;  %5438 = vmatprep.subr.bf16.mxu1 %v8152_v44  ;;  %v8227_v43 = vld [vmem:[#allocation5 + $0x828] ss:$12 sps:$4 sm:$0xff]   ;;  %v8232_v44 = vld [vmem:[#allocation5 + $0x244] ss:$12 sps:$4 sm:$0xff]  }
  0x95   : > { %5602 = vmatprep.subr.bf16.mxu0 %v8154_v45  ;;  %v8235_v45 = vld [vmem:[#allocation5 + $0x844] ss:$12 sps:$4 sm:$0xff]  }
  0x97   : > { %5439 = vmatpush1.bf16.msra.mxu1 %v8156_v47  ;;  %v8233_v47 = vld [vmem:[#allocation5 + $0x840] ss:$12 sps:$4 sm:$0xff]  }
  0x98   : > { %5603 = vmatpush1.bf16.msra.mxu0 %v8157_v49  ;;  %5440 = vmatprep.subr.bf16.mxu1 %v8158_v51  ;;  %v8238_v49 = vld [vmem:[#allocation5 + $0x25c] ss:$12 sps:$4 sm:$0xff]   ;;  %v8236_v51 = vld [vmem:[#allocation5 + $0x258] ss:$12 sps:$4 sm:$0xff]  }
  0x99   : > { %5604 = vmatprep.subr.bf16.mxu0 %v8160_v52  ;;  %v8239_v52 = vld [vmem:[#allocation5 + $0x858] ss:$12 sps:$4 sm:$0xff]  }
  0x9b   : > { %5441 = vmatpush1.bf16.msra.mxu1 %v8162_v54  ;;  %v8244_v54 = vld [vmem:[#allocation5 + $0x274] ss:$12 sps:$4 sm:$0xff]  }
  0x9c   : > { %5605 = vmatpush1.bf16.msra.mxu0 %v8163_v55  ;;  %5442 = vmatprep.subr.bf16.mxu1 %v8164_v56  ;;  %v8247_v55 = vld [vmem:[#allocation5 + $0x874] ss:$12 sps:$4 sm:$0xff]   ;;  %v8242_v56 = vld [vmem:[#allocation5 + $0x270] ss:$12 sps:$4 sm:$0xff]  }
  0x9d   : > { %5606 = vmatprep.subr.bf16.mxu0 %v8166_v57  ;;  %v8245_v57 = vld [vmem:[#allocation5 + $0x870] ss:$12 sps:$4 sm:$0xff]  }
  0x9f   : > { %5443 = vmatpush1.bf16.msra.mxu1 %v8168_v58  ;;  %v8250_v58 = vld [vmem:[#allocation5 + $0x28c] ss:$12 sps:$4 sm:$0xff]  }
  0xa0   : > { %5607 = vmatpush1.bf16.msra.mxu0 %v8169_v59  ;;  %5444 = vmatprep.subr.bf16.mxu1 %v8170_v60  ;;  %v8253_v59 = vld [vmem:[#allocation5 + $0x88c] ss:$12 sps:$4 sm:$0xff]   ;;  %v8248_v60 = vld [vmem:[#allocation5 + $0x288] ss:$12 sps:$4 sm:$0xff]  }
  0xa1   : > { %5608 = vmatprep.subr.bf16.mxu0 %v8172_v61  ;;  %v8251_v61 = vld [vmem:[#allocation5 + $0x888] ss:$12 sps:$4 sm:$0xff]  }
  0xa3   : > { %5445 = vmatpush1.bf16.msra.mxu1 %v8174_v62  ;;  %v8256_v62 = vld [vmem:[#allocation5 + $0x2a4] ss:$12 sps:$4 sm:$0xff]  }
  0xa4   : > { %5609 = vmatpush1.bf16.msra.mxu0 %v8175_v63  ;;  %5446 = vmatprep.subr.bf16.mxu1 %v8176_v0  ;;  %v8259_v63 = vld [vmem:[#allocation5 + $0x8a4] ss:$12 sps:$4 sm:$0xff]   ;;  %v8254_v0 = vld [vmem:[#allocation5 + $0x2a0] ss:$12 sps:$4 sm:$0xff]  }
  0xa5   : > { %5610 = vmatprep.subr.bf16.mxu0 %v8178_v1  ;;  %v8257_v1 = vld [vmem:[#allocation5 + $0x8a0] ss:$12 sps:$4 sm:$0xff]  }
  0xa7   : > { %5447 = vmatpush1.bf16.msra.mxu1 %v8180_v2  ;;  %v8262_v2 = vld [vmem:[#allocation5 + $0x2bc] ss:$12 sps:$4 sm:$0xff]  }
  0xa8   : > { %5611 = vmatpush1.bf16.msra.mxu0 %v8181_v3  ;;  %5457 = vmatprep.subr.bf16.mxu1 %v8184_v4  ;;  %v8265_v3 = vld [vmem:[#allocation5 + $0x8bc] ss:$12 sps:$4 sm:$0xff]   ;;  %v8260_v4 = vld [vmem:[#allocation5 + $0x2b8] ss:$12 sps:$4 sm:$0xff]  }
  0xa9   : > { %5621 = vmatprep.subr.bf16.mxu0 %v8187_v7  ;;  %v8271_v7 = vld [vmem:[#allocation5 + $0x8d4] ss:$12 sps:$4 sm:$0xff]  }
  0xaa   : > { %5449 = vmatmul.mubr.bf16.vlgmr.msra.gmra.mrb[0].mxu1 %v9489_v10 }
  0xab   : > { %5613 = vmatmul.mubr.bf16.vlgmr.msra.gmra.mrb[0].mxu0 %v9491_v11  ;;  %5458 = vmatpush1.bf16.msra.mxu1 %v8182_v8  ;;  %v8266_v8 = vld [vmem:[#allocation5 + $0x2d0] ss:$12 sps:$4 sm:$0xff]  }
  0xac   : > { %5622 = vmatpush1.bf16.msra.mxu0 %v8185_v9  ;;  %5459 = vmatprep.subr.bf16.mxu1 %v8190_v12  ;;  %v8269_v9 = vld [vmem:[#allocation5 + $0x8d0] ss:$12 sps:$4 sm:$0xff]   ;;  %v8274_v12 = vld [vmem:[#allocation5 + $0x2ec] ss:$12 sps:$4 sm:$0xff]  }
  0xad   : > { %5623 = vmatprep.subr.bf16.mxu0 %v8193_v13  ;;  %5489 = vmatprep.mubr.bf16.mxu1 %v9496_v36  ;;  %v8277_v13 = vld [vmem:[#allocation5 + $0x8ec] ss:$12 sps:$4 sm:$0xff]  }
  0xae   : > { %5653 = vmatprep.mubr.bf16.mxu0 %v9499_v41 }
  0xaf   : > { %5460 = vmatpush1.bf16.msra.mxu1 %v8188_v14  ;;  %v8272_v14 = vld [vmem:[#allocation5 + $0x2e8] ss:$12 sps:$4 sm:$0xff]  }
  0xb0   : > { %5624 = vmatpush1.bf16.msra.mxu0 %v8191_v15  ;;  %5461 = vmatprep.subr.bf16.mxu1 %v8196_v16  ;;  %v8275_v15 = vld [vmem:[#allocation5 + $0x8e8] ss:$12 sps:$4 sm:$0xff]   ;;  %v8280_v16 = vld [vmem:[#allocation5 + $0x304] ss:$12 sps:$4 sm:$0xff]  }
  0xb1   : > { %5625 = vmatprep.subr.bf16.mxu0 %v8199_v17  ;;  %v217_v17 = vld [vmem:[%s9469_s29 + $0x10] sm:$0xff] }
  0xb3   : > { %5462 = vmatpush1.bf16.msra.mxu1 %v8194_v18  ;;  %v225_v18 = vld [vmem:[%s9469_s29 + $0x50] sm:$0xff] }
  0xb4   : > { %5626 = vmatpush1.bf16.msra.mxu0 %v8197_v19  ;;  %5463 = vmatprep.subr.bf16.mxu1 %v8202_v20  ;;  %v8283_v19 = vld [vmem:[#allocation5 + $0x904] ss:$12 sps:$4 sm:$0xff]   ;;  %v8278_v20 = vld [vmem:[#allocation5 + $0x300] ss:$12 sps:$4 sm:$0xff]  }
  0xb5   : > { %5627 = vmatprep.subr.bf16.mxu0 %v8205_v21  ;;  %v8281_v21 = vld [vmem:[#allocation5 + $0x900] ss:$12 sps:$4 sm:$0xff]  }
  0xb7   : > { %5464 = vmatpush1.bf16.msra.mxu1 %v8200_v22  ;;  %v9505_v22 = vpack.c.bf16 %v217_v17, %v217_v17  ;;  %v8353_v17 = vld [vmem:[#allocation5 + $0xa20] ss:$12 sps:$4 sm:$0xff]  }
  0xb8   : > { %5628 = vmatpush1.bf16.msra.mxu0 %v8203_v23  ;;  %5465 = vmatprep.subr.bf16.mxu1 %v8208_v24  ;;  %v9507_v23 = vpack.c.bf16 %v225_v18, %v225_v18  ;;  %v8286_v24 = vld [vmem:[#allocation5 + $0x31c] ss:$12 sps:$4 sm:$0xff]  }
  0xb9   : > { %5629 = vmatprep.subr.bf16.mxu0 %v8211_v25  ;;  %v8289_v25 = vld [vmem:[#allocation5 + $0x91c] ss:$12 sps:$4 sm:$0xff]  }
  0xba   : > { %v8358_v18 = vld [vmem:[#allocation5 + $0x43c] ss:$12 sps:$4 sm:$0xff]  }
  0xbb   : > { %5466 = vmatpush1.bf16.msra.mxu1 %v8206_v26  ;;  %v220_v26 = vld [vmem:[%s9469_s29 + $0x28] sm:$0xff] }
  0xbc   : > { %5630 = vmatpush1.bf16.msra.mxu0 %v8209_v27  ;;  %5467 = vmatprep.subr.bf16.mxu1 %v8214_v28  ;;  %v8284_v27 = vld [vmem:[#allocation5 + $0x318] ss:$12 sps:$4 sm:$0xff]   ;;  %v9512_v28 = vpack.c.bf16 %v220_v26, %v220_v26  ;;  %v8362_v26 = vld [vmem:[#allocation5 + $0x450] ss:$12 sps:$4 sm:$0xff]  }
  0xbd   : > { %5631 = vmatprep.subr.bf16.mxu0 %v8217_v29  ;;  %v8287_v29 = vld [vmem:[#allocation5 + $0x918] ss:$12 sps:$4 sm:$0xff]  }
  0xbf   : > { %5468 = vmatpush1.bf16.msra.mxu1 %v8212_v30  ;;  %v228_v30 = vld [vmem:[%s9469_s29 + $0x68] sm:$0xff] }
  0xc0   : > { %5632 = vmatpush1.bf16.msra.mxu0 %v8215_v31  ;;  %5469 = vmatprep.subr.bf16.mxu1 %v8220_v32  ;;  %v8292_v31 = vld [vmem:[#allocation5 + $0x334] ss:$12 sps:$4 sm:$0xff]  }
  0xc1   : > { %5633 = vmatprep.subr.bf16.mxu0 %v8223_v33  ;;  %v8295_v32 = vld [vmem:[#allocation5 + $0x934] ss:$12 sps:$4 sm:$0xff]   ;;  %v9515_v33 = vpack.c.bf16 %v228_v30, %v228_v30  ;;  %v8373_v30 = vld [vmem:[#allocation5 + $0xa6c] ss:$12 sps:$4 sm:$0xff]  }
  0xc3   : > { %5470 = vmatpush1.bf16.msra.mxu1 %v8218_v35  ;;  %v8293_v35 = vld [vmem:[#allocation5 + $0x930] ss:$12 sps:$4 sm:$0xff]  }
  0xc4   : > { %5634 = vmatpush1.bf16.msra.mxu0 %v8221_v37  ;;  %5471 = vmatprep.subr.bf16.mxu1 %v8226_v39  ;;  %v8298_v37 = vld [vmem:[#allocation5 + $0x34c] ss:$12 sps:$4 sm:$0xff]   ;;  %v8296_v39 = vld [vmem:[#allocation5 + $0x348] ss:$12 sps:$4 sm:$0xff]  }
  0xc5   : > { %5635 = vmatprep.subr.bf16.mxu0 %v8229_v40  ;;  %v8299_v40 = vld [vmem:[#allocation5 + $0x948] ss:$12 sps:$4 sm:$0xff]  }
  0xc7   : > { %5472 = vmatpush1.bf16.msra.mxu1 %v8224_v42  ;;  %v8304_v42 = vld [vmem:[#allocation5 + $0x364] ss:$12 sps:$4 sm:$0xff]  }
  0xc8   : > { %5636 = vmatpush1.bf16.msra.mxu0 %v8227_v43  ;;  %5473 = vmatprep.subr.bf16.mxu1 %v8232_v44  ;;  %v8307_v43 = vld [vmem:[#allocation5 + $0x964] ss:$12 sps:$4 sm:$0xff]   ;;  %v8302_v44 = vld [vmem:[#allocation5 + $0x360] ss:$12 sps:$4 sm:$0xff]  }
  0xc9   : > { %5637 = vmatprep.subr.bf16.mxu0 %v8235_v45  ;;  %v8305_v45 = vld [vmem:[#allocation5 + $0x960] ss:$12 sps:$4 sm:$0xff]  }
  0xcb   : > { %5474 = vmatpush1.bf16.msra.mxu1 %v8230_v46  ;;  %v8310_v46 = vld [vmem:[#allocation5 + $0x37c] ss:$12 sps:$4 sm:$0xff]  }
  0xcc   : > { %5638 = vmatpush1.bf16.msra.mxu0 %v8233_v47  ;;  %5475 = vmatprep.subr.bf16.mxu1 %v8238_v49  ;;  %v8313_v47 = vld [vmem:[#allocation5 + $0x97c] ss:$12 sps:$4 sm:$0xff]   ;;  %v8308_v49 = vld [vmem:[#allocation5 + $0x378] ss:$12 sps:$4 sm:$0xff]  }
  0xcd   : > { %5639 = vmatprep.subr.bf16.mxu0 %v8241_v50  ;;  %v8311_v50 = vld [vmem:[#allocation5 + $0x978] ss:$12 sps:$4 sm:$0xff]  }
  0xcf   : > { %5476 = vmatpush1.bf16.msra.mxu1 %v8236_v51  ;;  %v8316_v51 = vld [vmem:[#allocation5 + $0x394] ss:$12 sps:$4 sm:$0xff]  }
  0xd0   : > { %5640 = vmatpush1.bf16.msra.mxu0 %v8239_v52  ;;  %5477 = vmatprep.subr.bf16.mxu1 %v8244_v54  ;;  %v8319_v52 = vld [vmem:[#allocation5 + $0x994] ss:$12 sps:$4 sm:$0xff]   ;;  %v8314_v54 = vld [vmem:[#allocation5 + $0x390] ss:$12 sps:$4 sm:$0xff]  }
  0xd1   : > { %5641 = vmatprep.subr.bf16.mxu0 %v8247_v55  ;;  %v8317_v55 = vld [vmem:[#allocation5 + $0x990] ss:$12 sps:$4 sm:$0xff]  }
  0xd3   : > { %5478 = vmatpush1.bf16.msra.mxu1 %v8242_v56  ;;  %v8322_v56 = vld [vmem:[#allocation5 + $0x3ac] ss:$12 sps:$4 sm:$0xff]  }
  0xd4   : > { %5642 = vmatpush1.bf16.msra.mxu0 %v8245_v57  ;;  %5479 = vmatprep.subr.bf16.mxu1 %v8250_v58  ;;  %v8325_v57 = vld [vmem:[#allocation5 + $0x9ac] ss:$12 sps:$4 sm:$0xff]   ;;  %v8320_v58 = vld [vmem:[#allocation5 + $0x3a8] ss:$12 sps:$4 sm:$0xff]  }
  0xd5   : > { %5643 = vmatprep.subr.bf16.mxu0 %v8253_v59  ;;  %v8323_v59 = vld [vmem:[#allocation5 + $0x9a8] ss:$12 sps:$4 sm:$0xff]  }
  0xd7   : > { %5480 = vmatpush1.bf16.msra.mxu1 %v8248_v60  ;;  %v8328_v60 = vld [vmem:[#allocation5 + $0x3c4] ss:$12 sps:$4 sm:$0xff]  }
  0xd8   : > { %5644 = vmatpush1.bf16.msra.mxu0 %v8251_v61  ;;  %5481 = vmatprep.subr.bf16.mxu1 %v8256_v62  ;;  %v8331_v61 = vld [vmem:[#allocation5 + $0x9c4] ss:$12 sps:$4 sm:$0xff]   ;;  %v8326_v62 = vld [vmem:[#allocation5 + $0x3c0] ss:$12 sps:$4 sm:$0xff]  }
  0xd9   : > { %5645 = vmatprep.subr.bf16.mxu0 %v8259_v63  ;;  %v8329_v63 = vld [vmem:[#allocation5 + $0x9c0] ss:$12 sps:$4 sm:$0xff]  }
  0xdb   : > { %5482 = vmatpush1.bf16.msra.mxu1 %v8254_v0  ;;  %v8334_v0 = vld [vmem:[#allocation5 + $0x3dc] ss:$12 sps:$4 sm:$0xff]  }
  0xdc   : > { %5646 = vmatpush1.bf16.msra.mxu0 %v8257_v1  ;;  %5483 = vmatprep.subr.bf16.mxu1 %v8262_v2  ;;  %v8337_v1 = vld [vmem:[#allocation5 + $0x9dc] ss:$12 sps:$4 sm:$0xff]   ;;  %v8332_v2 = vld [vmem:[#allocation5 + $0x3d8] ss:$12 sps:$4 sm:$0xff]  }
  0xdd   : > { %5647 = vmatprep.subr.bf16.mxu0 %v8265_v3  ;;  %v8335_v3 = vld [vmem:[#allocation5 + $0x9d8] ss:$12 sps:$4 sm:$0xff]  }
  0xdf   : > { %5484 = vmatpush1.bf16.msra.mxu1 %v8260_v4  ;;  %v8340_v4 = vld [vmem:[#allocation5 + $0x3f4] ss:$12 sps:$4 sm:$0xff]  }
  0xe0   : > { %5648 = vmatpush1.bf16.msra.mxu0 %v8263_v5  ;;  %5485 = vmatprep.subr.bf16.mxu1 %v8268_v6  ;;  %v8343_v5 = vld [vmem:[#allocation5 + $0x9f4] ss:$12 sps:$4 sm:$0xff]   ;;  %v8338_v6 = vld [vmem:[#allocation5 + $0x3f0] ss:$12 sps:$4 sm:$0xff]  }
  0xe1   : > { %5649 = vmatprep.subr.bf16.mxu0 %v8271_v7  ;;  %v8341_v7 = vld [vmem:[#allocation5 + $0x9f0] ss:$12 sps:$4 sm:$0xff]  }
  0xe3   : > { %5486 = vmatpush1.bf16.msra.mxu1 %v8266_v8  ;;  %v8346_v8 = vld [vmem:[#allocation5 + $0x40c] ss:$12 sps:$4 sm:$0xff]  }
  0xe4   : > { %5650 = vmatpush1.bf16.msra.mxu0 %v8269_v9  ;;  %5487 = vmatprep.subr.bf16.mxu1 %v8274_v12  ;;  %v8349_v9 = vld [vmem:[#allocation5 + $0xa0c] ss:$12 sps:$4 sm:$0xff]   ;;  %v8344_v12 = vld [vmem:[#allocation5 + $0x408] ss:$12 sps:$4 sm:$0xff]  }
  0xe5   : > { %5651 = vmatprep.subr.bf16.mxu0 %v8277_v13  ;;  %v8347_v13 = vld [vmem:[#allocation5 + $0xa08] ss:$12 sps:$4 sm:$0xff]  }
  0xe7   : > { %5488 = vmatpush1.bf16.msra.mxu1 %v8272_v14  ;;  %v8352_v14 = vld [vmem:[#allocation5 + $0x424] ss:$12 sps:$4 sm:$0xff]  }
  0xe8   : > { %5652 = vmatpush1.bf16.msra.mxu0 %v8275_v15  ;;  %5498 = vmatprep.subr.bf16.mxu1 %v8280_v16  ;;  %v8355_v15 = vld [vmem:[#allocation5 + $0xa24] ss:$12 sps:$4 sm:$0xff]   ;;  %v8350_v16 = vld [vmem:[#allocation5 + $0x420] ss:$12 sps:$4 sm:$0xff]  }
  0xe9   : > { %5662 = vmatprep.subr.bf16.mxu0 %v8283_v19  ;;  %v8361_v19 = vld [vmem:[#allocation5 + $0xa3c] ss:$12 sps:$4 sm:$0xff]  }
  0xea   : > { %5490 = vmatmul.mubr.bf16.vlgmr.msra.gmra.mrb[0].mxu1 %v9505_v22 }
  0xeb   : > { %5654 = vmatmul.mubr.bf16.vlgmr.msra.gmra.mrb[0].mxu0 %v9507_v23  ;;  %5499 = vmatpush1.bf16.msra.mxu1 %v8278_v20  ;;  %v8356_v20 = vld [vmem:[#allocation5 + $0x438] ss:$12 sps:$4 sm:$0xff]  }
  0xec   : > { %5663 = vmatpush1.bf16.msra.mxu0 %v8281_v21  ;;  %5500 = vmatprep.subr.bf16.mxu1 %v8286_v24  ;;  %v8359_v21 = vld [vmem:[#allocation5 + $0xa38] ss:$12 sps:$4 sm:$0xff]   ;;  %v8364_v24 = vld [vmem:[#allocation5 + $0x454] ss:$12 sps:$4 sm:$0xff]  }
  0xed   : > { %5664 = vmatprep.subr.bf16.mxu0 %v8289_v25  ;;  %5530 = vmatprep.mubr.bf16.mxu1 %v9512_v28  ;;  %v8367_v25 = vld [vmem:[#allocation5 + $0xa54] ss:$12 sps:$4 sm:$0xff]  }
  0xee   : > { %5694 = vmatprep.mubr.bf16.mxu0 %v9515_v33 }
  0xef   : > { %5501 = vmatpush1.bf16.msra.mxu1 %v8284_v27  ;;  %v8365_v27 = vld [vmem:[#allocation5 + $0xa50] ss:$12 sps:$4 sm:$0xff]  }
  0xf0   : > { %5665 = vmatpush1.bf16.msra.mxu0 %v8287_v29  ;;  %5502 = vmatprep.subr.bf16.mxu1 %v8292_v31  ;;  %v8370_v29 = vld [vmem:[#allocation5 + $0x46c] ss:$12 sps:$4 sm:$0xff]   ;;  %v8368_v31 = vld [vmem:[#allocation5 + $0x468] ss:$12 sps:$4 sm:$0xff]  }
  0xf1   : > { %5666 = vmatprep.subr.bf16.mxu0 %v8295_v32  ;;  %v8371_v32 = vld [vmem:[#allocation5 + $0xa68] ss:$12 sps:$4 sm:$0xff]  }
  0xf3   : > { %5503 = vmatpush1.bf16.msra.mxu1 %v8290_v34  ;;  %v8376_v34 = vld [vmem:[#allocation5 + $0x484] ss:$12 sps:$4 sm:$0xff]  }
  0xf4   : > { %5667 = vmatpush1.bf16.msra.mxu0 %v8293_v35  ;;  %5504 = vmatprep.subr.bf16.mxu1 %v8298_v37  ;;  %v219_v35 = vld [vmem:[%s9469_s29 + $0x20] sm:$0xff] }
  0xf5   : > { %5668 = vmatprep.subr.bf16.mxu0 %v8301_v38  ;;  %v227_v37 = vld [vmem:[%s9469_s29 + $0x60] sm:$0xff] }
  0xf6   : > { %v8379_v38 = vld [vmem:[#allocation5 + $0xa84] ss:$12 sps:$4 sm:$0xff]  }
  0xf7   : > { %5505 = vmatpush1.bf16.msra.mxu1 %v8296_v39  ;;  %v8374_v39 = vld [vmem:[#allocation5 + $0x480] ss:$12 sps:$4 sm:$0xff]  }
  0xf8   : > { %5669 = vmatpush1.bf16.msra.mxu0 %v8299_v40  ;;  %5506 = vmatprep.subr.bf16.mxu1 %v8304_v42  ;;  %v222_v40 = vld [vmem:[%s9469_s29 + $0x38] sm:$0xff]  ;;  %v9522_v42 = vpack.c.bf16 %v219_v35, %v219_v35  ;;  %v8443_v35 = vld [vmem:[#allocation5 + $0xb88] ss:$12 sps:$4 sm:$0xff]  }
  0xf9   : > { %5670 = vmatprep.subr.bf16.mxu0 %v8307_v43  ;;  %v9524_v43 = vpack.c.bf16 %v227_v37, %v227_v37  ;;  %v8448_v37 = vld [vmem:[#allocation5 + $0x5a4] ss:$12 sps:$4 sm:$0xff]  }
  0xfb   : > { %5507 = vmatpush1.bf16.msra.mxu1 %v8302_v44  ;;  %v230_v44 = vld [vmem:[%s9469_s29 + $0x78] sm:$0xff] }
  0xfc   : > { %5671 = vmatpush1.bf16.msra.mxu0 %v8305_v45  ;;  %5508 = vmatprep.subr.bf16.mxu1 %v8310_v46  ;;  %v8377_v45 = vld [vmem:[#allocation5 + $0xa80] ss:$12 sps:$4 sm:$0xff]   ;;  %v8382_v46 = vld [vmem:[#allocation5 + $0x49c] ss:$12 sps:$4 sm:$0xff]  }
  0xfd   : > { %5672 = vmatprep.subr.bf16.mxu0 %v8313_v47  ;;  %v8385_v47 = vld [vmem:[#allocation5 + $0xa9c] ss:$12 sps:$4 sm:$0xff]  }
  0xff   : > { %5509 = vmatpush1.bf16.msra.mxu1 %v8308_v49  ;;  %v8380_v49 = vld [vmem:[#allocation5 + $0x498] ss:$12 sps:$4 sm:$0xff]  }
 0x100   : > { %5673 = vmatpush1.bf16.msra.mxu0 %v8311_v50  ;;  %5510 = vmatprep.subr.bf16.mxu1 %v8316_v51  ;;  %v9527_v50 = vpack.c.bf16 %v222_v40, %v222_v40  ;;  %v9529_v51 = vpack.c.bf16 %v230_v44, %v230_v44  ;;  %v8449_v40 = vld [vmem:[#allocation5 + $0xba0] ss:$12 sps:$4 sm:$0xff]   ;;  %v8454_v44 = vld [vmem:[#allocation5 + $0x5bc] ss:$12 sps:$4 sm:$0xff]  }
 0x101   : > { %5674 = vmatprep.subr.bf16.mxu0 %v8319_v52  ;;  %v8383_v52 = vld [vmem:[#allocation5 + $0xa98] ss:$12 sps:$4 sm:$0xff]  }
 0x103   : > { %5511 = vmatpush1.bf16.msra.mxu1 %v8314_v54  ;;  %v8388_v54 = vld [vmem:[#allocation5 + $0x4b4] ss:$12 sps:$4 sm:$0xff]  }
 0x104   : > { %5675 = vmatpush1.bf16.msra.mxu0 %v8317_v55  ;;  %5512 = vmatprep.subr.bf16.mxu1 %v8322_v56  ;;  %v8391_v55 = vld [vmem:[#allocation5 + $0xab4] ss:$12 sps:$4 sm:$0xff]   ;;  %v8386_v56 = vld [vmem:[#allocation5 + $0x4b0] ss:$12 sps:$4 sm:$0xff]  }
 0x105   : > { %5676 = vmatprep.subr.bf16.mxu0 %v8325_v57  ;;  %v8389_v57 = vld [vmem:[#allocation5 + $0xab0] ss:$12 sps:$4 sm:$0xff]  }
 0x107   : > { %5513 = vmatpush1.bf16.msra.mxu1 %v8320_v58  ;;  %v8394_v58 = vld [vmem:[#allocation5 + $0x4cc] ss:$12 sps:$4 sm:$0xff]  }
 0x108   : > { %5677 = vmatpush1.bf16.msra.mxu0 %v8323_v59  ;;  %5514 = vmatprep.subr.bf16.mxu1 %v8328_v60  ;;  %v8397_v59 = vld [vmem:[#allocation5 + $0xacc] ss:$12 sps:$4 sm:$0xff]   ;;  %v8392_v60 = vld [vmem:[#allocation5 + $0x4c8] ss:$12 sps:$4 sm:$0xff]  }
 0x109   : > { %5678 = vmatprep.subr.bf16.mxu0 %v8331_v61  ;;  %v8395_v61 = vld [vmem:[#allocation5 + $0xac8] ss:$12 sps:$4 sm:$0xff]  }
 0x10b   : > { %5515 = vmatpush1.bf16.msra.mxu1 %v8326_v62  ;;  %v8400_v62 = vld [vmem:[#allocation5 + $0x4e4] ss:$12 sps:$4 sm:$0xff]  }
 0x10c   : > { %5679 = vmatpush1.bf16.msra.mxu0 %v8329_v63  ;;  %5516 = vmatprep.subr.bf16.mxu1 %v8334_v0  ;;  %v8403_v63 = vld [vmem:[#allocation5 + $0xae4] ss:$12 sps:$4 sm:$0xff]   ;;  %v8398_v0 = vld [vmem:[#allocation5 + $0x4e0] ss:$12 sps:$4 sm:$0xff]  }
 0x10d   : > { %5680 = vmatprep.subr.bf16.mxu0 %v8337_v1  ;;  %v8401_v1 = vld [vmem:[#allocation5 + $0xae0] ss:$12 sps:$4 sm:$0xff]  }
 0x10f   : > { %5517 = vmatpush1.bf16.msra.mxu1 %v8332_v2  ;;  %v8406_v2 = vld [vmem:[#allocation5 + $0x4fc] ss:$12 sps:$4 sm:$0xff]  }
 0x110   : > { %5681 = vmatpush1.bf16.msra.mxu0 %v8335_v3  ;;  %5518 = vmatprep.subr.bf16.mxu1 %v8340_v4  ;;  %v8409_v3 = vld [vmem:[#allocation5 + $0xafc] ss:$12 sps:$4 sm:$0xff]   ;;  %v8404_v4 = vld [vmem:[#allocation5 + $0x4f8] ss:$12 sps:$4 sm:$0xff]  }
 0x111   : > { %5682 = vmatprep.subr.bf16.mxu0 %v8343_v5  ;;  %v8407_v5 = vld [vmem:[#allocation5 + $0xaf8] ss:$12 sps:$4 sm:$0xff]  }
 0x113   : > { %5519 = vmatpush1.bf16.msra.mxu1 %v8338_v6  ;;  %v8412_v6 = vld [vmem:[#allocation5 + $0x514] ss:$12 sps:$4 sm:$0xff]  }
 0x114   : > { %5683 = vmatpush1.bf16.msra.mxu0 %v8341_v7  ;;  %5520 = vmatprep.subr.bf16.mxu1 %v8346_v8  ;;  %v8415_v7 = vld [vmem:[#allocation5 + $0xb14] ss:$12 sps:$4 sm:$0xff]   ;;  %v8410_v8 = vld [vmem:[#allocation5 + $0x510] ss:$12 sps:$4 sm:$0xff]  }
 0x115   : > { %5684 = vmatprep.subr.bf16.mxu0 %v8349_v9  ;;  %v8413_v9 = vld [vmem:[#allocation5 + $0xb10] ss:$12 sps:$4 sm:$0xff]  }
 0x117   : > { %5521 = vmatpush1.bf16.msra.mxu1 %v8344_v12  ;;  %v8418_v12 = vld [vmem:[#allocation5 + $0x52c] ss:$12 sps:$4 sm:$0xff]  }
 0x118   : > { %5685 = vmatpush1.bf16.msra.mxu0 %v8347_v13  ;;  %5522 = vmatprep.subr.bf16.mxu1 %v8352_v14  ;;  %v8421_v13 = vld [vmem:[#allocation5 + $0xb2c] ss:$12 sps:$4 sm:$0xff]   ;;  %v8416_v14 = vld [vmem:[#allocation5 + $0x528] ss:$12 sps:$4 sm:$0xff]  }
 0x119   : > { %5686 = vmatprep.subr.bf16.mxu0 %v8355_v15  ;;  %v8419_v15 = vld [vmem:[#allocation5 + $0xb28] ss:$12 sps:$4 sm:$0xff]  }
 0x11b   : > { %5523 = vmatpush1.bf16.msra.mxu1 %v8350_v16  ;;  %v8424_v16 = vld [vmem:[#allocation5 + $0x544] ss:$12 sps:$4 sm:$0xff]  }
 0x11c   : > { %5687 = vmatpush1.bf16.msra.mxu0 %v8353_v17  ;;  %5524 = vmatprep.subr.bf16.mxu1 %v8358_v18  ;;  %v8427_v17 = vld [vmem:[#allocation5 + $0xb44] ss:$12 sps:$4 sm:$0xff]   ;;  %v8422_v18 = vld [vmem:[#allocation5 + $0x540] ss:$12 sps:$4 sm:$0xff]  }
 0x11d   : > { %5688 = vmatprep.subr.bf16.mxu0 %v8361_v19  ;;  %v8425_v19 = vld [vmem:[#allocation5 + $0xb40] ss:$12 sps:$4 sm:$0xff]  }
 0x11f   : > { %5525 = vmatpush1.bf16.msra.mxu1 %v8356_v20  ;;  %v8430_v20 = vld [vmem:[#allocation5 + $0x55c] ss:$12 sps:$4 sm:$0xff]  }
 0x120   : > { %5689 = vmatpush1.bf16.msra.mxu0 %v8359_v21  ;;  %5526 = vmatprep.subr.bf16.mxu1 %v8364_v24  ;;  %v8433_v21 = vld [vmem:[#allocation5 + $0xb5c] ss:$12 sps:$4 sm:$0xff]   ;;  %v8428_v24 = vld [vmem:[#allocation5 + $0x558] ss:$12 sps:$4 sm:$0xff]  }
 0x121   : > { %5690 = vmatprep.subr.bf16.mxu0 %v8367_v25  ;;  %v8431_v25 = vld [vmem:[#allocation5 + $0xb58] ss:$12 sps:$4 sm:$0xff]  }
 0x123   : > { %5527 = vmatpush1.bf16.msra.mxu1 %v8362_v26  ;;  %v8436_v26 = vld [vmem:[#allocation5 + $0x574] ss:$12 sps:$4 sm:$0xff]  }
 0x124   : > { %5691 = vmatpush1.bf16.msra.mxu0 %v8365_v27  ;;  %5528 = vmatprep.subr.bf16.mxu1 %v8370_v29  ;;  %v8439_v27 = vld [vmem:[#allocation5 + $0xb74] ss:$12 sps:$4 sm:$0xff]   ;;  %v8434_v29 = vld [vmem:[#allocation5 + $0x570] ss:$12 sps:$4 sm:$0xff]  }
 0x125   : > { %5692 = vmatprep.subr.bf16.mxu0 %v8373_v30  ;;  %v8437_v30 = vld [vmem:[#allocation5 + $0xb70] ss:$12 sps:$4 sm:$0xff]  }
 0x127   : > { %5529 = vmatpush1.bf16.msra.mxu1 %v8368_v31  ;;  %v8442_v31 = vld [vmem:[#allocation5 + $0x58c] ss:$12 sps:$4 sm:$0xff]  }
 0x128   : > { %5693 = vmatpush1.bf16.msra.mxu0 %v8371_v32  ;;  %5539 = vmatprep.subr.bf16.mxu1 %v8376_v34  ;;  %v8445_v32 = vld [vmem:[#allocation5 + $0xb8c] ss:$12 sps:$4 sm:$0xff]   ;;  %v8440_v34 = vld [vmem:[#allocation5 + $0x588] ss:$12 sps:$4 sm:$0xff]  }
 0x129   : > { %5703 = vmatprep.subr.bf16.mxu0 %v8379_v38  ;;  %v8451_v38 = vld [vmem:[#allocation5 + $0xba4] ss:$12 sps:$4 sm:$0xff]  }
 0x12a   : > { %5531 = vmatmul.mubr.bf16.vlgmr.msra.gmra.mrb[0].mxu1 %v9522_v42 }
 0x12b   : > { %5695 = vmatmul.mubr.bf16.vlgmr.msra.gmra.mrb[0].mxu0 %v9524_v43  ;;  %5540 = vmatpush1.bf16.msra.mxu1 %v8374_v39  ;;  %v8446_v39 = vld [vmem:[#allocation5 + $0x5a0] ss:$12 sps:$4 sm:$0xff]  }
 0x12c   : > { %5704 = vmatpush1.bf16.msra.mxu0 %v8377_v45  ;;  %5541 = vmatprep.subr.bf16.mxu1 %v8382_v46  ;;  %v8457_v45 = vld [vmem:[#allocation5 + $0xbbc] ss:$12 sps:$4 sm:$0xff]   ;;  %v8452_v46 = vld [vmem:[#allocation5 + $0x5b8] ss:$12 sps:$4 sm:$0xff]  }
 0x12d   : > { %5705 = vmatprep.subr.bf16.mxu0 %v8385_v47  ;;  %5571 = vmatprep.mubr.bf16.mxu1 %v9527_v50  ;;  %v8455_v47 = vld [vmem:[#allocation5 + $0xbb8] ss:$12 sps:$4 sm:$0xff]  }
 0x12e   : > { %5735 = vmatprep.mubr.bf16.mxu0 %v9529_v51 }
 0x12f   : > { %5542 = vmatpush1.bf16.msra.mxu1 %v8380_v49  ;;  %v8460_v49 = vld [vmem:[#allocation5 + $0x5d4] ss:$12 sps:$4 sm:$0xff]  }
 0x130   : > { %5706 = vmatpush1.bf16.msra.mxu0 %v8383_v52  ;;  %5543 = vmatprep.subr.bf16.mxu1 %v8388_v54  ;;  %v8463_v52 = vld [vmem:[#allocation5 + $0xbd4] ss:$12 sps:$4 sm:$0xff]   ;;  %v8458_v54 = vld [vmem:[#allocation5 + $0x5d0] ss:$12 sps:$4 sm:$0xff]  }
 0x131   : > { %5707 = vmatprep.subr.bf16.mxu0 %v8391_v55  ;;  %v8461_v55 = vld [vmem:[#allocation5 + $0xbd0] ss:$12 sps:$4 sm:$0xff]  }
 0x133   : > { %5544 = vmatpush1.bf16.msra.mxu1 %v8386_v56  ;;  %v8466_v56 = vld [vmem:[#allocation5 + $0x5ec] ss:$12 sps:$4 sm:$0xff]  }
 0x134   : > { %5708 = vmatpush1.bf16.msra.mxu0 %v8389_v57  ;;  %5545 = vmatprep.subr.bf16.mxu1 %v8394_v58  ;;  %v8469_v57 = vld [vmem:[#allocation5 + $0xbec] ss:$12 sps:$4 sm:$0xff]   ;;  %v8464_v58 = vld [vmem:[#allocation5 + $0x5e8] ss:$12 sps:$4 sm:$0xff]  }
 0x135   : > { %5709 = vmatprep.subr.bf16.mxu0 %v8397_v59  ;;  %v8467_v59 = vld [vmem:[#allocation5 + $0xbe8] ss:$12 sps:$4 sm:$0xff]  }
 0x137   : > { %5546 = vmatpush1.bf16.msra.mxu1 %v8392_v60  ;;  %v221_v60 = vld [vmem:[%s9469_s29 + $0x30] sm:$0xff] }
 0x138   : > { %5710 = vmatpush1.bf16.msra.mxu0 %v8395_v61  ;;  %5547 = vmatprep.subr.bf16.mxu1 %v8400_v62  ;;  %v8472_v61 = vld [vmem:[#allocation5 + $0xc04] ss:$12 sps:$4 sm:$0xff]  }
 0x139   : > { %5711 = vmatprep.subr.bf16.mxu0 %v8403_v63  ;;  %v229_v62 = vld [vmem:[%s9469_s29 + $0x70] sm:$0xff] }
 0x13a   : > { %v8473_v63 = vld [vmem:[#allocation5 + $0xc8] ss:$12 sps:$4 sm:$0xff]  }
 0x13b   : > { %5548 = vmatpush1.bf16.msra.mxu1 %v8398_v0  ;;  %v8470_v0 = vld [vmem:[#allocation5 + $0xc00] ss:$12 sps:$4 sm:$0xff]  }
 0x13c   : > { %5712 = vmatpush1.bf16.msra.mxu0 %v8401_v1  ;;  %5549 = vmatprep.subr.bf16.mxu1 %v8406_v2  ;;  %v9537_v1 = vpack.c.bf16 %v221_v60, %v221_v60  ;;  %v9539_v2 = vpack.c.bf16 %v229_v62, %v229_v62  ;;  %v8528_v60 = vld [vmem:[#allocation5 + $0x290] ss:$12 sps:$4 sm:$0xff]  }
 0x13d   : > { %5713 = vmatprep.subr.bf16.mxu0 %v8409_v3  ;;  %v232_v3 = vld [vmem:[%s9469_s29 + $0x88] sm:$0xff]  ;;  %v8532_v62 = vld [vmem:[#allocation5 + $0xd24] ss:$12 sps:$4 sm:$0xff]  }
 0x13f   : > { %5550 = vmatpush1.bf16.msra.mxu1 %v8404_v4  ;;  %v8474_v4 = vld [vmem:[#allocation5 + $0x8] ss:$12 sps:$4 sm:$0xff]  }
 0x140   : > { %5714 = vmatpush1.bf16.msra.mxu0 %v8407_v5  ;;  %5551 = vmatprep.subr.bf16.mxu1 %v8412_v6  ;;  %v8477_v5 = vld [vmem:[#allocation5 + $0xc1c] ss:$12 sps:$4 sm:$0xff]   ;;  %v8478_v6 = vld [vmem:[#allocation5 + $0xe0] ss:$12 sps:$4 sm:$0xff]  }
 0x141   : > { %5715 = vmatprep.subr.bf16.mxu0 %v8415_v7  ;;  %v8475_v7 = vld [vmem:[#allocation5 + $0xc18] ss:$12 sps:$4 sm:$0xff]  }
 0x143   : > { %5552 = vmatpush1.bf16.msra.mxu1 %v8410_v8  ;;  %v9542_v8 = vpack.c.bf16 %v232_v3, %v232_v3  ;;  %v8534_v3 = vld [vmem:[#allocation5 + $0x1e8] ss:$12 sps:$4 sm:$0xff]  }
 0x144   : > { %5716 = vmatpush1.bf16.msra.mxu0 %v8413_v9  ;;  %5553 = vmatprep.subr.bf16.mxu1 %v8418_v12  ;;  %v8479_v9 = vld [vmem:[#allocation5 + $0x20] ss:$12 sps:$4 sm:$0xff]  }
 0x145   : > { %5717 = vmatprep.subr.bf16.mxu0 %v8421_v13  ;;  %v8482_v12 = vld [vmem:[#allocation5 + $0xc34] ss:$12 sps:$4 sm:$0xff]   ;;  %v8483_v13 = vld [vmem:[#allocation5 + $0xf8] ss:$12 sps:$4 sm:$0xff]  }
 0x147   : > { %5554 = vmatpush1.bf16.msra.mxu1 %v8416_v14  ;;  %v8480_v14 = vld [vmem:[#allocation5 + $0xc30] ss:$12 sps:$4 sm:$0xff]  }
 0x148   : > { %5718 = vmatpush1.bf16.msra.mxu0 %v8419_v15  ;;  %5555 = vmatprep.subr.bf16.mxu1 %v8424_v16  ;;  %v8484_v15 = vld [vmem:[#allocation5 + $0x38] ss:$12 sps:$4 sm:$0xff]  }
 0x149   : > { %5719 = vmatprep.subr.bf16.mxu0 %v8427_v17  ;;  %v8487_v16 = vld [vmem:[#allocation5 + $0xc4c] ss:$12 sps:$4 sm:$0xff]   ;;  %v8488_v17 = vld [vmem:[#allocation5 + $0x110] ss:$12 sps:$4 sm:$0xff]  }
 0x14b   : > { %5556 = vmatpush1.bf16.msra.mxu1 %v8422_v18  ;;  %v8485_v18 = vld [vmem:[#allocation5 + $0xc48] ss:$12 sps:$4 sm:$0xff]  }
 0x14c   : > { %5720 = vmatpush1.bf16.msra.mxu0 %v8425_v19  ;;  %5557 = vmatprep.subr.bf16.mxu1 %v8430_v20  ;;  %v8489_v19 = vld [vmem:[#allocation5 + $0x50] ss:$12 sps:$4 sm:$0xff]  }
 0x14d   : > { %5721 = vmatprep.subr.bf16.mxu0 %v8433_v21  ;;  %v8492_v20 = vld [vmem:[#allocation5 + $0xc64] ss:$12 sps:$4 sm:$0xff]   ;;  %v8493_v21 = vld [vmem:[#allocation5 + $0x128] ss:$12 sps:$4 sm:$0xff]  }
 0x14f   : > { %5558 = vmatpush1.bf16.msra.mxu1 %v8428_v24  ;;  %v8490_v24 = vld [vmem:[#allocation5 + $0xc60] ss:$12 sps:$4 sm:$0xff]  }
 0x150   : > { %5722 = vmatpush1.bf16.msra.mxu0 %v8431_v25  ;;  %5559 = vmatprep.subr.bf16.mxu1 %v8436_v26  ;;  %v8497_v25 = vld [vmem:[#allocation5 + $0xc7c] ss:$12 sps:$4 sm:$0xff]   ;;  %v8498_v26 = vld [vmem:[#allocation5 + $0x140] ss:$12 sps:$4 sm:$0xff]  }
 0x151   : > { %5723 = vmatprep.subr.bf16.mxu0 %v8439_v27  ;;  %v8495_v27 = vld [vmem:[#allocation5 + $0xc78] ss:$12 sps:$4 sm:$0xff]  }
 0x153   : > { %5560 = vmatpush1.bf16.msra.mxu1 %v8434_v29  ;;  %v8499_v29 = vld [vmem:[#allocation5 + $0x80] ss:$12 sps:$4 sm:$0xff]  }
 0x154   : > { %5724 = vmatpush1.bf16.msra.mxu0 %v8437_v30  ;;  %5561 = vmatprep.subr.bf16.mxu1 %v8442_v31  ;;  %v8502_v30 = vld [vmem:[#allocation5 + $0xc94] ss:$12 sps:$4 sm:$0xff]   ;;  %v8503_v31 = vld [vmem:[#allocation5 + $0x158] ss:$12 sps:$4 sm:$0xff]  }
 0x155   : > { %5725 = vmatprep.subr.bf16.mxu0 %v8445_v32  ;;  %v8500_v32 = vld [vmem:[#allocation5 + $0xc90] ss:$12 sps:$4 sm:$0xff]  }
 0x157   : > { %5562 = vmatpush1.bf16.msra.mxu1 %v8440_v34  ;;  %v8504_v34 = vld [vmem:[#allocation5 + $0x98] ss:$12 sps:$4 sm:$0xff]  }
 0x158   : > { %5726 = vmatpush1.bf16.msra.mxu0 %v8443_v35  ;;  %5563 = vmatprep.subr.bf16.mxu1 %v8448_v37  ;;  %v8507_v35 = vld [vmem:[#allocation5 + $0xcac] ss:$12 sps:$4 sm:$0xff]   ;;  %v8508_v37 = vld [vmem:[#allocation5 + $0x170] ss:$12 sps:$4 sm:$0xff]  }
 0x159   : > { %5727 = vmatprep.subr.bf16.mxu0 %v8451_v38  ;;  %v8505_v38 = vld [vmem:[#allocation5 + $0xca8] ss:$12 sps:$4 sm:$0xff]  }
 0x15b   : > { %5564 = vmatpush1.bf16.msra.mxu1 %v8446_v39  ;;  %v8509_v39 = vld [vmem:[#allocation5 + $0xb0] ss:$12 sps:$4 sm:$0xff]  }
 0x15c   : > { %5728 = vmatpush1.bf16.msra.mxu0 %v8449_v40  ;;  %5565 = vmatprep.subr.bf16.mxu1 %v8454_v44  ;;  %v8512_v40 = vld [vmem:[#allocation5 + $0xcc4] ss:$12 sps:$4 sm:$0xff]   ;;  %v8513_v44 = vld [vmem:[#allocation5 + $0x248] ss:$12 sps:$4 sm:$0xff]  }
 0x15d   : > { %5729 = vmatprep.subr.bf16.mxu0 %v8457_v45  ;;  %v8510_v45 = vld [vmem:[#allocation5 + $0xcc0] ss:$12 sps:$4 sm:$0xff]  }
 0x15f   : > { %5566 = vmatpush1.bf16.msra.mxu1 %v8452_v46  ;;  %v8514_v46 = vld [vmem:[#allocation5 + $0x188] ss:$12 sps:$4 sm:$0xff]  }
 0x160   : > { %5730 = vmatpush1.bf16.msra.mxu0 %v8455_v47  ;;  %5567 = vmatprep.subr.bf16.mxu1 %v8460_v49  ;;  %v8517_v47 = vld [vmem:[#allocation5 + $0xcdc] ss:$12 sps:$4 sm:$0xff]   ;;  %v8518_v49 = vld [vmem:[#allocation5 + $0x260] ss:$12 sps:$4 sm:$0xff]  }
 0x161   : > { %5731 = vmatprep.subr.bf16.mxu0 %v8463_v52  ;;  %v8515_v52 = vld [vmem:[#allocation5 + $0xcd8] ss:$12 sps:$4 sm:$0xff]  }
 0x163   : > { %5568 = vmatpush1.bf16.msra.mxu1 %v8458_v54  ;;  %v8519_v54 = vld [vmem:[#allocation5 + $0x1a0] ss:$12 sps:$4 sm:$0xff]  }
 0x164   : > { %5732 = vmatpush1.bf16.msra.mxu0 %v8461_v55  ;;  %5569 = vmatprep.subr.bf16.mxu1 %v8466_v56  ;;  %v8522_v55 = vld [vmem:[#allocation5 + $0xcf4] ss:$12 sps:$4 sm:$0xff]   ;;  %v8523_v56 = vld [vmem:[#allocation5 + $0x278] ss:$12 sps:$4 sm:$0xff]  }
 0x165   : > { %5733 = vmatprep.subr.bf16.mxu0 %v8469_v57  ;;  %v8520_v57 = vld [vmem:[#allocation5 + $0xcf0] ss:$12 sps:$4 sm:$0xff]  }
 0x167   : > { %5570 = vmatpush1.bf16.msra.mxu1 %v8464_v58  ;;  %v8524_v58 = vld [vmem:[#allocation5 + $0x1b8] ss:$12 sps:$4 sm:$0xff]  }
 0x168   : > { %5734 = vmatpush1.bf16.msra.mxu0 %v8467_v59  ;;  %7603 = vmatprep.subr.bf16.mxu1 %v8473_v63  ;;  %v8527_v59 = vld [vmem:[#allocation5 + $0xd0c] ss:$12 sps:$4 sm:$0xff]   ;;  %v8533_v63 = vld [vmem:[#allocation5 + $0x2a8] ss:$12 sps:$4 sm:$0xff]  }
 0x169   : > { %5744 = vmatprep.subr.bf16.mxu0 %v8472_v61  ;;  %v8525_v61 = vld [vmem:[#allocation5 + $0xd08] ss:$12 sps:$4 sm:$0xff]  }
 0x16a   : > { %5572 = vmatmul.mubr.bf16.vlgmr.msra.gmra.mrb[0].mxu1 %v9537_v1 }
 0x16b   : > { %5736 = vmatmul.mubr.bf16.vlgmr.msra.gmra.mrb[0].mxu0 %v9539_v2  ;;  %7604 = vmatpush3.bf16.msra.mxu1 %v8474_v4  ;;  %v8538_v4 = vld [vmem:[#allocation5 + $0x2c0] ss:$12 sps:$4 sm:$0xff]  }
 0x16c   : > { %5745 = vmatpush1.bf16.msra.mxu0 %v8470_v0  ;;  %7605 = vmatprep.subr.bf16.mxu1 %v8478_v6  ;;  %v8530_v0 = vld [vmem:[#allocation5 + $0xd20] ss:$12 sps:$4 sm:$0xff]  }
 0x16d   : > { %5746 = vmatprep.subr.bf16.mxu0 %v8477_v5  ;;  %6104 = vmatprep.mubr.bf16.mxu1 %v9480_v48  ;;  %v8494_v48 = vld [vmem:[#allocation5 + $0x68] ss:$12 sps:$4 sm:$0xff]   ;;  %v8535_v5 = vld [vmem:[#allocation5 + $0xd38] ss:$12 sps:$4 sm:$0xff]   ;;  %v8539_v6 = vld [vmem:[#allocation5 + $0x200] ss:$12 sps:$4 sm:$0xff]  }
 0x16e   : > { %5776 = vmatprep.mubr.bf16.mxu0 %v9542_v8 }
 0x16f   : > { %7606 = vmatpush3.bf16.msra.mxu1 %v8479_v9  ;;  %v8543_v9 = vld [vmem:[#allocation5 + $0x2d8] ss:$12 sps:$4 sm:$0xff]  }
 0x170   : > { %5747 = vmatpush1.bf16.msra.mxu0 %v8475_v7  ;;  %7607 = vmatprep.subr.bf16.mxu1 %v8483_v13  ;;  %v8542_v7 = vld [vmem:[#allocation5 + $0xd54] ss:$12 sps:$4 sm:$0xff]   ;;  %v8544_v13 = vld [vmem:[#allocation5 + $0x218] ss:$12 sps:$4 sm:$0xff]  }
 0x171   : > { %5748 = vmatprep.subr.bf16.mxu0 %v8482_v12  ;;  %v8540_v12 = vld [vmem:[#allocation5 + $0xd50] ss:$12 sps:$4 sm:$0xff]  }
 0x173   : > { %7608 = vmatpush3.bf16.msra.mxu1 %v8484_v15  ;;  %v8548_v15 = vld [vmem:[#allocation5 + $0x2f0] ss:$12 sps:$4 sm:$0xff]  }
 0x174   : > { %5749 = vmatpush1.bf16.msra.mxu0 %v8480_v14  ;;  %7609 = vmatprep.subr.bf16.mxu1 %v8488_v17  ;;  %v8547_v14 = vld [vmem:[#allocation5 + $0xd6c] ss:$12 sps:$4 sm:$0xff]   ;;  %v8549_v17 = vld [vmem:[#allocation5 + $0x230] ss:$12 sps:$4 sm:$0xff]  }
 0x175   : > { %5750 = vmatprep.subr.bf16.mxu0 %v8487_v16  ;;  %v8545_v16 = vld [vmem:[#allocation5 + $0xd68] ss:$12 sps:$4 sm:$0xff]  }
 0x177   : > { %7610 = vmatpush3.bf16.msra.mxu1 %v8489_v19  ;;  %v231_v19 = vld [vmem:[%s9469_s29 + $0x80] sm:$0xff] }
 0x178   : > { %5751 = vmatpush1.bf16.msra.mxu0 %v8485_v18  ;;  %7611 = vmatprep.subr.bf16.mxu1 %v8493_v21  ;;  %v8552_v18 = vld [vmem:[#allocation5 + $0xd84] ss:$12 sps:$4 sm:$0xff]   ;;  %v8550_v21 = vld [vmem:[#allocation5 + $0xd80] ss:$12 sps:$4 sm:$0xff]  }
 0x179   : > { %5752 = vmatprep.subr.bf16.mxu0 %v8492_v20  ;;  %v8553_v20 = vld [vmem:[#allocation5 + $0x3c8] ss:$12 sps:$4 sm:$0xff]  }
 0x17b   : > { %7612 = vmatpush3.bf16.msra.mxu1 %v8494_v48  ;;  %v234_v48 = vld [vmem:[%s9469_s29 + $0x98] sm:$0xff] }
 0x17c   : > { %5753 = vmatpush1.bf16.msra.mxu0 %v8490_v24  ;;  %7613 = vmatprep.subr.bf16.mxu1 %v8498_v26  ;;  %v9551_v24 = vpack.c.bf16 %v231_v19, %v231_v19  ;;  %v8557_v26 = vld [vmem:[#allocation5 + $0xd9c] ss:$12 sps:$4 sm:$0xff]   ;;  %v8610_v19 = vld [vmem:[#allocation5 + $0xea0] ss:$12 sps:$4 sm:$0xff]  }
 0x17d   : > { %5754 = vmatprep.subr.bf16.mxu0 %v8497_v25  ;;  %v8554_v25 = vld [vmem:[#allocation5 + $0x308] ss:$12 sps:$4 sm:$0xff]  }
 0x17f   : > { %7614 = vmatpush3.bf16.msra.mxu1 %v8499_v29  ;;  %v8555_v29 = vld [vmem:[#allocation5 + $0xd98] ss:$12 sps:$4 sm:$0xff]  }
 0x180   : > { %5755 = vmatpush1.bf16.msra.mxu0 %v8495_v27  ;;  %7615 = vmatprep.subr.bf16.mxu1 %v8503_v31  ;;  %v8558_v27 = vld [vmem:[#allocation5 + $0x3e0] ss:$12 sps:$4 sm:$0xff]  }
 0x181   : > { %5756 = vmatprep.subr.bf16.mxu0 %v8502_v30  ;;  %v9554_v30 = vpack.c.bf16 %v234_v48, %v234_v48  ;;  %v8559_v31 = vld [vmem:[#allocation5 + $0x320] ss:$12 sps:$4 sm:$0xff]   ;;  %v8615_v48 = vld [vmem:[#allocation5 + $0xeb8] ss:$12 sps:$4 sm:$0xff]  }
 0x183   : > { %7616 = vmatpush3.bf16.msra.mxu1 %v8504_v34  ;;  %v8563_v34 = vld [vmem:[#allocation5 + $0x3f8] ss:$12 sps:$4 sm:$0xff]  }
 0x184   : > { %5757 = vmatpush1.bf16.msra.mxu0 %v8500_v32  ;;  %7617 = vmatprep.subr.bf16.mxu1 %v8508_v37  ;;  %v8562_v32 = vld [vmem:[#allocation5 + $0xdb4] ss:$12 sps:$4 sm:$0xff]   ;;  %v8564_v37 = vld [vmem:[#allocation5 + $0x338] ss:$12 sps:$4 sm:$0xff]  }
 0x185   : > { %5758 = vmatprep.subr.bf16.mxu0 %v8507_v35  ;;  %v8560_v35 = vld [vmem:[#allocation5 + $0xdb0] ss:$12 sps:$4 sm:$0xff]  }
 0x187   : > { %7618 = vmatpush3.bf16.msra.mxu1 %v8509_v39  ;;  %v8565_v39 = vld [vmem:[#allocation5 + $0xdc8] ss:$12 sps:$4 sm:$0xff]  }
 0x188   : > { %5759 = vmatpush1.bf16.msra.mxu0 %v8505_v38  ;;  %7625 = vmatprep.subr.bf16.mxu1 %v8513_v44  ;;  %v8567_v38 = vld [vmem:[#allocation5 + $0xdcc] ss:$12 sps:$4 sm:$0xff]   ;;  %v8572_v44 = vld [vmem:[#allocation5 + $0xde4] ss:$12 sps:$4 sm:$0xff]  }
 0x189   : > { %5760 = vmatprep.subr.bf16.mxu0 %v8512_v40  ;;  %v8569_v40 = vld [vmem:[#allocation5 + $0x350] ss:$12 sps:$4 sm:$0xff]  }
 0x18a   : > { %6105 = vmatmul.mubr.bf16.vlgmr.msra.gmra.mrb[4].mxu1 %v9489_v10  ;;  %v8529_v10 = vld [vmem:[#allocation5 + $0x1d0] ss:$12 sps:$4 sm:$0xff]  }
 0x18b   : > { %7626 = vmatpush3.bf16.msra.mxu1 %v8514_v46  ;;  %6144 = vmatprep.mubr.bf16.mxu1 %v9496_v36  ;;  %v8537_v36 = vld [vmem:[#allocation5 + $0xd3c] ss:$12 sps:$4 sm:$0xff]   ;;  %v8570_v46 = vld [vmem:[#allocation5 + $0xde0] ss:$12 sps:$4 sm:$0xff]  }
 0x18c   : > { %5761 = vmatpush1.bf16.msra.mxu0 %v8510_v45  ;;  %7627 = vmatprep.subr.bf16.mxu1 %v8518_v49  ;;  %v8573_v45 = vld [vmem:[#allocation5 + $0x428] ss:$12 sps:$4 sm:$0xff]   ;;  %v8578_v49 = vld [vmem:[#allocation5 + $0x440] ss:$12 sps:$4 sm:$0xff]  }
 0x18d   : > { %5762 = vmatprep.subr.bf16.mxu0 %v8517_v47  ;;  %v8577_v47 = vld [vmem:[#allocation5 + $0xdfc] ss:$12 sps:$4 sm:$0xff]  }
 0x18f   : > { %7628 = vmatpush3.bf16.msra.mxu1 %v8519_v54  ;;  %v8579_v54 = vld [vmem:[#allocation5 + $0x380] ss:$12 sps:$4 sm:$0xff]  }
 0x190   : > { %5763 = vmatpush1.bf16.msra.mxu0 %v8515_v52  ;;  %7629 = vmatprep.subr.bf16.mxu1 %v8523_v56  ;;  %v8575_v52 = vld [vmem:[#allocation5 + $0xdf8] ss:$12 sps:$4 sm:$0xff]  }
 0x191   : > { %5764 = vmatprep.subr.bf16.mxu0 %v8522_v55  ;;  %v8582_v55 = vld [vmem:[#allocation5 + $0xe14] ss:$12 sps:$4 sm:$0xff]   ;;  %v8583_v56 = vld [vmem:[#allocation5 + $0x458] ss:$12 sps:$4 sm:$0xff]  }
 0x193   : > { %7630 = vmatpush3.bf16.msra.mxu1 %v8524_v58  ;;  %v8584_v58 = vld [vmem:[#allocation5 + $0x398] ss:$12 sps:$4 sm:$0xff]  }
 0x194   : > { %5765 = vmatpush1.bf16.msra.mxu0 %v8520_v57  ;;  %7631 = vmatprep.subr.bf16.mxu1 %v8528_v60  ;;  %v8580_v57 = vld [vmem:[#allocation5 + $0xe10] ss:$12 sps:$4 sm:$0xff]  }
 0x195   : > { %5766 = vmatprep.subr.bf16.mxu0 %v8527_v59  ;;  %v8587_v59 = vld [vmem:[#allocation5 + $0xe2c] ss:$12 sps:$4 sm:$0xff]   ;;  %v8588_v60 = vld [vmem:[#allocation5 + $0x470] ss:$12 sps:$4 sm:$0xff]  }
 0x197   : > { %7632 = vmatpush3.bf16.msra.mxu1 %v8529_v10  ;;  %v8589_v10 = vld [vmem:[#allocation5 + $0x3b0] ss:$12 sps:$4 sm:$0xff]  }
 0x198   : > { %5767 = vmatpush1.bf16.msra.mxu0 %v8525_v61  ;;  %7633 = vmatprep.subr.bf16.mxu1 %v8533_v63  ;;  %v8585_v61 = vld [vmem:[#allocation5 + $0xe28] ss:$12 sps:$4 sm:$0xff]  }
 0x199   : > { %5768 = vmatprep.subr.bf16.mxu0 %v8532_v62  ;;  %v8592_v62 = vld [vmem:[#allocation5 + $0xe44] ss:$12 sps:$4 sm:$0xff]   ;;  %v8593_v63 = vld [vmem:[#allocation5 + $0x548] ss:$12 sps:$4 sm:$0xff]  }
 0x19b   : > { %7634 = vmatpush3.bf16.msra.mxu1 %v8534_v3  ;;  %v8594_v3 = vld [vmem:[#allocation5 + $0x488] ss:$12 sps:$4 sm:$0xff]  }
 0x19c   : > { %5769 = vmatpush1.bf16.msra.mxu0 %v8530_v0  ;;  %7635 = vmatprep.subr.bf16.mxu1 %v8538_v4  ;;  %v8590_v0 = vld [vmem:[#allocation5 + $0xe40] ss:$12 sps:$4 sm:$0xff]  }
 0x19d   : > { %5770 = vmatprep.subr.bf16.mxu0 %v8537_v36  ;;  %v8597_v36 = vld [vmem:[#allocation5 + $0xe5c] ss:$12 sps:$4 sm:$0xff]   ;;  %v8598_v4 = vld [vmem:[#allocation5 + $0x560] ss:$12 sps:$4 sm:$0xff]  }
 0x19f   : > { %7636 = vmatpush3.bf16.msra.mxu1 %v8539_v6  ;;  %v8599_v6 = vld [vmem:[#allocation5 + $0x4a0] ss:$12 sps:$4 sm:$0xff]  }
 0x1a0   : > { %5771 = vmatpush1.bf16.msra.mxu0 %v8535_v5  ;;  %7637 = vmatprep.subr.bf16.mxu1 %v8543_v9  ;;  %v8595_v5 = vld [vmem:[#allocation5 + $0xe58] ss:$12 sps:$4 sm:$0xff]  }
 0x1a1   : > { %5772 = vmatprep.subr.bf16.mxu0 %v8542_v7  ;;  %v8602_v7 = vld [vmem:[#allocation5 + $0xe74] ss:$12 sps:$4 sm:$0xff]   ;;  %v8603_v9 = vld [vmem:[#allocation5 + $0x578] ss:$12 sps:$4 sm:$0xff]  }
 0x1a3   : > { %7638 = vmatpush3.bf16.msra.mxu1 %v8544_v13  ;;  %v8604_v13 = vld [vmem:[#allocation5 + $0x4b8] ss:$12 sps:$4 sm:$0xff]  }
 0x1a4   : > { %5773 = vmatpush1.bf16.msra.mxu0 %v8540_v12  ;;  %7639 = vmatprep.subr.bf16.mxu1 %v8548_v15  ;;  %v8600_v12 = vld [vmem:[#allocation5 + $0xe70] ss:$12 sps:$4 sm:$0xff]  }
 0x1a5   : > { %5774 = vmatprep.subr.bf16.mxu0 %v8547_v14  ;;  %v8607_v14 = vld [vmem:[#allocation5 + $0xe8c] ss:$12 sps:$4 sm:$0xff]   ;;  %v8608_v15 = vld [vmem:[#allocation5 + $0x590] ss:$12 sps:$4 sm:$0xff]  }
 0x1a7   : > { %7640 = vmatpush3.bf16.msra.mxu1 %v8549_v17  ;;  %v8609_v17 = vld [vmem:[#allocation5 + $0x4d0] ss:$12 sps:$4 sm:$0xff]  }
 0x1a8   : > { %5775 = vmatpush1.bf16.msra.mxu0 %v8545_v16  ;;  %7647 = vmatprep.subr.bf16.mxu1 %v8553_v20  ;;  %v8605_v16 = vld [vmem:[#allocation5 + $0xe88] ss:$12 sps:$4 sm:$0xff]  }
 0x1a9   : > { %5785 = vmatprep.subr.bf16.mxu0 %v8552_v18  ;;  %v8613_v18 = vld [vmem:[#allocation5 + $0x5a8] ss:$12 sps:$4 sm:$0xff]  }
 0x1aa   : > { %6145 = vmatmul.mubr.bf16.vlgmr.msra.gmra.mrb[8].mxu1 %v9505_v22  ;;  %v8568_v22 = vld [vmem:[#allocation5 + $0x410] ss:$12 sps:$4 sm:$0xff]  }
 0x1ab   : > { %5777 = vmatmul.mubr.bf16.vlgmr.msra.gmra.mrb[0].mxu0 %v9551_v24  ;;  %7648 = vmatpush3.bf16.msra.mxu1 %v8554_v25  ;;  %v8617_v20 = vld [vmem:[#allocation5 + $0xebc] ss:$12 sps:$4 sm:$0xff]   ;;  %v8619_v25 = vld [vmem:[#allocation5 + $0x500] ss:$12 sps:$4 sm:$0xff]  }
 0x1ac   : > { %5786 = vmatpush1.bf16.msra.mxu0 %v8550_v21  ;;  %7649 = vmatprep.subr.bf16.mxu1 %v8558_v27  ;;  %v8618_v21 = vld [vmem:[#allocation5 + $0x5c0] ss:$12 sps:$4 sm:$0xff]   ;;  %v8623_v27 = vld [vmem:[#allocation5 + $0x5d8] ss:$12 sps:$4 sm:$0xff]  }
 0x1ad   : > { %5787 = vmatprep.subr.bf16.mxu0 %v8557_v26  ;;  %6184 = vmatprep.mubr.bf16.mxu1 %v9512_v28  ;;  %v8574_v28 = vld [vmem:[#allocation5 + $0x368] ss:$12 sps:$4 sm:$0xff]  }
 0x1ae   : > { %5817 = vmatprep.mubr.bf16.mxu0 %v9554_v30  ;;  %v8622_v26 = vld [vmem:[#allocation5 + $0xed4] ss:$12 sps:$4 sm:$0xff]  }
 0x1af   : > { %7650 = vmatpush3.bf16.msra.mxu1 %v8559_v31  ;;  %v8624_v31 = vld [vmem:[#allocation5 + $0x518] ss:$12 sps:$4 sm:$0xff]  }
 0x1b0   : > { %5788 = vmatpush1.bf16.msra.mxu0 %v8555_v29  ;;  %7651 = vmatprep.subr.bf16.mxu1 %v8563_v34  ;;  %v8620_v29 = vld [vmem:[#allocation5 + $0xed0] ss:$12 sps:$4 sm:$0xff]  }
 0x1b1   : > { %5789 = vmatprep.subr.bf16.mxu0 %v8562_v32  ;;  %v8627_v32 = vld [vmem:[#allocation5 + $0xeec] ss:$12 sps:$4 sm:$0xff]   ;;  %v8628_v34 = vld [vmem:[#allocation5 + $0x5f0] ss:$12 sps:$4 sm:$0xff]  }
 0x1b3   : > { %7652 = vmatpush3.bf16.msra.mxu1 %v8564_v37  ;;  %v8629_v37 = vld [vmem:[#allocation5 + $0x530] ss:$12 sps:$4 sm:$0xff]  }
 0x1b4   : > { %5790 = vmatpush1.bf16.msra.mxu0 %v8560_v35  ;;  %7653 = vmatprep.subr.bf16.mxu1 %v8568_v22  ;;  %v8625_v35 = vld [vmem:[#allocation5 + $0xee8] ss:$12 sps:$4 sm:$0xff]  }
 0x1b5   : > { %5791 = vmatprep.subr.bf16.mxu0 %v8567_v38  ;;  %v8632_v38 = vld [vmem:[#allocation5 + $0xf04] ss:$12 sps:$4 sm:$0xff]  }
 0x1b6   : > { %v233_v22 = vld [vmem:[%s9469_s29 + $0x90] sm:$0xff] }
 0x1b7   : > { %7654 = vmatpush3.bf16.msra.mxu1 %v8569_v40  ;;  %v8630_v40 = vld [vmem:[#allocation5 + $0xf00] ss:$12 sps:$4 sm:$0xff]  }
 0x1b8   : > { %5792 = vmatpush1.bf16.msra.mxu0 %v8565_v39  ;;  %7655 = vmatprep.subr.bf16.mxu1 %v8573_v45  ;;  %v8633_v39 = vld [vmem:[#allocation5 + $0x6c8] ss:$12 sps:$4 sm:$0xff]   ;;  %v9563_v45 = vpack.c.bf16 %v233_v22, %v233_v22  ;;  %v8698_v22 = vld [vmem:[#allocation5 + $0x8c0] ss:$12 sps:$4 sm:$0xff]  }
 0x1b9   : > { %5793 = vmatprep.subr.bf16.mxu0 %v8572_v44  ;;  %v8634_v44 = vld [vmem:[#allocation5 + $0x608] ss:$12 sps:$4 sm:$0xff]  }
 0x1bb   : > { %7656 = vmatpush3.bf16.msra.mxu1 %v8574_v28  ;;  %v8637_v28 = vld [vmem:[#allocation5 + $0xf1c] ss:$12 sps:$4 sm:$0xff]  }
 0x1bc   : > { %5794 = vmatpush1.bf16.msra.mxu0 %v8570_v46  ;;  %7657 = vmatprep.subr.bf16.mxu1 %v8578_v49  ;;  %v236_v46 = vld [vmem:[%s9469_s29 + $0xa8] sm:$0xff] }
 0x1bd   : > { %5795 = vmatprep.subr.bf16.mxu0 %v8577_v47  ;;  %v8638_v47 = vld [vmem:[#allocation5 + $0x6e0] ss:$12 sps:$4 sm:$0xff]   ;;  %v9566_v49 = vpack.c.bf16 %v236_v46, %v236_v46  ;;  %v8703_v46 = vld [vmem:[#allocation5 + $0x8d8] ss:$12 sps:$4 sm:$0xff]  }
 0x1bf   : > { %7658 = vmatpush3.bf16.msra.mxu1 %v8579_v54  ;;  %v8639_v54 = vld [vmem:[#allocation5 + $0x620] ss:$12 sps:$4 sm:$0xff]  }
 0x1c0   : > { %5796 = vmatpush1.bf16.msra.mxu0 %v8575_v52  ;;  %7659 = vmatprep.subr.bf16.mxu1 %v8583_v56  ;;  %v8635_v52 = vld [vmem:[#allocation5 + $0xf18] ss:$12 sps:$4 sm:$0xff]  }
 0x1c1   : > { %5797 = vmatprep.subr.bf16.mxu0 %v8582_v55  ;;  %v8642_v55 = vld [vmem:[#allocation5 + $0xf34] ss:$12 sps:$4 sm:$0xff]   ;;  %v8643_v56 = vld [vmem:[#allocation5 + $0x6f8] ss:$12 sps:$4 sm:$0xff]  }
 0x1c3   : > { %7660 = vmatpush3.bf16.msra.mxu1 %v8584_v58  ;;  %v8644_v58 = vld [vmem:[#allocation5 + $0x638] ss:$12 sps:$4 sm:$0xff]  }
 0x1c4   : > { %5798 = vmatpush1.bf16.msra.mxu0 %v8580_v57  ;;  %7661 = vmatprep.subr.bf16.mxu1 %v8588_v60  ;;  %v8640_v57 = vld [vmem:[#allocation5 + $0xf30] ss:$12 sps:$4 sm:$0xff]   ;;  %v8645_v60 = vld [vmem:[#allocation5 + $0xf48] ss:$12 sps:$4 sm:$0xff]  }
 0x1c5   : > { %5799 = vmatprep.subr.bf16.mxu0 %v8587_v59  ;;  %v8647_v59 = vld [vmem:[#allocation5 + $0xf4c] ss:$12 sps:$4 sm:$0xff]  }
 0x1c7   : > { %7662 = vmatpush3.bf16.msra.mxu1 %v8589_v10  ;;  %v8652_v10 = vld [vmem:[#allocation5 + $0xf64] ss:$12 sps:$4 sm:$0xff]  }
 0x1c8   : > { %5800 = vmatpush1.bf16.msra.mxu0 %v8585_v61  ;;  %7669 = vmatprep.subr.bf16.mxu1 %v8593_v63  ;;  %v8649_v61 = vld [vmem:[#allocation5 + $0x650] ss:$12 sps:$4 sm:$0xff]   ;;  %v8650_v63 = vld [vmem:[#allocation5 + $0xf60] ss:$12 sps:$4 sm:$0xff]  }
 0x1c9   : > { %5801 = vmatprep.subr.bf16.mxu0 %v8592_v62  ;;  %v8653_v62 = vld [vmem:[#allocation5 + $0x728] ss:$12 sps:$4 sm:$0xff]  }
 0x1ca   : > { %6185 = vmatmul.mubr.bf16.vlgmr.msra.gmra.mrb[12].mxu1 %v9522_v42  ;;  %v8612_v42 = vld [vmem:[#allocation5 + $0xea4] ss:$12 sps:$4 sm:$0xff]  }
 0x1cb   : > { %7670 = vmatpush3.bf16.msra.mxu1 %v8594_v3  ;;  %6224 = vmatprep.mubr.bf16.mxu1 %v9527_v50  ;;  %v8614_v50 = vld [vmem:[#allocation5 + $0x4e8] ss:$12 sps:$4 sm:$0xff]   ;;  %v8658_v3 = vld [vmem:[#allocation5 + $0x740] ss:$12 sps:$4 sm:$0xff]  }
 0x1cc   : > { %5802 = vmatpush1.bf16.msra.mxu0 %v8590_v0  ;;  %7671 = vmatprep.subr.bf16.mxu1 %v8598_v4  ;;  %v8657_v0 = vld [vmem:[#allocation5 + $0xf7c] ss:$12 sps:$4 sm:$0xff]   ;;  %v8659_v4 = vld [vmem:[#allocation5 + $0x680] ss:$12 sps:$4 sm:$0xff]  }
 0x1cd   : > { %5803 = vmatprep.subr.bf16.mxu0 %v8597_v36  ;;  %v8655_v36 = vld [vmem:[#allocation5 + $0xf78] ss:$12 sps:$4 sm:$0xff]  }
 0x1cf   : > { %7672 = vmatpush3.bf16.msra.mxu1 %v8599_v6  ;;  %v8663_v6 = vld [vmem:[#allocation5 + $0x758] ss:$12 sps:$4 sm:$0xff]  }
 0x1d0   : > { %5804 = vmatpush1.bf16.msra.mxu0 %v8595_v5  ;;  %7673 = vmatprep.subr.bf16.mxu1 %v8603_v9  ;;  %v8662_v5 = vld [vmem:[#allocation5 + $0xf94] ss:$12 sps:$4 sm:$0xff]   ;;  %v8664_v9 = vld [vmem:[#allocation5 + $0x698] ss:$12 sps:$4 sm:$0xff]  }
 0x1d1   : > { %5805 = vmatprep.subr.bf16.mxu0 %v8602_v7  ;;  %v8660_v7 = vld [vmem:[#allocation5 + $0xf90] ss:$12 sps:$4 sm:$0xff]  }
 0x1d3   : > { %7674 = vmatpush3.bf16.msra.mxu1 %v8604_v13  ;;  %v8668_v13 = vld [vmem:[#allocation5 + $0x770] ss:$12 sps:$4 sm:$0xff]  }
 0x1d4   : > { %5806 = vmatpush1.bf16.msra.mxu0 %v8600_v12  ;;  %7675 = vmatprep.subr.bf16.mxu1 %v8608_v15  ;;  %v8667_v12 = vld [vmem:[#allocation5 + $0xfac] ss:$12 sps:$4 sm:$0xff]   ;;  %v8669_v15 = vld [vmem:[#allocation5 + $0x6b0] ss:$12 sps:$4 sm:$0xff]  }
 0x1d5   : > { %5807 = vmatprep.subr.bf16.mxu0 %v8607_v14  ;;  %v8665_v14 = vld [vmem:[#allocation5 + $0xfa8] ss:$12 sps:$4 sm:$0xff]  }
 0x1d7   : > { %7676 = vmatpush3.bf16.msra.mxu1 %v8609_v17  ;;  %v8673_v17 = vld [vmem:[#allocation5 + $0x848] ss:$12 sps:$4 sm:$0xff]  }
 0x1d8   : > { %5808 = vmatpush1.bf16.msra.mxu0 %v8605_v16  ;;  %7677 = vmatprep.subr.bf16.mxu1 %v8613_v18  ;;  %v8672_v16 = vld [vmem:[#allocation5 + $0xfc4] ss:$12 sps:$4 sm:$0xff]   ;;  %v8674_v18 = vld [vmem:[#allocation5 + $0x788] ss:$12 sps:$4 sm:$0xff]  }
 0x1d9   : > { %5809 = vmatprep.subr.bf16.mxu0 %v8612_v42  ;;  %v8670_v42 = vld [vmem:[#allocation5 + $0xfc0] ss:$12 sps:$4 sm:$0xff]  }
 0x1db   : > { %7678 = vmatpush3.bf16.msra.mxu1 %v8614_v50  ;;  %v8678_v50 = vld [vmem:[#allocation5 + $0x860] ss:$12 sps:$4 sm:$0xff]  }
 0x1dc   : > { %5810 = vmatpush1.bf16.msra.mxu0 %v8610_v19  ;;  %7679 = vmatprep.subr.bf16.mxu1 %v8618_v21  ;;  %v8677_v19 = vld [vmem:[#allocation5 + $0xfdc] ss:$12 sps:$4 sm:$0xff]   ;;  %v8679_v21 = vld [vmem:[#allocation5 + $0x7a0] ss:$12 sps:$4 sm:$0xff]  }
 0x1dd   : > { %5811 = vmatprep.subr.bf16.mxu0 %v8617_v20  ;;  %v8675_v20 = vld [vmem:[#allocation5 + $0xfd8] ss:$12 sps:$4 sm:$0xff]  }
 0x1df   : > { %7680 = vmatpush3.bf16.msra.mxu1 %v8619_v25  ;;  %v8683_v25 = vld [vmem:[#allocation5 + $0x878] ss:$12 sps:$4 sm:$0xff]  }
 0x1e0   : > { %5812 = vmatpush1.bf16.msra.mxu0 %v8615_v48  ;;  %7681 = vmatprep.subr.bf16.mxu1 %v8623_v27  ;;  %v8682_v48 = vld [vmem:[#allocation5 + $0xff4] ss:$12 sps:$4 sm:$0xff]   ;;  %v8684_v27 = vld [vmem:[#allocation5 + $0x7b8] ss:$12 sps:$4 sm:$0xff]  }
 0x1e1   : > { %5813 = vmatprep.subr.bf16.mxu0 %v8622_v26  ;;  %v8680_v26 = vld [vmem:[#allocation5 + $0xff0] ss:$12 sps:$4 sm:$0xff]  }
 0x1e3   : > { %7682 = vmatpush3.bf16.msra.mxu1 %v8624_v31  ;;  %v8688_v31 = vld [vmem:[#allocation5 + $0x890] ss:$12 sps:$4 sm:$0xff]  }
 0x1e4   : > { %5814 = vmatpush1.bf16.msra.mxu0 %v8620_v29  ;;  %7683 = vmatprep.subr.bf16.mxu1 %v8628_v34  ;;  %v8687_v29 = vld [vmem:[#allocation5 + $0x100c] ss:$12 sps:$4 sm:$0xff]   ;;  %v8689_v34 = vld [vmem:[#allocation5 + $0x7d0] ss:$12 sps:$4 sm:$0xff]  }
 0x1e5   : > { %5815 = vmatprep.subr.bf16.mxu0 %v8627_v32  ;;  %v8685_v32 = vld [vmem:[#allocation5 + $0x1008] ss:$12 sps:$4 sm:$0xff]  }
 0x1e7   : > { %7684 = vmatpush3.bf16.msra.mxu1 %v8629_v37  ;;  %v8690_v37 = vld [vmem:[#allocation5 + $0x1020] ss:$12 sps:$4 sm:$0xff]  }
 0x1e8   : > { %5816 = vmatpush1.bf16.msra.mxu0 %v8625_v35  ;;  %7691 = vmatprep.subr.bf16.mxu1 %v8633_v39  ;;  %v8693_v35 = vld [vmem:[#allocation5 + $0x8a8] ss:$12 sps:$4 sm:$0xff]   ;;  %v8695_v39 = vld [vmem:[#allocation5 + $0x1038] ss:$12 sps:$4 sm:$0xff]  }
 0x1e9   : > { %5826 = vmatprep.subr.bf16.mxu0 %v8632_v38  ;;  %v8697_v38 = vld [vmem:[#allocation5 + $0x103c] ss:$12 sps:$4 sm:$0xff]  }
 0x1ea   : > { %6225 = vmatmul.mubr.bf16.vlgmr.msra.gmra.mrb[16].mxu1 %v9537_v1  ;;  %v8648_v1 = vld [vmem:[#allocation5 + $0x710] ss:$12 sps:$4 sm:$0xff]  }
 0x1eb   : > { %5818 = vmatmul.mubr.bf16.vlgmr.msra.gmra.mrb[0].mxu0 %v9563_v45  ;;  %7692 = vmatpush3.bf16.msra.mxu1 %v8634_v44  ;;  %v8702_v44 = vld [vmem:[#allocation5 + $0x1054] ss:$12 sps:$4 sm:$0xff]  }
 0x1ec   : > { %5827 = vmatpush1.bf16.msra.mxu0 %v8630_v40  ;;  %7693 = vmatprep.subr.bf16.mxu1 %v8638_v47  ;;  %v8699_v40 = vld [vmem:[#allocation5 + $0x800] ss:$12 sps:$4 sm:$0xff]   ;;  %v8704_v47 = vld [vmem:[#allocation5 + $0x818] ss:$12 sps:$4 sm:$0xff]  }
 0x1ed   : > { %5828 = vmatprep.subr.bf16.mxu0 %v8637_v28  ;;  %6264 = vmatprep.mubr.bf16.mxu1 %v9483_v53  ;;  %v8654_v53 = vld [vmem:[#allocation5 + $0x668] ss:$12 sps:$4 sm:$0xff]   ;;  %v8700_v28 = vld [vmem:[#allocation5 + $0x1050] ss:$12 sps:$4 sm:$0xff]  }
 0x1ee   : > { %5858 = vmatprep.mubr.bf16.mxu0 %v9566_v49 }
 0x1ef   : > { %7694 = vmatpush3.bf16.msra.mxu1 %v8639_v54  ;;  %v8708_v54 = vld [vmem:[#allocation5 + $0x8f0] ss:$12 sps:$4 sm:$0xff]  }
 0x1f0   : > { %5829 = vmatpush1.bf16.msra.mxu0 %v8635_v52  ;;  %7695 = vmatprep.subr.bf16.mxu1 %v8643_v56  ;;  %v8707_v52 = vld [vmem:[#allocation5 + $0x106c] ss:$12 sps:$4 sm:$0xff]   ;;  %v8709_v56 = vld [vmem:[#allocation5 + $0x830] ss:$12 sps:$4 sm:$0xff]  }
 0x1f1   : > { %5830 = vmatprep.subr.bf16.mxu0 %v8642_v55  ;;  %v8705_v55 = vld [vmem:[#allocation5 + $0x1068] ss:$12 sps:$4 sm:$0xff]  }
 0x1f3   : > { %7696 = vmatpush3.bf16.msra.mxu1 %v8644_v58  ;;  %v235_v58 = vld [vmem:[%s9469_s29 + $0xa0] sm:$0xff] }
 0x1f4   : > { %5831 = vmatpush1.bf16.msra.mxu0 %v8640_v57  ;;  %7697 = vmatprep.subr.bf16.mxu1 %v8648_v1  ;;  %v8712_v57 = vld [vmem:[#allocation5 + $0x1084] ss:$12 sps:$4 sm:$0xff]   ;;  %v238_v1 = vld [vmem:[%s9469_s29 + $0xb8] sm:$0xff] }
 0x1f5   : > { %5832 = vmatprep.subr.bf16.mxu0 %v8647_v59  ;;  %v8713_v59 = vld [vmem:[#allocation5 + $0x9c8] ss:$12 sps:$4 sm:$0xff]  }
 0x1f7   : > { %7698 = vmatpush3.bf16.msra.mxu1 %v8649_v61  ;;  %v8710_v61 = vld [vmem:[#allocation5 + $0x1080] ss:$12 sps:$4 sm:$0xff]  }
 0x1f8   : > { %5833 = vmatpush1.bf16.msra.mxu0 %v8645_v60  ;;  %7699 = vmatprep.subr.bf16.mxu1 %v8653_v62  ;;  %v9576_v60 = vpack.c.bf16 %v235_v58, %v235_v58  ;;  %v8717_v62 = vld [vmem:[#allocation5 + $0x109c] ss:$12 sps:$4 sm:$0xff]   ;;  %v8770_v58 = vld [vmem:[#allocation5 + $0x11a0] ss:$12 sps:$4 sm:$0xff]  }
 0x1f9   : > { %5834 = vmatprep.subr.bf16.mxu0 %v8652_v10  ;;  %v8714_v10 = vld [vmem:[#allocation5 + $0x908] ss:$12 sps:$4 sm:$0xff]  }
 0x1fb   : > { %7700 = vmatpush3.bf16.msra.mxu1 %v8654_v53  ;;  %v8715_v53 = vld [vmem:[#allocation5 + $0x1098] ss:$12 sps:$4 sm:$0xff]  }
 0x1fc   : > { %5835 = vmatpush1.bf16.msra.mxu0 %v8650_v63  ;;  %7701 = vmatprep.subr.bf16.mxu1 %v8658_v3  ;;  %v8718_v63 = vld [vmem:[#allocation5 + $0x9e0] ss:$12 sps:$4 sm:$0xff]  }
 0x1fd   : > { %5836 = vmatprep.subr.bf16.mxu0 %v8657_v0  ;;  %v9578_v0 = vpack.c.bf16 %v238_v1, %v238_v1  ;;  %v8719_v3 = vld [vmem:[#allocation5 + $0x920] ss:$12 sps:$4 sm:$0xff]  }
 0x1fe   : > { %v8778_v1 = vld [vmem:[#allocation5 + $0xbc0] ss:$12 sps:$4 sm:$0xff]  }
 0x1ff   : > { %7702 = vmatpush3.bf16.msra.mxu1 %v8659_v4  ;;  %v8723_v4 = vld [vmem:[#allocation5 + $0x9f8] ss:$12 sps:$4 sm:$0xff]  }
 0x200   : > { %5837 = vmatpush1.bf16.msra.mxu0 %v8655_v36  ;;  %7703 = vmatprep.subr.bf16.mxu1 %v8663_v6  ;;  %v8722_v36 = vld [vmem:[#allocation5 + $0x10b4] ss:$12 sps:$4 sm:$0xff]   ;;  %v8724_v6 = vld [vmem:[#allocation5 + $0x938] ss:$12 sps:$4 sm:$0xff]  }
 0x201   : > { %5838 = vmatprep.subr.bf16.mxu0 %v8662_v5  ;;  %v8720_v5 = vld [vmem:[#allocation5 + $0x10b0] ss:$12 sps:$4 sm:$0xff]  }
 0x203   : > { %7704 = vmatpush3.bf16.msra.mxu1 %v8664_v9  ;;  %v8725_v9 = vld [vmem:[#allocation5 + $0x10c8] ss:$12 sps:$4 sm:$0xff]  }
 0x204   : > { %5839 = vmatpush1.bf16.msra.mxu0 %v8660_v7  ;;  %7705 = vmatprep.subr.bf16.mxu1 %v8668_v13  ;;  %v8727_v7 = vld [vmem:[#allocation5 + $0x10cc] ss:$12 sps:$4 sm:$0xff]   ;;  %v8732_v13 = vld [vmem:[#allocation5 + $0x10e4] ss:$12 sps:$4 sm:$0xff]  }
 0x205   : > { %5840 = vmatprep.subr.bf16.mxu0 %v8667_v12  ;;  %v8729_v12 = vld [vmem:[#allocation5 + $0x950] ss:$12 sps:$4 sm:$0xff]  }
 0x207   : > { %7706 = vmatpush3.bf16.msra.mxu1 %v8669_v15  ;;  %v8730_v15 = vld [vmem:[#allocation5 + $0x10e0] ss:$12 sps:$4 sm:$0xff]  }
 0x208   : > { %5841 = vmatpush1.bf16.msra.mxu0 %v8665_v14  ;;  %7713 = vmatprep.subr.bf16.mxu1 %v8673_v17  ;;  %v8733_v14 = vld [vmem:[#allocation5 + $0xa28] ss:$12 sps:$4 sm:$0xff]   ;;  %v8738_v17 = vld [vmem:[#allocation5 + $0xa40] ss:$12 sps:$4 sm:$0xff]  }
 0x209   : > { %5842 = vmatprep.subr.bf16.mxu0 %v8672_v16  ;;  %v8737_v16 = vld [vmem:[#allocation5 + $0x10fc] ss:$12 sps:$4 sm:$0xff]  }
 0x20a   : > { %6265 = vmatmul.mubr.bf16.vlgmr.msra.gmra.mrb[20].mxu1 %v9491_v11  ;;  %v8692_v11 = vld [vmem:[#allocation5 + $0x1024] ss:$12 sps:$4 sm:$0xff]  }
 0x20b   : > { %7714 = vmatpush3.bf16.msra.mxu1 %v8674_v18  ;;  %6304 = vmatprep.mubr.bf16.mxu1 %v9499_v41  ;;  %v8694_v41 = vld [vmem:[#allocation5 + $0x7e8] ss:$12 sps:$4 sm:$0xff]   ;;  %v8739_v18 = vld [vmem:[#allocation5 + $0x980] ss:$12 sps:$4 sm:$0xff]  }
 0x20c   : > { %5843 = vmatpush1.bf16.msra.mxu0 %v8670_v42  ;;  %7715 = vmatprep.subr.bf16.mxu1 %v8678_v50  ;;  %v8735_v42 = vld [vmem:[#allocation5 + $0x10f8] ss:$12 sps:$4 sm:$0xff]  }
 0x20d   : > { %5844 = vmatprep.subr.bf16.mxu0 %v8677_v19  ;;  %v8742_v19 = vld [vmem:[#allocation5 + $0x1114] ss:$12 sps:$4 sm:$0xff]   ;;  %v8743_v50 = vld [vmem:[#allocation5 + $0xa58] ss:$12 sps:$4 sm:$0xff]  }
 0x20f   : > { %7716 = vmatpush3.bf16.msra.mxu1 %v8679_v21  ;;  %v8740_v21 = vld [vmem:[#allocation5 + $0x1110] ss:$12 sps:$4 sm:$0xff]  }
 0x210   : > { %5845 = vmatpush1.bf16.msra.mxu0 %v8675_v20  ;;  %7717 = vmatprep.subr.bf16.mxu1 %v8683_v25 }
 0x211   : > { %5846 = vmatprep.subr.bf16.mxu0 %v8682_v48  ;;  %v8744_v48 = vld [vmem:[#allocation5 + $0x998] ss:$12 sps:$4 sm:$0xff]  }
 0x213   : > { %7718 = vmatpush3.bf16.msra.mxu1 %v8684_v27 }
 0x214   : > { %5847 = vmatpush1.bf16.msra.mxu0 %v8680_v26  ;;  %7719 = vmatprep.subr.bf16.mxu1 %v8688_v31  ;;  %v8748_v31 = vld [vmem:[#allocation5 + $0xa70] ss:$12 sps:$4 sm:$0xff]  }
 0x215   : > { %5848 = vmatprep.subr.bf16.mxu0 %v8687_v29  ;;  %v8747_v29 = vld [vmem:[#allocation5 + $0x112c] ss:$12 sps:$4 sm:$0xff]  }
 0x217   : > { %7720 = vmatpush3.bf16.msra.mxu1 %v8689_v34  ;;  %v8749_v34 = vld [vmem:[#allocation5 + $0x9b0] ss:$12 sps:$4 sm:$0xff]  }
 0x218   : > { %5849 = vmatpush1.bf16.msra.mxu0 %v8685_v32  ;;  %7721 = vmatprep.subr.bf16.mxu1 %v8693_v35  ;;  %v8745_v32 = vld [vmem:[#allocation5 + $0x1128] ss:$12 sps:$4 sm:$0xff]  }
 0x219   : > { %5850 = vmatprep.subr.bf16.mxu0 %v8692_v11  ;;  %v8752_v11 = vld [vmem:[#allocation5 + $0x1144] ss:$12 sps:$4 sm:$0xff]   ;;  %v8753_v35 = vld [vmem:[#allocation5 + $0xb48] ss:$12 sps:$4 sm:$0xff]  }
 0x21b   : > { %7722 = vmatpush3.bf16.msra.mxu1 %v8694_v41  ;;  %v8754_v41 = vld [vmem:[#allocation5 + $0xa88] ss:$12 sps:$4 sm:$0xff]  }
 0x21c   : > { %5851 = vmatpush1.bf16.msra.mxu0 %v8690_v37  ;;  %7723 = vmatprep.subr.bf16.mxu1 %v8698_v22  ;;  %v8750_v37 = vld [vmem:[#allocation5 + $0x1140] ss:$12 sps:$4 sm:$0xff]  }
 0x21d   : > { %5852 = vmatprep.subr.bf16.mxu0 %v8697_v38  ;;  %v8757_v38 = vld [vmem:[#allocation5 + $0x115c] ss:$12 sps:$4 sm:$0xff]   ;;  %v8758_v22 = vld [vmem:[#allocation5 + $0xb60] ss:$12 sps:$4 sm:$0xff]  }
 0x21f   : > { %7724 = vmatpush3.bf16.msra.mxu1 %v8699_v40  ;;  %v8759_v40 = vld [vmem:[#allocation5 + $0xaa0] ss:$12 sps:$4 sm:$0xff]  }
 0x220   : > { %5853 = vmatpush1.bf16.msra.mxu0 %v8695_v39  ;;  %7725 = vmatprep.subr.bf16.mxu1 %v8703_v46  ;;  %v8755_v39 = vld [vmem:[#allocation5 + $0x1158] ss:$12 sps:$4 sm:$0xff]  }
 0x221   : > { %5854 = vmatprep.subr.bf16.mxu0 %v8702_v44  ;;  %v8762_v44 = vld [vmem:[#allocation5 + $0x1174] ss:$12 sps:$4 sm:$0xff]   ;;  %v8763_v46 = vld [vmem:[#allocation5 + $0xb78] ss:$12 sps:$4 sm:$0xff]  }
 0x223   : > { %7726 = vmatpush3.bf16.msra.mxu1 %v8704_v47  ;;  %v8764_v47 = vld [vmem:[#allocation5 + $0xab8] ss:$12 sps:$4 sm:$0xff]  }
 0x224   : > { %5855 = vmatpush1.bf16.msra.mxu0 %v8700_v28  ;;  %7727 = vmatprep.subr.bf16.mxu1 %v8708_v54  ;;  %v8760_v28 = vld [vmem:[#allocation5 + $0x1170] ss:$12 sps:$4 sm:$0xff]  }
 0x225   : > { %5856 = vmatprep.subr.bf16.mxu0 %v8707_v52  ;;  %v8767_v52 = vld [vmem:[#allocation5 + $0x118c] ss:$12 sps:$4 sm:$0xff]   ;;  %v8768_v54 = vld [vmem:[#allocation5 + $0xb90] ss:$12 sps:$4 sm:$0xff]  }
 0x227   : > { %7728 = vmatpush3.bf16.msra.mxu1 %v8709_v56  ;;  %v8772_v56 = vld [vmem:[#allocation5 + $0x11a4] ss:$12 sps:$4 sm:$0xff]  }
 0x228   : > { %5857 = vmatpush1.bf16.msra.mxu0 %v8705_v55  ;;  %7735 = vmatprep.subr.bf16.mxu1 %v8713_v59  ;;  %v8765_v55 = vld [vmem:[#allocation5 + $0x1188] ss:$12 sps:$4 sm:$0xff]  }
 0x229   : > { %5867 = vmatprep.subr.bf16.mxu0 %v8712_v57  ;;  %v8773_v57 = vld [vmem:[#allocation5 + $0xba8] ss:$12 sps:$4 sm:$0xff]  }
 0x22a   : > { %6305 = vmatmul.mubr.bf16.vlgmr.msra.gmra.mrb[24].mxu1 %v9507_v23  ;;  %v8728_v23 = vld [vmem:[#allocation5 + $0xa10] ss:$12 sps:$4 sm:$0xff]   ;;  %v8774_v59 = vld [vmem:[#allocation5 + $0xae8] ss:$12 sps:$4 sm:$0xff]  }
 0x22b   : > { %5859 = vmatmul.mubr.bf16.vlgmr.msra.gmra.mrb[0].mxu0 %v9576_v60  ;;  %7736 = vmatpush3.bf16.msra.mxu1 %v8714_v10  ;;  %v8779_v10 = vld [vmem:[#allocation5 + $0xb00] ss:$12 sps:$4 sm:$0xff]  }
 0x22c   : > { %5868 = vmatpush1.bf16.msra.mxu0 %v8710_v61  ;;  %7737 = vmatprep.subr.bf16.mxu1 %v8718_v63  ;;  %v8775_v61 = vld [vmem:[#allocation5 + $0x11b8] ss:$12 sps:$4 sm:$0xff]  }
 0x22d   : > { %5869 = vmatprep.subr.bf16.mxu0 %v8717_v62  ;;  %6344 = vmatprep.mubr.bf16.mxu1 %v9515_v33  ;;  %v8734_v33 = vld [vmem:[#allocation5 + $0x968] ss:$12 sps:$4 sm:$0xff]   ;;  %v8783_v63 = vld [vmem:[#allocation5 + $0xbd8] ss:$12 sps:$4 sm:$0xff]  }
 0x22e   : > { %5899 = vmatprep.mubr.bf16.mxu0 %v9578_v0  ;;  %v8782_v62 = vld [vmem:[#allocation5 + $0x11d4] ss:$12 sps:$4 sm:$0xff]  }
 0x22f   : > { %7738 = vmatpush3.bf16.msra.mxu1 %v8719_v3  ;;  %v8780_v3 = vld [vmem:[#allocation5 + $0x11d0] ss:$12 sps:$4 sm:$0xff]  }
 0x230   : > { %5870 = vmatpush1.bf16.msra.mxu0 %v8715_v53  ;;  %7739 = vmatprep.subr.bf16.mxu1 %v8723_v4 }
 0x231   : > { %5871 = vmatprep.subr.bf16.mxu0 %v8722_v36  ;;  %v8784_v36 = vld [vmem:[#allocation5 + $0xb18] ss:$12 sps:$4 sm:$0xff]  }
 0x233   : > { %7740 = vmatpush3.bf16.msra.mxu1 %v8724_v6 }
 0x234   : > { %5872 = vmatpush1.bf16.msra.mxu0 %v8720_v5  ;;  %7741 = vmatprep.subr.bf16.mxu1 %v8728_v23  ;;  %v8787_v23 = vld [vmem:[#allocation5 + $0x11ec] ss:$12 sps:$4 sm:$0xff]  }
 0x235   : > { %5873 = vmatprep.subr.bf16.mxu0 %v8727_v7 }
 0x237   : > { %7742 = vmatpush3.bf16.msra.mxu1 %v8729_v12  ;;  %v8785_v12 = vld [vmem:[#allocation5 + $0x11e8] ss:$12 sps:$4 sm:$0xff]  }
 0x238   : > { %5874 = vmatpush1.bf16.msra.mxu0 %v8725_v9  ;;  %7743 = vmatprep.subr.bf16.mxu1 %v8733_v14  ;;  %v8788_v9 = vld [vmem:[#allocation5 + $0xbf0] ss:$12 sps:$4 sm:$0xff]  }
 0x239   : > { %5875 = vmatprep.subr.bf16.mxu0 %v8732_v13  ;;  %v8789_v13 = vld [vmem:[#allocation5 + $0xb30] ss:$12 sps:$4 sm:$0xff]  }
 0x23a   : > { %v8792_v14 = vld [vmem:[#allocation5 + $0x1204] ss:$12 sps:$4 sm:$0xff]  }
 0x23b   : > { %7744 = vmatpush3.bf16.msra.mxu1 %v8734_v33  ;;  %v8793_v33 = vld [vmem:[#allocation5 + $0xcc8] ss:$12 sps:$4 sm:$0xff]  }
 0x23c   : > { %5876 = vmatpush1.bf16.msra.mxu0 %v8730_v15  ;;  %7745 = vmatprep.subr.bf16.mxu1 %v8738_v17  ;;  %v237_v15 = vld [vmem:[%s9469_s29 + $0xb0] sm:$0xff] }
 0x23d   : > { %5877 = vmatprep.subr.bf16.mxu0 %v8737_v16  ;;  %v9584_v20 = vpop.f32.mrb[0].mxu1  ;;  %v240_v16 = vld [vmem:[%s9469_s29 + $0xc8] sm:$0xff]  ;;  %v9594_v17 = vpack.c.bf16 %v237_v15, %v237_v15  ;;  %v8843_v15 = vld [vmem:[#allocation5 + $0xe78] ss:$12 sps:$4 sm:$0xff]  }
 0x23e   : > { %v9586_v25 = vpop.f32.mrb[1].mxu1 }
 0x23f   : > { %v5577_v26 = vpop.f32.mrb[2].mxu1  ;;  %7746 = vmatpush3.bf16.msra.mxu1 %v8739_v18  ;;  %v8794_v18 = vld [vmem:[#allocation5 + $0xc08] ss:$12 sps:$4 sm:$0xff]  }
 0x240   : > { %5878 = vmatpush1.bf16.msra.mxu0 %v8735_v42  ;;  %v5578_v27 = vpop.f32.mrb[3].mxu1  ;;  %7747 = vmatprep.subr.bf16.mxu1 %v8743_v50  ;;  %v8790_v42 = vld [vmem:[#allocation5 + $0x1200] ss:$12 sps:$4 sm:$0xff]  }
 0x241   : > { %5879 = vmatprep.subr.bf16.mxu0 %v8742_v19  ;;  %v8797_v19 = vld [vmem:[#allocation5 + $0x121c] ss:$12 sps:$4 sm:$0xff]   ;;  %v8798_v50 = vld [vmem:[#allocation5 + $0xce0] ss:$12 sps:$4 sm:$0xff]  }
 0x242   : > { %v8799_v26 = vld [vmem:[#allocation5 + $0xc20] ss:$12 sps:$4 sm:$0xff]  }
 0x243   : > { %7748 = vmatpush3.bf16.msra.mxu1 %v8744_v48  ;;  %v9596_v48 = vpack.c.bf16 %v240_v16, %v240_v16  ;;  %v8802_v27 = vld [vmem:[#allocation5 + $0x1234] ss:$12 sps:$4 sm:$0xff]   ;;  %v8844_v16 = vld [vmem:[#allocation5 + $0xdb8] ss:$12 sps:$4 sm:$0xff]  }
 0x244   : > { %5880 = vmatpush1.bf16.msra.mxu0 %v8740_v21  ;;  %7749 = vmatprep.subr.bf16.mxu1 %v8748_v31  ;;  %v8795_v21 = vld [vmem:[#allocation5 + $0x1218] ss:$12 sps:$4 sm:$0xff]   ;;  %v8800_v31 = vld [vmem:[#allocation5 + $0x1230] ss:$12 sps:$4 sm:$0xff]  }
 0x245   : > { %5881 = vmatprep.subr.bf16.mxu0 %v8747_v29  ;;  %v8803_v29 = vld [vmem:[#allocation5 + $0xcf8] ss:$12 sps:$4 sm:$0xff]  }
 0x247   : > { %7750 = vmatpush3.bf16.msra.mxu1 %v8749_v34  ;;  %v8807_v34 = vld [vmem:[#allocation5 + $0x124c] ss:$12 sps:$4 sm:$0xff]  }
 0x248   : > { %5882 = vmatpush1.bf16.msra.mxu0 %v8745_v32  ;;  %7757 = vmatprep.subr.bf16.mxu1 %v8753_v35  ;;  %v8804_v32 = vld [vmem:[#allocation5 + $0xc38] ss:$12 sps:$4 sm:$0xff]   ;;  %v8805_v35 = vld [vmem:[#allocation5 + $0x1248] ss:$12 sps:$4 sm:$0xff]  }
 0x249   : > { %5883 = vmatprep.subr.bf16.mxu0 %v8752_v11  ;;  %v1305_v11 = vlaneseq }
 0x24a   : > { %6345 = vmatmul.mubr.bf16.vlgmr.msra.gmra.mrb[28].mxu1 %v9524_v43  ;;  %v8769_v43 = vld [vmem:[#allocation5 + $0xad0] ss:$12 sps:$4 sm:$0xff]  }
 0x24b   : > { %7758 = vmatpush3.bf16.msra.mxu1 %v8754_v41  ;;  %6384 = vmatprep.mubr.bf16.mxu1 %v9529_v51  ;;  %v8777_v51 = vld [vmem:[#allocation5 + $0x11bc] ss:$12 sps:$4 sm:$0xff]   ;;  %v8812_v41 = vld [vmem:[#allocation5 + $0x1264] ss:$12 sps:$4 sm:$0xff]  }
 0x24c   : > { %5884 = vmatpush1.bf16.msra.mxu0 %v8750_v37  ;;  %7759 = vmatprep.subr.bf16.mxu1 %v8758_v22  ;;  %v8809_v37 = vld [vmem:[#allocation5 + $0xc50] ss:$12 sps:$4 sm:$0xff]   ;;  %v8810_v22 = vld [vmem:[#allocation5 + $0x1260] ss:$12 sps:$4 sm:$0xff]  }
 0x24d   : > { %5885 = vmatprep.subr.bf16.mxu0 %v8757_v38  ;;  %v9602_v38 = vshrl.u32 %v1305_v11, 7  ;;  %v8863_v11 = vld [vmem:[#allocation5 + $0xed8] ss:$12 sps:$4 sm:$0xff]  }
 0x24f   : > { %7760 = vmatpush3.bf16.msra.mxu1 %v8759_v40  ;;  %v8814_v40 = vld [vmem:[#allocation5 + $0xc68] ss:$12 sps:$4 sm:$0xff]  }
 0x250   : > { %5886 = vmatpush1.bf16.msra.mxu0 %v8755_v39  ;;  %7761 = vmatprep.subr.bf16.mxu1 %v8763_v46  ;;  %v1315_v39 = vsub.s32 2, %v9602_v38  ;;  %v1303_v46 = vld [vmem:[#allocation7] sm:$0x7] }
 0x251   : > { %5887 = vmatprep.subr.bf16.mxu0 %v8762_v44  ;;  %v8817_v44 = vld [vmem:[#allocation5 + $0x127c] ss:$12 sps:$4 sm:$0xff]  }
 0x253   : > { %7762 = vmatpush3.bf16.msra.mxu1 %v8764_v47  ;;  %v8815_v47 = vld [vmem:[#allocation5 + $0x1278] ss:$12 sps:$4 sm:$0xff]  }
 0x254   : > { %5888 = vmatpush1.bf16.msra.mxu0 %v8760_v28  ;;  %7763 = vmatprep.subr.bf16.mxu1 %v8768_v54  ;;  %v8818_v28 = vld [vmem:[#allocation5 + $0xd40] ss:$12 sps:$4 sm:$0xff]   ;;  %v1316_v54 = vrot.slane %v1303_v46, %v1315_v39 }
 0x255   : > { %5889 = vmatprep.subr.bf16.mxu0 %v8767_v52  ;;  %v8819_v52 = vld [vmem:[#allocation5 + $0xc80] ss:$12 sps:$4 sm:$0xff]  }
 0x257   : > { %7764 = vmatpush3.bf16.msra.mxu1 %v8769_v43  ;;  %v8823_v43 = vld [vmem:[#allocation5 + $0xd58] ss:$12 sps:$4 sm:$0xff]  }
 0x258   : > { %5890 = vmatpush1.bf16.msra.mxu0 %v8765_v55  ;;  %7765 = vmatprep.subr.bf16.mxu1 %v8773_v57  ;;  %v8822_v55 = vld [vmem:[#allocation5 + $0x1294] ss:$12 sps:$4 sm:$0xff]   ;;  %v8820_v57 = vld [vmem:[#allocation5 + $0x1290] ss:$12 sps:$4 sm:$0xff]  }
 0x259   : > { %5891 = vmatprep.subr.bf16.mxu0 %v8772_v56 }
 0x25b   : > { %7766 = vmatpush3.bf16.msra.mxu1 %v8774_v59 }
 0x25c   : > { %5892 = vmatpush1.bf16.msra.mxu0 %v8770_v58  ;;  %7767 = vmatprep.subr.bf16.mxu1 %v8778_v1  ;;  %v8824_v58 = vld [vmem:[#allocation5 + $0xc98] ss:$12 sps:$4 sm:$0xff]  }
 0x25d   : > { %5893 = vmatprep.subr.bf16.mxu0 %v8777_v51  ;;  %v7619_v53 = vpop.f32.mrb[4].mxu1 }
 0x25e   : > { %v7620_v4 = vpop.f32.mrb[5].mxu1 }
 0x25f   : > { %v9590_v5 = vadd.f32 %v7620_v4, %v7619_v53  ;;  %v7622_v6 = vpop.f32.mrb[6].mxu1  ;;  %7768 = vmatpush3.bf16.msra.mxu1 %v8779_v10  ;;  %v8832_v4 = vld [vmem:[#allocation5 + $0x12c4] ss:$12 sps:$4 sm:$0xff]  }
 0x260   : > { %5894 = vmatpush1.bf16.msra.mxu0 %v8775_v61  ;;  %v7623_v7 = vpop.f32.mrb[7].mxu1  ;;  %7769 = vmatprep.subr.bf16.mxu1 %v8783_v63  ;;  %v8828_v63 = vld [vmem:[#allocation5 + $0xd70] ss:$12 sps:$4 sm:$0xff]   ;;  %v8833_v6 = vld [vmem:[#allocation5 + $0xe48] ss:$12 sps:$4 sm:$0xff]  }
 0x261   : > { %5895 = vmatprep.subr.bf16.mxu0 %v8782_v62  ;;  %v6107_v51 = vadd.f32 %v9590_v5, %v1316_v54  ;;  %v8827_v62 = vld [vmem:[#allocation5 + $0x12ac] ss:$12 sps:$4 sm:$0xff]   ;;  %v8834_v7 = vld [vmem:[#allocation5 + $0xd88] ss:$12 sps:$4 sm:$0xff]   ;;  %v239_v54 = vld [vmem:[%s9469_s29 + $0xc0] sm:$0xff] }
 0x262   : > { %v8830_v5 = vld [vmem:[#allocation5 + $0x12c0] ss:$12 sps:$4 sm:$0xff]  }
 0x263   : > { %7770 = vmatpush3.bf16.msra.mxu1 %v8784_v36  ;;  %v8829_v36 = vld [vmem:[#allocation5 + $0xcb0] ss:$12 sps:$4 sm:$0xff]  }
 0x264   : > { %5896 = vmatpush1.bf16.msra.mxu0 %v8780_v3  ;;  %7771 = vmatprep.subr.bf16.mxu1 %v8788_v9  ;;  %v8825_v3 = vld [vmem:[#allocation5 + $0x12a8] ss:$12 sps:$4 sm:$0xff]   ;;  %v8838_v9 = vld [vmem:[#allocation5 + $0xe60] ss:$12 sps:$4 sm:$0xff]  }
 0x265   : > { %5897 = vmatprep.subr.bf16.mxu0 %v8787_v23  ;;  %v8837_v23 = vld [vmem:[#allocation5 + $0x12dc] ss:$12 sps:$4 sm:$0xff]  }
 0x267   : > { %7772 = vmatpush3.bf16.msra.mxu1 %v8789_v13  ;;  %v8839_v13 = vld [vmem:[#allocation5 + $0xda0] ss:$12 sps:$4 sm:$0xff]  }
 0x268   : > { %5898 = vmatpush1.bf16.msra.mxu0 %v8785_v12  ;;  %7779 = vmatprep.subr.bf16.mxu1 %v8793_v33  ;;  %v8835_v12 = vld [vmem:[#allocation5 + $0x12d8] ss:$12 sps:$4 sm:$0xff]   ;;  %v8840_v33 = vld [vmem:[#allocation5 + $0x12f0] ss:$12 sps:$4 sm:$0xff]  }
 0x269   : > { %5908 = vmatprep.subr.bf16.mxu0 %v8792_v14  ;;  %v8842_v14 = vld [vmem:[#allocation5 + $0x12f4] ss:$12 sps:$4 sm:$0xff]  }
 0x26a   : > { %6385 = vmatmul.mubr.bf16.vlgmr.msra.gmra.mrb[32].mxu1 %v9539_v2  ;;  %v8808_v2 = vld [vmem:[#allocation5 + $0xd10] ss:$12 sps:$4 sm:$0xff]  }
 0x26b   : > { %5900 = vmatmul.mubr.bf16.vlgmr.msra.gmra.mrb[0].mxu0 %v9594_v17  ;;  %7780 = vmatpush3.bf16.msra.mxu1 %v8794_v18  ;;  %v8848_v18 = vld [vmem:[#allocation5 + $0xe90] ss:$12 sps:$4 sm:$0xff]  }
 0x26c   : > { %5909 = vmatpush1.bf16.msra.mxu0 %v8790_v42  ;;  %7781 = vmatprep.subr.bf16.mxu1 %v8798_v50  ;;  %v8847_v42 = vld [vmem:[#allocation5 + $0x130c] ss:$12 sps:$4 sm:$0xff]   ;;  %v8852_v50 = vld [vmem:[#allocation5 + $0x1324] ss:$12 sps:$4 sm:$0xff]  }
 0x26d   : > { %5910 = vmatprep.subr.bf16.mxu0 %v8797_v19  ;;  %6424 = vmatprep.mubr.bf16.mxu1 %v9542_v8  ;;  %v8813_v8 = vld [vmem:[#allocation5 + $0xd28] ss:$12 sps:$4 sm:$0xff]  }
 0x26e   : > { %5940 = vmatprep.mubr.bf16.mxu0 %v9596_v48  ;;  %v8845_v19 = vld [vmem:[#allocation5 + $0x1308] ss:$12 sps:$4 sm:$0xff]  }
 0x26f   : > { %7782 = vmatpush3.bf16.msra.mxu1 %v8799_v26  ;;  %v8850_v26 = vld [vmem:[#allocation5 + $0x1320] ss:$12 sps:$4 sm:$0xff]  }
 0x270   : > { %5911 = vmatpush1.bf16.msra.mxu0 %v8795_v21  ;;  %7783 = vmatprep.subr.bf16.mxu1 %v8803_v29  ;;  %v8853_v21 = vld [vmem:[#allocation5 + $0xea8] ss:$12 sps:$4 sm:$0xff]   ;;  %v8858_v29 = vld [vmem:[#allocation5 + $0xec0] ss:$12 sps:$4 sm:$0xff]  }
 0x271   : > { %5912 = vmatprep.subr.bf16.mxu0 %v8802_v27  ;;  %v8854_v27 = vld [vmem:[#allocation5 + $0xde8] ss:$12 sps:$4 sm:$0xff]  }
 0x273   : > { %7784 = vmatpush3.bf16.msra.mxu1 %v8804_v32  ;;  %v8859_v32 = vld [vmem:[#allocation5 + $0xe00] ss:$12 sps:$4 sm:$0xff]  }
 0x274   : > { %5913 = vmatpush1.bf16.msra.mxu0 %v8800_v31  ;;  %7785 = vmatprep.subr.bf16.mxu1 %v8808_v2  ;;  %v8855_v31 = vld [vmem:[#allocation5 + $0x1338] ss:$12 sps:$4 sm:$0xff]  }
 0x275   : > { %5914 = vmatprep.subr.bf16.mxu0 %v8807_v34  ;;  %v8862_v34 = vld [vmem:[#allocation5 + $0x1354] ss:$12 sps:$4 sm:$0xff]  }
 0x277   : > { %7786 = vmatpush3.bf16.msra.mxu1 %v8809_v37  ;;  %v8864_v37 = vld [vmem:[#allocation5 + $0xe18] ss:$12 sps:$4 sm:$0xff]  }
 0x278   : > { %5915 = vmatpush1.bf16.msra.mxu0 %v8805_v35  ;;  %7787 = vmatprep.subr.bf16.mxu1 %v8813_v8  ;;  %v8860_v35 = vld [vmem:[#allocation5 + $0x1350] ss:$12 sps:$4 sm:$0xff]  }
 0x279   : > { %5916 = vmatprep.subr.bf16.mxu0 %v8812_v41 }
 0x27b   : > { %7788 = vmatpush3.bf16.msra.mxu1 %v8814_v40  ;;  %v8867_v40 = vld [vmem:[#allocation5 + $0x136c] ss:$12 sps:$4 sm:$0xff]  }
 0x27c   : > { %5917 = vmatpush1.bf16.msra.mxu0 %v8810_v22  ;;  %7789 = vmatprep.subr.bf16.mxu1 %v8818_v28  ;;  %v8865_v28 = vld [vmem:[#allocation5 + $0x1368] ss:$12 sps:$4 sm:$0xff]  }
 0x27d   : > { %5918 = vmatprep.subr.bf16.mxu0 %v8817_v44  ;;  %v7641_v56 = vpop.f32.mrb[8].mxu1  ;;  %v8868_v44 = vld [vmem:[#allocation5 + $0xef0] ss:$12 sps:$4 sm:$0xff]  }
 0x27e   : > { %v7642_v59 = vpop.f32.mrb[9].mxu1 }
 0x27f   : > { %v7643_v1 = vadd.f32 %v7642_v59, %v7641_v56  ;;  %v7644_v61 = vpop.f32.mrb[10].mxu1  ;;  %7790 = vmatpush3.bf16.msra.mxu1 %v8819_v52  ;;  %v8872_v52 = vld [vmem:[#allocation5 + $0x1384] ss:$12 sps:$4 sm:$0xff]   ;;  %v9615_v56 = vpack.c.bf16 %v239_v54, %v239_v54  ;;  %v8877_v59 = vld [vmem:[#allocation5 + $0x139c] ss:$12 sps:$4 sm:$0xff]  }
 0x280   : > { %5919 = vmatpush1.bf16.msra.mxu0 %v8815_v47  ;;  %v7645_v10 = vpop.f32.mrb[11].mxu1  ;;  %7791 = vmatprep.subr.bf16.mxu1 %v8823_v43  ;;  %v8869_v47 = vld [vmem:[#allocation5 + $0xe30] ss:$12 sps:$4 sm:$0xff]   ;;  %v8933_v54 = vld [vmem:[#allocation5 + $0x11a8] ss:$12 sps:$4 sm:$0xff]  }
 0x281   : > { %5920 = vmatprep.subr.bf16.mxu0 %v8822_v55  ;;  %v9606_v53 = vadd.f32 %v7643_v1, %v6107_v51  ;;  %v8873_v55 = vld [vmem:[#allocation5 + $0xfc8] ss:$12 sps:$4 sm:$0xff]   ;;  %v242_v43 = vld [vmem:[%s9469_s29 + $0xd8] sm:$0xff]  ;;  %v8878_v51 = vld [vmem:[#allocation5 + $0xfe0] ss:$12 sps:$4 sm:$0xff]  }
 0x282   : > { %v8875_v1 = vld [vmem:[#allocation5 + $0x1398] ss:$12 sps:$4 sm:$0xff]   ;;  %v9617_v61 = vpack.c.bf16 %v242_v43, %v242_v43  ;;  %v8879_v10 = vld [vmem:[#allocation5 + $0xf20] ss:$12 sps:$4 sm:$0xff]   ;;  %v8937_v43 = vld [vmem:[#allocation5 + $0x14bc] ss:$12 sps:$4 sm:$0xff]  }
 0x283   : > { %7792 = vmatpush3.bf16.msra.mxu1 %v8824_v58  ;;  %v8874_v58 = vld [vmem:[#allocation5 + $0xf08] ss:$12 sps:$4 sm:$0xff]  }
 0x284   : > { %5921 = vmatpush1.bf16.msra.mxu0 %v8820_v57  ;;  %7793 = vmatprep.subr.bf16.mxu1 %v8828_v63  ;;  %v8870_v57 = vld [vmem:[#allocation5 + $0x1380] ss:$12 sps:$4 sm:$0xff]   ;;  %v8883_v63 = vld [vmem:[#allocation5 + $0xff8] ss:$12 sps:$4 sm:$0xff]  }
 0x285   : > { %5922 = vmatprep.subr.bf16.mxu0 %v8827_v62  ;;  %v8882_v62 = vld [vmem:[#allocation5 + $0x13b4] ss:$12 sps:$4 sm:$0xff]  }
 0x287   : > { %7794 = vmatpush3.bf16.msra.mxu1 %v8829_v36  ;;  %v8887_v36 = vld [vmem:[#allocation5 + $0x13cc] ss:$12 sps:$4 sm:$0xff]  }
 0x288   : > { %5923 = vmatpush1.bf16.msra.mxu0 %v8825_v3  ;;  %7801 = vmatprep.subr.bf16.mxu1 %v8833_v6  ;;  %v8884_v3 = vld [vmem:[#allocation5 + $0xf38] ss:$12 sps:$4 sm:$0xff]   ;;  %v8889_v6 = vld [vmem:[#allocation5 + $0xf50] ss:$12 sps:$4 sm:$0xff]  }
 0x289   : > { %5924 = vmatprep.subr.bf16.mxu0 %v8832_v4  ;;  %v8885_v4 = vld [vmem:[#allocation5 + $0x13c8] ss:$12 sps:$4 sm:$0xff]  }
 0x28a   : > { %6425 = vmatmul.mubr.bf16.vlgmr.msra.gmra.mrb[36].mxu1 %v9551_v24  ;;  %v8849_v24 = vld [vmem:[#allocation5 + $0xdd0] ss:$12 sps:$4 sm:$0xff]  }
 0x28b   : > { %7802 = vmatpush3.bf16.msra.mxu1 %v8834_v7  ;;  %6464 = vmatprep.mubr.bf16.mxu1 %v9554_v30  ;;  %v8857_v30 = vld [vmem:[#allocation5 + $0x133c] ss:$12 sps:$4 sm:$0xff]  }
 0x28c   : > { %5925 = vmatpush1.bf16.msra.mxu0 %v8830_v5  ;;  %7803 = vmatprep.subr.bf16.mxu1 %v8838_v9  ;;  %v8892_v5 = vld [vmem:[#allocation5 + $0x13e4] ss:$12 sps:$4 sm:$0xff]   ;;  %v8893_v7 = vld [vmem:[#allocation5 + $0x1028] ss:$12 sps:$4 sm:$0xff]  }
 0x28d   : > { %5926 = vmatprep.subr.bf16.mxu0 %v8837_v23  ;;  %v8894_v23 = vld [vmem:[#allocation5 + $0xf68] ss:$12 sps:$4 sm:$0xff]  }
 0x28e   : > { %v8897_v9 = vld [vmem:[#allocation5 + $0x13fc] ss:$12 sps:$4 sm:$0xff]  }
 0x28f   : > { %7804 = vmatpush3.bf16.msra.mxu1 %v8839_v13  ;;  %v8895_v13 = vld [vmem:[#allocation5 + $0x13f8] ss:$12 sps:$4 sm:$0xff]  }
 0x290   : > { %5927 = vmatpush1.bf16.msra.mxu0 %v8835_v12  ;;  %7805 = vmatprep.subr.bf16.mxu1 %v8843_v15  ;;  %v8898_v12 = vld [vmem:[#allocation5 + $0x1040] ss:$12 sps:$4 sm:$0xff]  }
 0x291   : > { %5928 = vmatprep.subr.bf16.mxu0 %v8842_v14  ;;  %v8899_v14 = vld [vmem:[#allocation5 + $0xf80] ss:$12 sps:$4 sm:$0xff]  }
 0x292   : > { %v8902_v15 = vld [vmem:[#allocation5 + $0x1414] ss:$12 sps:$4 sm:$0xff]  }
 0x293   : > { %7806 = vmatpush3.bf16.msra.mxu1 %v8844_v16 }
 0x294   : > { %5929 = vmatpush1.bf16.msra.mxu0 %v8840_v33  ;;  %7807 = vmatprep.subr.bf16.mxu1 %v8848_v18  ;;  %v8903_v33 = vld [vmem:[#allocation5 + $0x1058] ss:$12 sps:$4 sm:$0xff]  }
 0x295   : > { %5930 = vmatprep.subr.bf16.mxu0 %v8847_v42 }
 0x297   : > { %7808 = vmatpush3.bf16.msra.mxu1 %v8849_v24  ;;  %v8900_v24 = vld [vmem:[#allocation5 + $0x1410] ss:$12 sps:$4 sm:$0xff]  }
 0x298   : > { %5931 = vmatpush1.bf16.msra.mxu0 %v8845_v19  ;;  %7809 = vmatprep.subr.bf16.mxu1 %v8853_v21 }
 0x299   : > { %5932 = vmatprep.subr.bf16.mxu0 %v8852_v50  ;;  %v8904_v50 = vld [vmem:[#allocation5 + $0xf98] ss:$12 sps:$4 sm:$0xff]  }
 0x29b   : > { %7810 = vmatpush3.bf16.msra.mxu1 %v8854_v27  ;;  %v8908_v27 = vld [vmem:[#allocation5 + $0x1070] ss:$12 sps:$4 sm:$0xff]  }
 0x29c   : > { %5933 = vmatpush1.bf16.msra.mxu0 %v8850_v26  ;;  %7811 = vmatprep.subr.bf16.mxu1 %v8858_v29  ;;  %v8907_v26 = vld [vmem:[#allocation5 + $0x142c] ss:$12 sps:$4 sm:$0xff]   ;;  %v8905_v29 = vld [vmem:[#allocation5 + $0x1428] ss:$12 sps:$4 sm:$0xff]  }
 0x29d   : > { %5934 = vmatprep.subr.bf16.mxu0 %v8857_v30  ;;  %v7663_v2 = vpop.f32.mrb[12].mxu1 }
 0x29e   : > { %v7664_v41 = vpop.f32.mrb[13].mxu1 }
 0x29f   : > { %v7665_v8 = vadd.f32 %v7664_v41, %v7663_v2  ;;  %v7666_v22 = vpop.f32.mrb[14].mxu1  ;;  %7812 = vmatpush3.bf16.msra.mxu1 %v8859_v32  ;;  %v8912_v32 = vld [vmem:[#allocation5 + $0x1444] ss:$12 sps:$4 sm:$0xff]   ;;  %v8914_v2 = vld [vmem:[#allocation5 + $0x1088] ss:$12 sps:$4 sm:$0xff]  }
 0x2a0   : > { %5935 = vmatpush1.bf16.msra.mxu0 %v8855_v31  ;;  %v7667_v39 = vpop.f32.mrb[15].mxu1  ;;  %7813 = vmatprep.subr.bf16.mxu1 %v8863_v11  ;;  %v8909_v31 = vld [vmem:[#allocation5 + $0xfb0] ss:$12 sps:$4 sm:$0xff]   ;;  %v8910_v11 = vld [vmem:[#allocation5 + $0x1440] ss:$12 sps:$4 sm:$0xff]  }
 0x2a1   : > { %5936 = vmatprep.subr.bf16.mxu0 %v8862_v34  ;;  %v9611_v46 = vadd.f32 %v7665_v8, %v9606_v53  ;;  %v8880_v53 = vld [vmem:[#allocation5 + $0x13b0] ss:$12 sps:$4 sm:$0xff]   ;;  %v8913_v34 = vld [vmem:[#allocation5 + $0x1148] ss:$12 sps:$4 sm:$0xff]   ;;  %v8915_v41 = vld [vmem:[#allocation5 + $0x1458] ss:$12 sps:$4 sm:$0xff]  }
 0x2a2   : > { %v8919_v8 = vld [vmem:[#allocation5 + $0x10a0] ss:$12 sps:$4 sm:$0xff]   ;;  %v8923_v39 = vld [vmem:[#allocation5 + $0x1178] ss:$12 sps:$4 sm:$0xff]  }
 0x2a3   : > { %7814 = vmatpush3.bf16.msra.mxu1 %v8864_v37  ;;  %v8918_v37 = vld [vmem:[#allocation5 + $0x1160] ss:$12 sps:$4 sm:$0xff]  }
 0x2a4   : > { %5937 = vmatpush1.bf16.msra.mxu0 %v8860_v35  ;;  %7815 = vmatprep.subr.bf16.mxu1 %v8868_v44  ;;  %v8917_v35 = vld [vmem:[#allocation5 + $0x145c] ss:$12 sps:$4 sm:$0xff]   ;;  %v8922_v22 = vld [vmem:[#allocation5 + $0x1474] ss:$12 sps:$4 sm:$0xff]   ;;  %v8924_v44 = vld [vmem:[#allocation5 + $0x10b8] ss:$12 sps:$4 sm:$0xff]  }
 0x2a5   : > { %5938 = vmatprep.subr.bf16.mxu0 %v8867_v40  ;;  %v8920_v40 = vld [vmem:[#allocation5 + $0x1470] ss:$12 sps:$4 sm:$0xff]  }
 0x2a7   : > { %7816 = vmatpush3.bf16.msra.mxu1 %v8869_v47  ;;  %v8929_v47 = vld [vmem:[#allocation5 + $0x10d0] ss:$12 sps:$4 sm:$0xff]  }
 0x2a8   : > { %5939 = vmatpush1.bf16.msra.mxu0 %v8865_v28  ;;  %7823 = vmatprep.subr.bf16.mxu1 %v8873_v55  ;;  %v8928_v28 = vld [vmem:[#allocation5 + $0x1190] ss:$12 sps:$4 sm:$0xff]   ;;  %v8930_v55 = vld [vmem:[#allocation5 + $0x14a0] ss:$12 sps:$4 sm:$0xff]  }
 0x2a9   : > { %5949 = vmatprep.subr.bf16.mxu0 %v8872_v52  ;;  %v8932_v52 = vld [vmem:[#allocation5 + $0x14a4] ss:$12 sps:$4 sm:$0xff]  }
 0x2aa   : > { %6465 = vmatmul.mubr.bf16.vlgmr.msra.gmra.mrb[40].mxu1 %v9563_v45  ;;  %v8888_v45 = vld [vmem:[#allocation5 + $0x1010] ss:$12 sps:$4 sm:$0xff]  }
 0x2ab   : > { %5941 = vmatmul.mubr.bf16.vlgmr.msra.gmra.mrb[0].mxu0 %v9615_v56  ;;  %7824 = vmatpush3.bf16.msra.mxu1 %v8874_v58  ;;  %v8935_v58 = vld [vmem:[#allocation5 + $0x14b8] ss:$12 sps:$4 sm:$0xff]  }
 0x2ac   : > { %5950 = vmatpush1.bf16.msra.mxu0 %v8870_v57  ;;  %7825 = vmatprep.subr.bf16.mxu1 %v8878_v51  ;;  %v8938_v57 = vld [vmem:[#allocation5 + $0x11c0] ss:$12 sps:$4 sm:$0xff]  }
 0x2ad   : > { %5951 = vmatprep.subr.bf16.mxu0 %v8877_v59  ;;  %6504 = vmatprep.mubr.bf16.mxu1 %v9566_v49  ;;  %v8890_v49 = vld [vmem:[#allocation5 + $0x13e0] ss:$12 sps:$4 sm:$0xff]  }
 0x2ae   : > { %5981 = vmatprep.mubr.bf16.mxu0 %v9617_v61  ;;  %v8939_v59 = vld [vmem:[#allocation5 + $0x1100] ss:$12 sps:$4 sm:$0xff]  }
 0x2af   : > { %7826 = vmatpush3.bf16.msra.mxu1 %v8879_v10  ;;  %v8942_v51 = vld [vmem:[#allocation5 + $0x14d4] ss:$12 sps:$4 sm:$0xff]  }
 0x2b0   : > { %5952 = vmatpush1.bf16.msra.mxu0 %v8875_v1  ;;  %7827 = vmatprep.subr.bf16.mxu1 %v8883_v63  ;;  %v8943_v1 = vld [vmem:[#allocation5 + $0x11d8] ss:$12 sps:$4 sm:$0xff]  }
 0x2b1   : > { %5953 = vmatprep.subr.bf16.mxu0 %v8882_v62 }
 0x2b3   : > { %7828 = vmatpush3.bf16.msra.mxu1 %v8884_v3  ;;  %v8940_v3 = vld [vmem:[#allocation5 + $0x14d0] ss:$12 sps:$4 sm:$0xff]  }
 0x2b4   : > { %5954 = vmatpush1.bf16.msra.mxu0 %v8880_v53  ;;  %7829 = vmatprep.subr.bf16.mxu1 %v8888_v45 }
 0x2b5   : > { %5955 = vmatprep.subr.bf16.mxu0 %v8887_v36  ;;  %v8944_v36 = vld [vmem:[#allocation5 + $0x1118] ss:$12 sps:$4 sm:$0xff]  }
 0x2b7   : > { %7830 = vmatpush3.bf16.msra.mxu1 %v8889_v6  ;;  %v8948_v6 = vld [vmem:[#allocation5 + $0x11f0] ss:$12 sps:$4 sm:$0xff]  }
 0x2b8   : > { %5956 = vmatpush1.bf16.msra.mxu0 %v8885_v4  ;;  %7831 = vmatprep.subr.bf16.mxu1 %v8893_v7  ;;  %v8947_v4 = vld [vmem:[#allocation5 + $0x14ec] ss:$12 sps:$4 sm:$0xff]   ;;  %v8945_v7 = vld [vmem:[#allocation5 + $0x14e8] ss:$12 sps:$4 sm:$0xff]  }
 0x2b9   : > { %5957 = vmatprep.subr.bf16.mxu0 %v8892_v5 }
 0x2bb   : > { %7832 = vmatpush3.bf16.msra.mxu1 %v8894_v23  ;;  %v241_v23 = vld [vmem:[%s9469_s29 + $0xd0] sm:$0xff] }
 0x2bc   : > { %5958 = vmatpush1.bf16.msra.mxu0 %v8890_v49  ;;  %7833 = vmatprep.subr.bf16.mxu1 %v8898_v12  ;;  %v8949_v49 = vld [vmem:[#allocation5 + $0x1130] ss:$12 sps:$4 sm:$0xff]   ;;  %v8953_v12 = vld [vmem:[#allocation5 + $0x12c8] ss:$12 sps:$4 sm:$0xff]  }
 0x2bd   : > { %5959 = vmatprep.subr.bf16.mxu0 %v8897_v9  ;;  %v7685_v16 = vpop.f32.mrb[16].mxu1  ;;  %v8952_v9 = vld [vmem:[#allocation5 + $0x1504] ss:$12 sps:$4 sm:$0xff]  }
 0x2be   : > { %v7686_v42 = vpop.f32.mrb[17].mxu1 }
 0x2bf   : > { %v7687_v18 = vadd.f32 %v7686_v42, %v7685_v16  ;;  %v7688_v19 = vpop.f32.mrb[18].mxu1  ;;  %7834 = vmatpush3.bf16.msra.mxu1 %v8899_v14  ;;  %v244_v14 = vld [vmem:[%s9469_s29 + $0xe8] sm:$0xff] }
 0x2c0   : > { %5960 = vmatpush1.bf16.msra.mxu0 %v8895_v13  ;;  %v7689_v21 = vpop.f32.mrb[19].mxu1  ;;  %7835 = vmatprep.subr.bf16.mxu1 %v8903_v33  ;;  %v9632_v13 = vpack.c.bf16 %v241_v23, %v241_v23  ;;  %v8954_v33 = vld [vmem:[#allocation5 + $0x1208] ss:$12 sps:$4 sm:$0xff]   ;;  %v8958_v42 = vld [vmem:[#allocation5 + $0x12e0] ss:$12 sps:$4 sm:$0xff]  }
 0x2c1   : > { %5961 = vmatprep.subr.bf16.mxu0 %v8902_v15  ;;  %v9624_v30 = vadd.f32 %v7687_v18, %v9611_v46  ;;  %v8927_v46 = vld [vmem:[#allocation5 + $0x148c] ss:$12 sps:$4 sm:$0xff]   ;;  %v8957_v16 = vld [vmem:[#allocation5 + $0x151c] ss:$12 sps:$4 sm:$0xff]   ;;  %v9635_v18 = vpack.c.bf16 %v244_v14, %v244_v14 }
 0x2c2   : > { %v8950_v15 = vld [vmem:[#allocation5 + $0x1500] ss:$12 sps:$4 sm:$0xff]   ;;  %v8955_v19 = vld [vmem:[#allocation5 + $0x1518] ss:$12 sps:$4 sm:$0xff]  }
 0x2c3   : > { %7836 = vmatpush3.bf16.msra.mxu1 %v8904_v50  ;;  %v8962_v50 = vld [vmem:[#allocation5 + $0x1534] ss:$12 sps:$4 sm:$0xff]   ;;  %v8963_v21 = vld [vmem:[#allocation5 + $0x12f8] ss:$12 sps:$4 sm:$0xff]  }
 0x2c4   : > { %5962 = vmatpush1.bf16.msra.mxu0 %v8900_v24  ;;  %7837 = vmatprep.subr.bf16.mxu1 %v8908_v27  ;;  %v8959_v24 = vld [vmem:[#allocation5 + $0x1220] ss:$12 sps:$4 sm:$0xff]   ;;  %v8964_v27 = vld [vmem:[#allocation5 + $0x1238] ss:$12 sps:$4 sm:$0xff]  }
 0x2c5   : > { %5963 = vmatprep.subr.bf16.mxu0 %v8907_v26  ;;  %v8960_v26 = vld [vmem:[#allocation5 + $0x1530] ss:$12 sps:$4 sm:$0xff]   ;;  %v9010_v23 = vld [vmem:[#allocation5 + $0x1620] ss:$12 sps:$4 sm:$0xff]   ;;  %v9015_v14 = vld [vmem:[#allocation5 + $0x1638] ss:$12 sps:$4 sm:$0xff]  }
 0x2c7   : > { %7838 = vmatpush3.bf16.msra.mxu1 %v8909_v31  ;;  %v8969_v31 = vld [vmem:[#allocation5 + $0x1250] ss:$12 sps:$4 sm:$0xff]  }
 0x2c8   : > { %5964 = vmatpush1.bf16.msra.mxu0 %v8905_v29  ;;  %7845 = vmatprep.subr.bf16.mxu1 %v8913_v34  ;;  %v8965_v29 = vld [vmem:[#allocation5 + $0x1548] ss:$12 sps:$4 sm:$0xff]  }
 0x2c9   : > { %5965 = vmatprep.subr.bf16.mxu0 %v8912_v32  ;;  %v8972_v32 = vld [vmem:[#allocation5 + $0x1564] ss:$12 sps:$4 sm:$0xff]   ;;  %v8973_v34 = vld [vmem:[#allocation5 + $0x1328] ss:$12 sps:$4 sm:$0xff]  }
 0x2ca   : > { %6505 = vmatmul.mubr.bf16.vlgmr.msra.gmra.mrb[44].mxu1 %v9576_v60  ;;  %v8925_v60 = vld [vmem:[#allocation5 + $0x1488] ss:$12 sps:$4 sm:$0xff]  }
 0x2cb   : > { %7846 = vmatpush3.bf16.msra.mxu1 %v8914_v2  ;;  %6544 = vmatprep.mubr.bf16.mxu1 %v9578_v0  ;;  %v8934_v0 = vld [vmem:[#allocation5 + $0x10e8] ss:$12 sps:$4 sm:$0xff]  }
 0x2cc   : > { %5966 = vmatpush1.bf16.msra.mxu0 %v8910_v11  ;;  %7847 = vmatprep.subr.bf16.mxu1 %v8918_v37  ;;  %v8974_v11 = vld [vmem:[#allocation5 + $0x1268] ss:$12 sps:$4 sm:$0xff]   ;;  %v8975_v37 = vld [vmem:[#allocation5 + $0x1578] ss:$12 sps:$4 sm:$0xff]  }
 0x2cd   : > { %5967 = vmatprep.subr.bf16.mxu0 %v8917_v35  ;;  %v8977_v2 = vld [vmem:[#allocation5 + $0x157c] ss:$12 sps:$4 sm:$0xff]   ;;  %v8978_v35 = vld [vmem:[#allocation5 + $0x1340] ss:$12 sps:$4 sm:$0xff]  }
 0x2cf   : > { %7848 = vmatpush3.bf16.msra.mxu1 %v8919_v8  ;;  %v8982_v8 = vld [vmem:[#allocation5 + $0x1594] ss:$12 sps:$4 sm:$0xff]  }
 0x2d0   : > { %5968 = vmatpush1.bf16.msra.mxu0 %v8915_v41  ;;  %7849 = vmatprep.subr.bf16.mxu1 %v8923_v39  ;;  %v8979_v41 = vld [vmem:[#allocation5 + $0x1280] ss:$12 sps:$4 sm:$0xff]  }
 0x2d1   : > { %5969 = vmatprep.subr.bf16.mxu0 %v8922_v22  ;;  %v8983_v22 = vld [vmem:[#allocation5 + $0x1358] ss:$12 sps:$4 sm:$0xff]  }
 0x2d3   : > { %7850 = vmatpush3.bf16.msra.mxu1 %v8924_v44 }
 0x2d4   : > { %5970 = vmatpush1.bf16.msra.mxu0 %v8920_v40  ;;  %7851 = vmatprep.subr.bf16.mxu1 %v8928_v28  ;;  %v8980_v28 = vld [vmem:[#allocation5 + $0x1590] ss:$12 sps:$4 sm:$0xff]  }
 0x2d5   : > { %5971 = vmatprep.subr.bf16.mxu0 %v8927_v46 }
 0x2d7   : > { %7852 = vmatpush3.bf16.msra.mxu1 %v8929_v47 }
 0x2d8   : > { %5972 = vmatpush1.bf16.msra.mxu0 %v8925_v60  ;;  %7853 = vmatprep.subr.bf16.mxu1 %v8933_v54  ;;  %v8984_v60 = vld [vmem:[#allocation5 + $0x1298] ss:$12 sps:$4 sm:$0xff]   ;;  %v8988_v54 = vld [vmem:[#allocation5 + $0x1370] ss:$12 sps:$4 sm:$0xff]  }
 0x2d9   : > { %5973 = vmatprep.subr.bf16.mxu0 %v8932_v52  ;;  %v8987_v52 = vld [vmem:[#allocation5 + $0x15ac] ss:$12 sps:$4 sm:$0xff]  }
 0x2db   : > { %7854 = vmatpush3.bf16.msra.mxu1 %v8934_v0  ;;  %v8985_v0 = vld [vmem:[#allocation5 + $0x15a8] ss:$12 sps:$4 sm:$0xff]  }
 0x2dc   : > { %5974 = vmatpush1.bf16.msra.mxu0 %v8930_v55  ;;  %7855 = vmatprep.subr.bf16.mxu1 %v8938_v57  ;;  %v8992_v57 = vld [vmem:[#allocation5 + $0x15c4] ss:$12 sps:$4 sm:$0xff]  }
 0x2dd   : > { %5975 = vmatprep.subr.bf16.mxu0 %v8937_v43  ;;  %v7707_v10 = vpop.f32.mrb[20].mxu1  ;;  %v8989_v43 = vld [vmem:[#allocation5 + $0x12b0] ss:$12 sps:$4 sm:$0xff]  }
 0x2de   : > { %v7708_v62 = vpop.f32.mrb[21].mxu1 }
 0x2df   : > { %v7709_v63 = vadd.f32 %v7708_v62, %v7707_v10  ;;  %v7710_v53 = vpop.f32.mrb[22].mxu1  ;;  %7856 = vmatpush3.bf16.msra.mxu1 %v8939_v59  ;;  %v8990_v59 = vld [vmem:[#allocation5 + $0x15c0] ss:$12 sps:$4 sm:$0xff]   ;;  %v8995_v62 = vld [vmem:[#allocation5 + $0x15d8] ss:$12 sps:$4 sm:$0xff]  }
 0x2e0   : > { %5976 = vmatpush1.bf16.msra.mxu0 %v8935_v58  ;;  %v7711_v45 = vpop.f32.mrb[23].mxu1  ;;  %7857 = vmatprep.subr.bf16.mxu1 %v8943_v1  ;;  %v8993_v58 = vld [vmem:[#allocation5 + $0x1448] ss:$12 sps:$4 sm:$0xff]   ;;  %v8998_v10 = vld [vmem:[#allocation5 + $0x1460] ss:$12 sps:$4 sm:$0xff]  }
 0x2e1   : > { %5977 = vmatprep.subr.bf16.mxu0 %v8942_v51  ;;  %v9629_v5 = vadd.f32 %v7709_v63, %v9624_v30  ;;  %v8968_v30 = vld [vmem:[#allocation5 + $0x1310] ss:$12 sps:$4 sm:$0xff]   ;;  %v8994_v51 = vld [vmem:[#allocation5 + $0x1388] ss:$12 sps:$4 sm:$0xff]   ;;  %v8999_v63 = vld [vmem:[#allocation5 + $0x13a0] ss:$12 sps:$4 sm:$0xff]  }
 0x2e2   : > { %v8997_v1 = vld [vmem:[#allocation5 + $0x15dc] ss:$12 sps:$4 sm:$0xff]   ;;  %v9002_v53 = vld [vmem:[#allocation5 + $0x15f4] ss:$12 sps:$4 sm:$0xff]   ;;  %v9004_v45 = vld [vmem:[#allocation5 + $0x13b8] ss:$12 sps:$4 sm:$0xff]  }
 0x2e3   : > { %7858 = vmatpush3.bf16.msra.mxu1 %v8944_v36  ;;  %v9000_v36 = vld [vmem:[#allocation5 + $0x15f0] ss:$12 sps:$4 sm:$0xff]  }
 0x2e4   : > { %5978 = vmatpush1.bf16.msra.mxu0 %v8940_v3  ;;  %7859 = vmatprep.subr.bf16.mxu1 %v8948_v6  ;;  %v9003_v3 = vld [vmem:[#allocation5 + $0x1478] ss:$12 sps:$4 sm:$0xff]   ;;  %v9008_v6 = vld [vmem:[#allocation5 + $0x1490] ss:$12 sps:$4 sm:$0xff]  }
 0x2e5   : > { %5979 = vmatprep.subr.bf16.mxu0 %v8947_v4  ;;  %v9007_v4 = vld [vmem:[#allocation5 + $0x160c] ss:$12 sps:$4 sm:$0xff]  }
 0x2e7   : > { %7860 = vmatpush3.bf16.msra.mxu1 %v8949_v49  ;;  %v9013_v49 = vld [vmem:[#allocation5 + $0x14a8] ss:$12 sps:$4 sm:$0xff]  }
 0x2e8   : > { %5980 = vmatpush1.bf16.msra.mxu0 %v8945_v7  ;;  %7867 = vmatprep.subr.bf16.mxu1 %v8953_v12  ;;  %v9012_v7 = vld [vmem:[#allocation5 + $0x1624] ss:$12 sps:$4 sm:$0xff]   ;;  %v9018_v12 = vld [vmem:[#allocation5 + $0x14c0] ss:$12 sps:$4 sm:$0xff]  }
 0x2e9   : > { %5990 = vmatprep.subr.bf16.mxu0 %v8952_v9  ;;  %v9017_v9 = vld [vmem:[#allocation5 + $0x163c] ss:$12 sps:$4 sm:$0xff]  }
 0x2ea   : > { %6545 = vmatmul.mubr.bf16.vlgmr.msra.gmra.mrb[48].mxu1 %v9594_v17  ;;  %v8967_v17 = vld [vmem:[#allocation5 + $0x154c] ss:$12 sps:$4 sm:$0xff]  }
 0x2eb   : > { %5982 = vmatmul.mubr.bf16.vlgmr.msra.gmra.mrb[0].mxu0 %v9632_v13  ;;  %7868 = vmatpush3.bf16.msra.mxu1 %v8954_v33  ;;  %v9022_v33 = vld [vmem:[#allocation5 + $0x1654] ss:$12 sps:$4 sm:$0xff]  }
 0x2ec   : > { %5991 = vmatpush1.bf16.msra.mxu0 %v8950_v15  ;;  %7869 = vmatprep.subr.bf16.mxu1 %v8958_v42  ;;  %v9019_v15 = vld [vmem:[#allocation5 + $0x1400] ss:$12 sps:$4 sm:$0xff]  }
 0x2ed   : > { %5992 = vmatprep.subr.bf16.mxu0 %v8957_v16  ;;  %6584 = vmatprep.mubr.bf16.mxu1 %v9596_v48  ;;  %v8970_v48 = vld [vmem:[#allocation5 + $0x1560] ss:$12 sps:$4 sm:$0xff]   ;;  %v9023_v16 = vld [vmem:[#allocation5 + $0x14d8] ss:$12 sps:$4 sm:$0xff]  }
 0x2ee   : > { %6022 = vmatprep.mubr.bf16.mxu0 %v9635_v18 }
 0x2ef   : > { %7870 = vmatpush3.bf16.msra.mxu1 %v8959_v24 }
 0x2f0   : > { %5993 = vmatpush1.bf16.msra.mxu0 %v8955_v19  ;;  %7871 = vmatprep.subr.bf16.mxu1 %v8963_v21  ;;  %v9020_v21 = vld [vmem:[#allocation5 + $0x1650] ss:$12 sps:$4 sm:$0xff]  }
 0x2f1   : > { %5994 = vmatprep.subr.bf16.mxu0 %v8962_v50 }
 0x2f3   : > { %7872 = vmatpush3.bf16.msra.mxu1 %v8964_v27 }
 0x2f4   : > { %5995 = vmatpush1.bf16.msra.mxu0 %v8960_v26  ;;  %7873 = vmatprep.subr.bf16.mxu1 %v8968_v30  ;;  %v9024_v26 = vld [vmem:[#allocation5 + $0x1418] ss:$12 sps:$4 sm:$0xff]   ;;  %v9028_v30 = vld [vmem:[#allocation5 + $0x14f0] ss:$12 sps:$4 sm:$0xff]  }
 0x2f5   : > { %5996 = vmatprep.subr.bf16.mxu0 %v8967_v17  ;;  %v9027_v17 = vld [vmem:[#allocation5 + $0x166c] ss:$12 sps:$4 sm:$0xff]  }
 0x2f7   : > { %7874 = vmatpush3.bf16.msra.mxu1 %v8969_v31  ;;  %v9025_v31 = vld [vmem:[#allocation5 + $0x1668] ss:$12 sps:$4 sm:$0xff]  }
 0x2f8   : > { %5997 = vmatpush1.bf16.msra.mxu0 %v8965_v29  ;;  %7875 = vmatprep.subr.bf16.mxu1 %v8973_v34  ;;  %v243_v34 = vld [vmem:[%s9469_s29 + $0xe0] sm:$0xff] }
 0x2f9   : > { %5998 = vmatprep.subr.bf16.mxu0 %v8972_v32  ;;  %v9029_v32 = vld [vmem:[#allocation5 + $0x1430] ss:$12 sps:$4 sm:$0xff]  }
 0x2fb   : > { %7876 = vmatpush3.bf16.msra.mxu1 %v8974_v11  ;;  %v9033_v11 = vld [vmem:[#allocation5 + $0x15c8] ss:$12 sps:$4 sm:$0xff]  }
 0x2fc   : > { %5999 = vmatpush1.bf16.msra.mxu0 %v8970_v48  ;;  %7877 = vmatprep.subr.bf16.mxu1 %v8978_v35  ;;  %v9032_v48 = vld [vmem:[#allocation5 + $0x1684] ss:$12 sps:$4 sm:$0xff]   ;;  %v246_v35 = vld [vmem:[%s9469_s29 + $0xf8] sm:$0xff] }
 0x2fd   : > { %6000 = vmatprep.subr.bf16.mxu0 %v8977_v2  ;;  %v7729_v39 = vpop.f32.mrb[24].mxu1  ;;  %v9650_v2 = vpack.c.bf16 %v243_v34, %v243_v34  ;;  %v9094_v34 = vld [vmem:[#allocation5 + $0x16e8] ss:$12 sps:$4 sm:$0xff]  }
 0x2fe   : > { %v7730_v40 = vpop.f32.mrb[25].mxu1 }
 0x2ff   : > { %v7731_v44 = vadd.f32 %v7730_v40, %v7729_v39  ;;  %v7732_v46 = vpop.f32.mrb[26].mxu1  ;;  %7878 = vmatpush3.bf16.msra.mxu1 %v8979_v41  ;;  %v9034_v41 = vld [vmem:[#allocation5 + $0x1508] ss:$12 sps:$4 sm:$0xff]   ;;  %v9653_v39 = vpack.c.bf16 %v246_v35, %v246_v35  ;;  %v9035_v40 = vld [vmem:[#allocation5 + $0x1698] ss:$12 sps:$4 sm:$0xff]  }
 0x300   : > { %6001 = vmatpush1.bf16.msra.mxu0 %v8975_v37  ;;  %v7733_v47 = vpop.f32.mrb[27].mxu1  ;;  %7879 = vmatprep.subr.bf16.mxu1 %v8983_v22  ;;  %v9030_v37 = vld [vmem:[#allocation5 + $0x1680] ss:$12 sps:$4 sm:$0xff]  }
 0x301   : > { %6002 = vmatprep.subr.bf16.mxu0 %v8982_v8  ;;  %v9642_v55 = vadd.f32 %v7731_v44, %v9629_v5  ;;  %v9009_v5 = vld [vmem:[#allocation5 + $0x13d0] ss:$12 sps:$4 sm:$0xff]   ;;  %v9038_v22 = vld [vmem:[#allocation5 + $0x15e0] ss:$12 sps:$4 sm:$0xff]   ;;  %v9044_v47 = vld [vmem:[#allocation5 + $0x1538] ss:$12 sps:$4 sm:$0xff]  }
 0x302   : > { %v9037_v8 = vld [vmem:[#allocation5 + $0x169c] ss:$12 sps:$4 sm:$0xff]   ;;  %v9039_v44 = vld [vmem:[#allocation5 + $0x1520] ss:$12 sps:$4 sm:$0xff]  }
 0x303   : > { %7880 = vmatpush3.bf16.msra.mxu1 %v8984_v60  ;;  %v9042_v46 = vld [vmem:[#allocation5 + $0x16b4] ss:$12 sps:$4 sm:$0xff]   ;;  %v9040_v60 = vld [vmem:[#allocation5 + $0x16b0] ss:$12 sps:$4 sm:$0xff]  }
 0x304   : > { %6003 = vmatpush1.bf16.msra.mxu0 %v8980_v28  ;;  %7881 = vmatprep.subr.bf16.mxu1 %v8988_v54  ;;  %v9043_v28 = vld [vmem:[#allocation5 + $0x15f8] ss:$12 sps:$4 sm:$0xff]   ;;  %v9045_v54 = vld [vmem:[#allocation5 + $0x16c8] ss:$12 sps:$4 sm:$0xff]   ;;  %v9099_v35 = vld [vmem:[#allocation5 + $0x1700] ss:$12 sps:$4 sm:$0xff]  }
 0x305   : > { %6004 = vmatprep.subr.bf16.mxu0 %v8987_v52  ;;  %v9048_v52 = vld [vmem:[#allocation5 + $0x1610] ss:$12 sps:$4 sm:$0xff]  }
 0x307   : > { %7882 = vmatpush3.bf16.msra.mxu1 %v8989_v43  ;;  %v9053_v43 = vld [vmem:[#allocation5 + $0x1628] ss:$12 sps:$4 sm:$0xff]  }
 0x308   : > { %6005 = vmatpush1.bf16.msra.mxu0 %v8985_v0  ;;  %7889 = vmatprep.subr.bf16.mxu1 %v8993_v58  ;;  %v9052_v0 = vld [vmem:[#allocation5 + $0x16e4] ss:$12 sps:$4 sm:$0xff]   ;;  %v9057_v58 = vld [vmem:[#allocation5 + $0x16fc] ss:$12 sps:$4 sm:$0xff]  }
 0x309   : > { %6006 = vmatprep.subr.bf16.mxu0 %v8992_v57  ;;  %v9054_v57 = vld [vmem:[#allocation5 + $0x1568] ss:$12 sps:$4 sm:$0xff]  }
 0x30a   : > { %6585 = vmatmul.mubr.bf16.vlgmr.msra.gmra.mrb[52].mxu1 %v9615_v56  ;;  %v9005_v56 = vld [vmem:[#allocation5 + $0x1608] ss:$12 sps:$4 sm:$0xff]  }
 0x30b   : > { %7890 = vmatpush3.bf16.msra.mxu1 %v8994_v51  ;;  %6624 = vmatprep.mubr.bf16.mxu1 %v9617_v61  ;;  %v9014_v61 = vld [vmem:[#allocation5 + $0x13e8] ss:$12 sps:$4 sm:$0xff]   ;;  %v9055_v51 = vld [vmem:[#allocation5 + $0x16f8] ss:$12 sps:$4 sm:$0xff]  }
 0x30c   : > { %6007 = vmatpush1.bf16.msra.mxu0 %v8990_v59  ;;  %7891 = vmatprep.subr.bf16.mxu1 %v8998_v10  ;;  %v9058_v59 = vld [vmem:[#allocation5 + $0x1640] ss:$12 sps:$4 sm:$0xff]  }
 0x30d   : > { %6008 = vmatprep.subr.bf16.mxu0 %v8997_v1  ;;  %v9059_v1 = vld [vmem:[#allocation5 + $0x1580] ss:$12 sps:$4 sm:$0xff]  }
 0x30e   : > { %v9062_v10 = vld [vmem:[#allocation5 + $0x1714] ss:$12 sps:$4 sm:$0xff]  }
 0x30f   : > { %7892 = vmatpush3.bf16.msra.mxu1 %v8999_v63 }
 0x310   : > { %6009 = vmatpush1.bf16.msra.mxu0 %v8995_v62  ;;  %7893 = vmatprep.subr.bf16.mxu1 %v9003_v3  ;;  %v9063_v62 = vld [vmem:[#allocation5 + $0x1658] ss:$12 sps:$4 sm:$0xff]  }
 0x311   : > { %6010 = vmatprep.subr.bf16.mxu0 %v9002_v53 }
 0x313   : > { %7894 = vmatpush3.bf16.msra.mxu1 %v9004_v45  ;;  %v9060_v45 = vld [vmem:[#allocation5 + $0x1710] ss:$12 sps:$4 sm:$0xff]  }
 0x314   : > { %6011 = vmatpush1.bf16.msra.mxu0 %v9000_v36  ;;  %7895 = vmatprep.subr.bf16.mxu1 %v9008_v6 }
 0x315   : > { %6012 = vmatprep.subr.bf16.mxu0 %v9007_v4  ;;  %v9064_v4 = vld [vmem:[#allocation5 + $0x1598] ss:$12 sps:$4 sm:$0xff]  }
 0x317   : > { %7896 = vmatpush3.bf16.msra.mxu1 %v9009_v5  ;;  %v9068_v5 = vld [vmem:[#allocation5 + $0x1670] ss:$12 sps:$4 sm:$0xff]  }
 0x318   : > { %6013 = vmatpush1.bf16.msra.mxu0 %v9005_v56  ;;  %7897 = vmatprep.subr.bf16.mxu1 %v9013_v49  ;;  %v9067_v56 = vld [vmem:[#allocation5 + $0x172c] ss:$12 sps:$4 sm:$0xff]   ;;  %v9065_v49 = vld [vmem:[#allocation5 + $0x1728] ss:$12 sps:$4 sm:$0xff]  }
 0x319   : > { %6014 = vmatprep.subr.bf16.mxu0 %v9012_v7 }
 0x31b   : > { %7898 = vmatpush3.bf16.msra.mxu1 %v9014_v61  ;;  %v9072_v61 = vld [vmem:[#allocation5 + $0x1744] ss:$12 sps:$4 sm:$0xff]  }
 0x31c   : > { %6015 = vmatpush1.bf16.msra.mxu0 %v9010_v23  ;;  %7899 = vmatprep.subr.bf16.mxu1 %v9018_v12  ;;  %v9069_v23 = vld [vmem:[#allocation5 + $0x15b0] ss:$12 sps:$4 sm:$0xff]   ;;  %v9070_v12 = vld [vmem:[#allocation5 + $0x1740] ss:$12 sps:$4 sm:$0xff]  }
 0x31d   : > { %6016 = vmatprep.subr.bf16.mxu0 %v9017_v9  ;;  %v7751_v42 = vpop.f32.mrb[28].mxu1  ;;  %v9073_v9 = vld [vmem:[#allocation5 + $0x1748] ss:$12 sps:$4 sm:$0xff]  }
 0x31e   : > { %v7752_v19 = vpop.f32.mrb[29].mxu1 }
 0x31f   : > { %v7753_v24 = vadd.f32 %v7752_v19, %v7751_v42  ;;  %v7754_v50 = vpop.f32.mrb[30].mxu1  ;;  %7900 = vmatpush3.bf16.msra.mxu1 %v9019_v15  ;;  %v9077_v15 = vld [vmem:[#allocation5 + $0x175c] ss:$12 sps:$4 sm:$0xff]   ;;  %v9079_v42 = vld [vmem:[#allocation5 + $0x16a0] ss:$12 sps:$4 sm:$0xff]  }
 0x320   : > { %6017 = vmatpush1.bf16.msra.mxu0 %v9015_v14  ;;  %v7755_v27 = vpop.f32.mrb[31].mxu1  ;;  %7901 = vmatprep.subr.bf16.mxu1 %v9023_v16  ;;  %v9074_v14 = vld [vmem:[#allocation5 + $0x1688] ss:$12 sps:$4 sm:$0xff]   ;;  %v9075_v16 = vld [vmem:[#allocation5 + $0x1758] ss:$12 sps:$4 sm:$0xff]  }
 0x321   : > { %6018 = vmatprep.subr.bf16.mxu0 %v9022_v33  ;;  %v9647_v29 = vadd.f32 %v7753_v24, %v9642_v55  ;;  %v9049_v55 = vld [vmem:[#allocation5 + $0x1550] ss:$12 sps:$4 sm:$0xff]   ;;  %v9078_v33 = vld [vmem:[#allocation5 + $0x1760] ss:$12 sps:$4 sm:$0xff]   ;;  %v9083_v24 = vld [vmem:[#allocation5 + $0x1778] ss:$12 sps:$4 sm:$0xff]  }
 0x322   : > { %v9082_v19 = vld [vmem:[#allocation5 + $0x1774] ss:$12 sps:$4 sm:$0xff]   ;;  %v9080_v50 = vld [vmem:[#allocation5 + $0x1770] ss:$12 sps:$4 sm:$0xff]  }
 0x323   : > { %7902 = vmatpush3.bf16.msra.mxu1 %v9024_v26  ;;  %v9087_v26 = vld [vmem:[#allocation5 + $0x178c] ss:$12 sps:$4 sm:$0xff]   ;;  %v9088_v27 = vld [vmem:[#allocation5 + $0x1790] ss:$12 sps:$4 sm:$0xff]  }
 0x324   : > { %6019 = vmatpush1.bf16.msra.mxu0 %v9020_v21  ;;  %7903 = vmatprep.subr.bf16.mxu1 %v9028_v30  ;;  %v9084_v21 = vld [vmem:[#allocation5 + $0x16b8] ss:$12 sps:$4 sm:$0xff]   ;;  %v9089_v30 = vld [vmem:[#allocation5 + $0x16d0] ss:$12 sps:$4 sm:$0xff]  }
 0x325   : > { %6020 = vmatprep.subr.bf16.mxu0 %v9027_v17  ;;  %v9085_v17 = vld [vmem:[#allocation5 + $0x1788] ss:$12 sps:$4 sm:$0xff]  }
 0x327   : > { %7904 = vmatpush3.bf16.msra.mxu1 %v9029_v32  ;;  %v9090_v32 = vld [vmem:[#allocation5 + $0x17a0] ss:$12 sps:$4 sm:$0xff]  }
 0x328   : > { %6021 = vmatpush1.bf16.msra.mxu0 %v9025_v31  ;;  %7911 = vmatprep.subr.bf16.mxu1 %v9033_v11  ;;  %v9093_v31 = vld [vmem:[#allocation5 + $0x17a8] ss:$12 sps:$4 sm:$0xff]   ;;  %v9098_v11 = vld [vmem:[#allocation5 + $0x17c0] ss:$12 sps:$4 sm:$0xff]  }
 0x329   : > { %6031 = vmatprep.subr.bf16.mxu0 %v9032_v48  ;;  %v9097_v48 = vld [vmem:[#allocation5 + $0x17bc] ss:$12 sps:$4 sm:$0xff]  }
 0x32a   : > { %6625 = vmatmul.mubr.bf16.vlgmr.msra.gmra.mrb[56].mxu1 %v9632_v13  ;;  %v9047_v13 = vld [vmem:[#allocation5 + $0x16cc] ss:$12 sps:$4 sm:$0xff]  }
 0x32b   : > { %6023 = vmatmul.mubr.bf16.vlgmr.msra.gmra.mrb[0].mxu0 %v9650_v2  ;;  %7912 = vmatpush3.bf16.msra.mxu1 %v9034_v41  ;;  %v9103_v41 = vld [vmem:[#allocation5 + $0x17d8] ss:$12 sps:$4 sm:$0xff]  }
 0x32c   : > { %6032 = vmatpush1.bf16.msra.mxu0 %v9030_v37  ;;  %7913 = vmatprep.subr.bf16.mxu1 %v9038_v22  ;;  %v9102_v37 = vld [vmem:[#allocation5 + $0x17d4] ss:$12 sps:$4 sm:$0xff]  }
 0x32d   : > { %6033 = vmatprep.subr.bf16.mxu0 %v9037_v8  ;;  %6664 = vmatprep.mubr.bf16.mxu1 %v9635_v18  ;;  %v9050_v18 = vld [vmem:[#allocation5 + $0x16e0] ss:$12 sps:$4 sm:$0xff]  }
 0x32e   : > { %6063 = vmatprep.mubr.bf16.mxu0 %v9653_v39 }
 0x32f   : > { %7914 = vmatpush3.bf16.msra.mxu1 %v9039_v44  ;;  %v9100_v44 = vld [vmem:[#allocation5 + $0x17d0] ss:$12 sps:$4 sm:$0xff]  }
 0x330   : > { %6034 = vmatpush1.bf16.msra.mxu0 %v9035_v40  ;;  %7915 = vmatprep.subr.bf16.mxu1 %v9043_v28 }
 0x331   : > { %6035 = vmatprep.subr.bf16.mxu0 %v9042_v46  ;;  %v9104_v46 = vld [vmem:[#allocation5 + $0x1718] ss:$12 sps:$4 sm:$0xff]  }
 0x333   : > { %7916 = vmatpush3.bf16.msra.mxu1 %v9044_v47  ;;  %v9108_v47 = vld [vmem:[#allocation5 + $0x17f0] ss:$12 sps:$4 sm:$0xff]  }
 0x334   : > { %6036 = vmatpush1.bf16.msra.mxu0 %v9040_v60  ;;  %7917 = vmatprep.subr.bf16.mxu1 %v9048_v52  ;;  %v9107_v60 = vld [vmem:[#allocation5 + $0x17ec] ss:$12 sps:$4 sm:$0xff]   ;;  %v9105_v52 = vld [vmem:[#allocation5 + $0x17e8] ss:$12 sps:$4 sm:$0xff]  }
 0x335   : > { %6037 = vmatprep.subr.bf16.mxu0 %v9047_v13 }
 0x337   : > { %7918 = vmatpush3.bf16.msra.mxu1 %v9049_v55  ;;  %v245_v55 = vld [vmem:[%s9469_s29 + $0xf0] sm:$0xff] }
 0x338   : > { %6038 = vmatpush1.bf16.msra.mxu0 %v9045_v54  ;;  %7919 = vmatprep.subr.bf16.mxu1 %v9053_v43  ;;  %v9109_v54 = vld [vmem:[#allocation5 + $0x1730] ss:$12 sps:$4 sm:$0xff]  }
 0x339   : > { %6039 = vmatprep.subr.bf16.mxu0 %v9052_v0  ;;  %v277_v0 = vpack.c.bf16 %v245_v55, %v245_v55 }
 0x33b   : > { %7920 = vmatpush3.bf16.msra.mxu1 %v9054_v57 }
 0x33c   : > { %6040 = vmatpush1.bf16.msra.mxu0 %v9050_v18  ;;  %7921 = vmatprep.subr.bf16.mxu1 %v9058_v59 }
 0x33d   : > { %6041 = vmatprep.subr.bf16.mxu0 %v9057_v58  ;;  %v7773_v63 = vpop.f32.mrb[32].mxu1 }
 0x33e   : > { %v7774_v53 = vpop.f32.mrb[33].mxu1 }
 0x33f   : > { %v7775_v3 = vadd.f32 %v7774_v53, %v7773_v63  ;;  %v7776_v36 = vpop.f32.mrb[34].mxu1  ;;  %7922 = vmatpush3.bf16.msra.mxu1 %v9059_v1 }
 0x340   : > { %6042 = vmatpush1.bf16.msra.mxu0 %v9055_v51  ;;  %v7777_v6 = vpop.f32.mrb[35].mxu1  ;;  %7923 = vmatprep.subr.bf16.mxu1 %v9063_v62 }
 0x341   : > { %6043 = vmatprep.subr.bf16.mxu0 %v9062_v10  ;;  %v9660_v7 = vadd.f32 %v7775_v3, %v9647_v29  ;;  %v9092_v29 = vld [vmem:[#allocation5 + $0x17a4] ss:$12 sps:$4 sm:$0xff]  }
 0x343   : > { %7924 = vmatpush3.bf16.msra.mxu1 %v9064_v4 }
 0x344   : > { %6044 = vmatpush1.bf16.msra.mxu0 %v9060_v45  ;;  %7925 = vmatprep.subr.bf16.mxu1 %v9068_v5 }
 0x345   : > { %6045 = vmatprep.subr.bf16.mxu0 %v9067_v56 }
 0x347   : > { %7926 = vmatpush3.bf16.msra.mxu1 %v9069_v23 }
 0x348   : > { %6046 = vmatpush1.bf16.msra.mxu0 %v9065_v49  ;;  %7933 = vmatprep.subr.bf16.mxu1 %v9073_v9 }
 0x349   : > { %6047 = vmatprep.subr.bf16.mxu0 %v9072_v61 }
 0x34a   : > { %6665 = vmatmul.mubr.bf16.vlgmr.msra.gmra.mrb[60].mxu1 %v9650_v2  ;;  %v9095_v2 = vld [vmem:[#allocation5 + $0x17b8] ss:$12 sps:$4 sm:$0xff]  }
 0x34b   : > { %7934 = vmatpush3.bf16.msra.mxu1 %v9074_v14  ;;  %6704 = vmatprep.mubr.bf16.mxu1 %v9653_v39 }
 0x34c   : > { %6048 = vmatpush1.bf16.msra.mxu0 %v9070_v12  ;;  %7935 = vmatprep.subr.bf16.mxu1 %v9078_v33 }
 0x34d   : > { %6049 = vmatprep.subr.bf16.mxu0 %v9077_v15 }
 0x34f   : > { %7936 = vmatpush3.bf16.msra.mxu1 %v9079_v42 }
 0x350   : > { %6050 = vmatpush1.bf16.msra.mxu0 %v9075_v16  ;;  %7937 = vmatprep.subr.bf16.mxu1 %v9083_v24 }
 0x351   : > { %6051 = vmatprep.subr.bf16.mxu0 %v9082_v19 }
 0x353   : > { %7938 = vmatpush3.bf16.msra.mxu1 %v9084_v21 }
 0x354   : > { %6052 = vmatpush1.bf16.msra.mxu0 %v9080_v50  ;;  %7939 = vmatprep.subr.bf16.mxu1 %v9088_v27 }
 0x355   : > { %6053 = vmatprep.subr.bf16.mxu0 %v9087_v26 }
 0x357   : > { %7940 = vmatpush3.bf16.msra.mxu1 %v9089_v30  ;;  %v1307_v30 = vsub.s32 0, %v9602_v38 }
 0x358   : > { %6054 = vmatpush1.bf16.msra.mxu0 %v9085_v17  ;;  %7941 = vmatprep.subr.bf16.mxu1 %v9093_v31  ;;  %v9110_v31 = vld [vmem:[#allocation7] sm:$0x7] }
 0x359   : > { %6055 = vmatprep.subr.bf16.mxu0 %v9092_v29  ;;  %v1311_v29 = vsub.s32 1, %v9602_v38 }
 0x35b   : > { %7942 = vmatpush3.bf16.msra.mxu1 %v9094_v34  ;;  %v1312_v34 = vrot.slane %v9110_v31, %v1311_v29 }
 0x35c   : > { %6056 = vmatpush1.bf16.msra.mxu0 %v9090_v32  ;;  %7943 = vmatprep.subr.bf16.mxu1 %v9098_v11  ;;  %v1308_v32 = vrot.slane %v9110_v31, %v1307_v30 }
 0x35d   : > { %6057 = vmatprep.subr.bf16.mxu0 %v9097_v48  ;;  %v7795_v8 = vpop.f32.mrb[36].mxu1  ;;  %v7957_v11 = vadd.f32 %v9586_v25, %v1312_v34 }
 0x35e   : > { %v7796_v22 = vpop.f32.mrb[37].mxu1  ;;  %v7955_v48 = vadd.f32 %v9584_v20, %v1308_v32 }
 0x35f   : > { %v7797_v39 = vadd.f32 %v7796_v22, %v7795_v8  ;;  %v7798_v40 = vpop.f32.mrb[38].mxu1  ;;  %7944 = vmatpush3.bf16.msra.mxu1 %v9099_v35 }
 0x360   : > { %6058 = vmatpush1.bf16.msra.mxu0 %v9095_v2  ;;  %v7799_v28 = vpop.f32.mrb[39].mxu1  ;;  %7945 = vmatprep.subr.bf16.mxu1 %v9103_v41 }
 0x361   : > { %6059 = vmatprep.subr.bf16.mxu0 %v9102_v37  ;;  %v6427_v13 = vadd.f32 %v7797_v39, %v9660_v7 }
 0x363   : > { %7946 = vmatpush3.bf16.msra.mxu1 %v9104_v46 }
 0x364   : > { %6060 = vmatpush1.bf16.msra.mxu0 %v9100_v44  ;;  %7947 = vmatprep.subr.bf16.mxu1 %v9108_v47 }
 0x365   : > { %6061 = vmatprep.subr.bf16.mxu0 %v9107_v60 }
 0x367   : > { %7948 = vmatpush3.bf16.msra.mxu1 %v9109_v54 }
 0x368   : > { %6062 = vmatpush1.bf16.msra.mxu0 %v9105_v52 }
 0x36a   : > { %6705 = vmatmul.mubr.bf16.vlgmr.msra.gmra.mrb[64].mxu1 %v277_v0 }
 0x36b   : > { %6064 = vmatmul.mubr.bf16.vlgmr.msra.gmra.mrb[0].mxu0 %v277_v0 }
 0x37d   : > { %v7817_v43 = vpop.f32.mrb[40].mxu1 }
 0x37e   : > { %v7818_v18 = vpop.f32.mrb[41].mxu1 }
 0x37f   : > { %v7819_v57 = vadd.f32 %v7818_v18, %v7817_v43  ;;  %v7820_v58 = vpop.f32.mrb[42].mxu1 }
 0x380   : > { %v7821_v59 = vpop.f32.mrb[43].mxu1 }
 0x381   : > { %v6467_v51 = vadd.f32 %v7819_v57, %v6427_v13 }
 0x39d   : > { %v7839_v1 = vpop.f32.mrb[44].mxu1 }
 0x39e   : > { %v7840_v10 = vpop.f32.mrb[45].mxu1 }
 0x39f   : > { %v7841_v62 = vadd.f32 %v7840_v10, %v7839_v1  ;;  %v7842_v63 = vpop.f32.mrb[46].mxu1 }
 0x3a0   : > { %v7843_v53 = vpop.f32.mrb[47].mxu1 }
 0x3a1   : > { %v6507_v3 = vadd.f32 %v7841_v62, %v6467_v51 }
 0x3bd   : > { %v7861_v36 = vpop.f32.mrb[48].mxu1 }
 0x3be   : > { %v7862_v45 = vpop.f32.mrb[49].mxu1 }
 0x3bf   : > { %v7863_v4 = vadd.f32 %v7862_v45, %v7861_v36  ;;  %v7864_v6 = vpop.f32.mrb[50].mxu1 }
 0x3c0   : > { %v7865_v56 = vpop.f32.mrb[51].mxu1 }
 0x3c1   : > { %v6547_v5 = vadd.f32 %v7863_v4, %v6507_v3 }
 0x3dd   : > { %v7883_v7 = vpop.f32.mrb[52].mxu1 }
 0x3de   : > { %v7884_v49 = vpop.f32.mrb[53].mxu1 }
 0x3df   : > { %v7885_v23 = vadd.f32 %v7884_v49, %v7883_v7  ;;  %v7886_v61 = vpop.f32.mrb[54].mxu1 }
 0x3e0   : > { %v7887_v9 = vpop.f32.mrb[55].mxu1 }
 0x3e1   : > { %v6587_v12 = vadd.f32 %v7885_v23, %v6547_v5 }
 0x3fd   : > { %v7905_v14 = vpop.f32.mrb[56].mxu1 }
 0x3fe   : > { %v7906_v15 = vpop.f32.mrb[57].mxu1 }
 0x3ff   : > { %v7907_v33 = vadd.f32 %v7906_v15, %v7905_v14  ;;  %v7908_v16 = vpop.f32.mrb[58].mxu1 }
 0x400   : > { %v7909_v42 = vpop.f32.mrb[59].mxu1 }
 0x401   : > { %v6627_v19 = vadd.f32 %v7907_v33, %v6587_v12 }
 0x41d   : > { %v7927_v24 = vpop.f32.mrb[60].mxu1 }
 0x41e   : > { %v7928_v50 = vpop.f32.mrb[61].mxu1 }
 0x41f   : > { %v7929_v21 = vadd.f32 %v7928_v50, %v7927_v24  ;;  %v7930_v26 = vpop.f32.mrb[62].mxu1 }
 0x420   : > { %v7931_v27 = vpop.f32.mrb[63].mxu1 }
 0x421   : > { %v6667_v17 = vadd.f32 %v7929_v21, %v6627_v19 }
 0x43d   : > { %v7949_v35 = vpop.f32.mrb[64].mxu1 }
 0x43e   : > { %v6065_v2 = vpop.f32.mrb[0].mxu0  ;;  %v7950_v8 = vpop.f32.mrb[65].mxu1 }
 0x43f   : > { %v7956_v37 = vadd.f32 %v7955_v48, %v6065_v2  ;;  %v6067_v41 = vpop.f32.mrb[1].mxu0  ;;  %v7951_v38 = vadd.f32 %v7950_v8, %v7949_v35  ;;  %v7952_v40 = vpop.f32.mrb[66].mxu1 }
 0x440   : > { %v7958_v22 = vadd.f32 %v7957_v11, %v6067_v41  ;;  %v6069_v39 = vpop.f32.mrb[2].mxu0  ;;  %v7953_v46 = vpop.f32.mrb[67].mxu1 }
 0x441   : > { %6712 = vst [vmem:[%s213_s21] sm:$0xff] %v7956_v37  ;;  %v6070_v44 = vpop.f32.mrb[3].mxu0  ;;  %v6707_v20 = vadd.f32 %v7951_v38, %v6667_v17 }
 0x442   : > { %6713 = vst [vmem:[%s213_s21 + $0x8] sm:$0xff] %v7958_v22 }
 0x443   : > { %6714 = vst [vmem:[%s213_s21 + $0x10] sm:$0xff] %v6707_v20 }
 0x444   : > { %9210 = shalt.err (!%p9207_p2)
}
 0x445   : > { %s9211_s10 = scalar_lea.hbm %s9675_s16, 384  ;;  %s9215_s17 = scalar_lea.hbm %s9722_s3, 768 }
 0x446   : > { %p9212_p13 = scmp.ne.s32.totalorder %s9675_s16, %s9211_s10  ;;  %p9216_p4 = scmp.lt.u32.totalorder %s9675_s16, %s9722_s3 }
 0x447   : > { %p9217_p5 = scmp.lt.u32.totalorder %s9215_s17, %s9211_s10  ;;  %p9219_p11 = scmp.lt.u32.totalorder %s9211_s10, %s9675_s16 }
 0x448   : > { %p9213_p6 = pnand %p9212_p13, %p9736_p0 }
 0x449   : > { %p9218_p8 = por %p9217_p5, %p9216_p4 }
 0x44a   : > { %p9214_p10 = pneg %p9213_p6 }
 0x44b   : > { %p9220_p1 = por %p9219_p11, %p9218_p8 }
 0x44d   : > { %p9221_p3 = pnand %p9220_p1, %p9214_p10 }
 0x44f   : > { %9224 = shalt.err (!%p9221_p3)
}
 0x450   : > { %8027 = dma.vmem_to_hbm [thread:$0]  (%p9736_p0), %s9677_s26, 384, %s9675_s16, %s6716_s30  }
 0x451 PF: > { %s6742_s29 = sand.u32 1, %s9255_s12   ;;  %p9737_p7 = scmp.ne.s32.totalorder %s9727_s19, 0 }
 0x452   : > { %p9738_p9 = scmp.ge.s32.totalorder %s9267_s15, 2  ;;  %s6743_s18 = scalar_lea.sflag [#allocation4], %s6742_s29 }
 0x454   : > { %p8041_p12 = pnand %p9738_p9, %p9737_p7 }
 0x456   : > { %9250 = dma.done.wait (!%p8041_p12), %s6743_s18, 384  }
 0x457   : > { %9252 = vsyncadd (!%p8041_p12), %s6743_s18, 4294966912  ;;  %p17_p2 = scmp.ge.s32.totalorder %s9406_s5, 4   ;;  %s9739_s12 = smov %s9259_s13 }
 0x458   : > { %s9740_s13 = smov %s9263_s14  ;;  %s9741_s14 = smov %s9422_s8 }
 0x459   : > { %s9742_s15 = smov %s9406_s5  ;;  %19 = sbr.rel (!%p17_p2) target bundleno = 6 (0x6), region = 85 }
 0x460   :  { %6748 = vsyncpa [#allocation3], 1 }
 0x461   :  { %6750 = vsyncpa [#allocation3 + $0x1], 1 }
 0x462   :  { %6751 = vsyncpa [#allocation6], 1 }
 0x463   :  { %6752 = vsyncpa [#allocation4], 1 }
 0x464   :  { %6754 = vsyncpa [#allocation4 + $0x1], 1 }

</bundles_post_ra>
